<compile_context>
chip_gen: v5e
topology: v5e:2x2
jax: 0.10.0
libtpu: 0.0.40
codegen_flags: <defaults>
</compile_context>

<pallas_src>
import math

import numpy as np
import jax
import jax.numpy as jnp
from jax.experimental import pallas as pl
from jax.experimental.pallas import tpu as pltpu

# ------------------------- hyper-parameters (small) -------------------------
B = 2          # batch
S = 8          # sequence length
F_IN = 4       # src feature dim (src[:, :, 0] drives the pad mask, as in Batch)
D = 32         # d_model
H = 4          # attention heads
DK = D // H
D_FF = 64      # feed-forward hidden dim
N_LAYERS = 2   # encoder layers
V = 16         # generator output dim
V_PAD = 128    # lane-dense padded generator width (unmasked 128-lane stores)
PAD = 2.0
EPS = 1e-6


# ------------------------------ kernel helpers ------------------------------
def _layernorm(x, a, b):
    mu = jnp.mean(x, axis=-1, keepdims=True)
    var = jnp.mean((x - mu) ** 2, axis=-1, keepdims=True)
    return a * (x - mu) * jax.lax.rsqrt(var + EPS) + b


def encoder_decoder_kernel(src_ref, mask_ref,
                           we_ref, peb_ref, ln_ref,
                           wqkvo_ref, bqkvo_ref,
                           w1_ref, w2_ref, b12_ref,
                           wg_ref, bg_ref,
                           out_ref):
    # Whole problem in one grid step: activations are (B*S, D) = (16, 32).
    src = src_ref[...]                                        # (B*S, F_IN)

    # Additive mask, computed once: 0 where attend, -1e9 where pad.  (B, S)
    mask_add = (mask_ref[...] - 1.0) * jnp.float32(1e9)

    # ----- src_embed: Linear (sqrt(d_model) folded into we) + PE (be folded into pe) -----
    x = jnp.dot(src, we_ref[...], preferred_element_type=jnp.float32)
    x = x + jnp.concatenate([peb_ref[...]] * B, axis=0)       # (B*S, D)

    scale = jnp.float32(1.0 / math.sqrt(DK))

    # ----- encoder stack (pre-norm, residual) -----
    for l in range(N_LAYERS):
        # --- self-attention sublayer ---
        ln1 = ln_ref[2 * l:2 * l + 1, :]                      # (1, 2D) = a | b
        xn = _layernorm(x, ln1[:, :D], ln1[:, D:])

        w_l = wqkvo_ref[l]                                    # (D, 4D) = Wq|Wk|Wv|Wo
        b_l = bqkvo_ref[l:l + 1, :]                           # (1, 4D)
        # fused Q|K|V projection: one lane-dense (B*S, D) x (D, 3D) matmul
        qkv = jnp.dot(xn, w_l[:, :3 * D],
                      preferred_element_type=jnp.float32) + b_l[:, :3 * D]
        wo = w_l[:, 3 * D:]                                   # (D, D)
        bo = b_l[:, 3 * D:]                                   # (1, D)

        batch_outs = []
        for b in range(B):
            qkv_b = qkv[b * S:(b + 1) * S, :]                 # (S, 3D)
            madd = mask_add[b:b + 1, :]                       # (1, S) broadcasts over (S, S)
            acc = jnp.zeros((S, D), jnp.float32)
            for h in range(H):
                qh = qkv_b[:, h * DK:(h + 1) * DK]
                kh = qkv_b[:, D + h * DK:D + (h + 1) * DK]
                vh = qkv_b[:, 2 * D + h * DK:2 * D + (h + 1) * DK]
                s = jnp.dot(qh, kh.T, preferred_element_type=jnp.float32) * scale + madd
                s = s - jnp.max(s, axis=-1, keepdims=True)
                p = jnp.exp(s)
                p = p * pl.reciprocal(jnp.sum(p, axis=-1, keepdims=True), approx=False)
                ho = jnp.dot(p, vh, preferred_element_type=jnp.float32)      # (S, DK)
                # output projection distributed over heads -> no per-head lane concat
                acc = acc + jnp.dot(ho, wo[h * DK:(h + 1) * DK, :],
                                    preferred_element_type=jnp.float32)
            batch_outs.append(acc)
        attn = jnp.concatenate(batch_outs, axis=0) + bo       # (B*S, D)
        x = x + attn

        # --- feed-forward sublayer ---
        ln2 = ln_ref[2 * l + 1:2 * l + 2, :]
        xn = _layernorm(x, ln2[:, :D], ln2[:, D:])
        b12 = b12_ref[l:l + 1, :]                             # (1, D_FF + D) = b1 | b2
        hdn = jnp.dot(xn, w1_ref[l], preferred_element_type=jnp.float32) + b12[:, :D_FF]
        hdn = jnp.maximum(hdn, 0.0)
        x = x + jnp.dot(hdn, w2_ref[l], preferred_element_type=jnp.float32) + b12[:, D_FF:]

    # final encoder LayerNorm
    lnf = ln_ref[2 * N_LAYERS:2 * N_LAYERS + 1, :]
    x = _layernorm(x, lnf[:, :D], lnf[:, D:])

    # ----- generator: Linear(D -> V_PAD) + log_softmax -----
    # Pad columns carry a -1e9 bias so exp() underflows to exactly 0 and the real
    # V=16 log-probs are untouched; the store is an unmasked, lane-dense (16,128) vst.
    logits = jnp.dot(x, wg_ref[...], preferred_element_type=jnp.float32) + bg_ref[...]
    logits = logits - jnp.max(logits, axis=-1, keepdims=True)
    out_ref[...] = logits - jnp.log(jnp.sum(jnp.exp(logits), axis=-1, keepdims=True))


# ------------------------------- wrapper -------------------------------
def _full_spec(shape):
    nd = len(shape)
    return pl.BlockSpec(shape, lambda i, _nd=nd: (0,) * _nd)


def encoder_decoder_forward(src, src_mask, packed):
    src2 = src.reshape(B * S, F_IN)
    mask2 = src_mask.reshape(B, S)

    in_arrays = [
        src2, mask2,
        packed["we_s"], packed["pe_b"], packed["ln_ab"],
        packed["wqkvo"], packed["bqkvo"],
        packed["w1"], packed["w2"], packed["b12"],
        packed["wg_pad"], packed["bg_pad"],
    ]
    in_specs = [_full_spec(tuple(a.shape)) for a in in_arrays]
    out_spec = _full_spec((B * S, V_PAD))

    fn = pl.pallas_call(
        encoder_decoder_kernel,
        out_shape=jax.ShapeDtypeStruct((B * S, V_PAD), jnp.float32),
        grid_spec=pltpu.PrefetchScalarGridSpec(
            num_scalar_prefetch=0,
            grid=(1,),                              # single fused step
            in_specs=in_specs,
            out_specs=out_spec,
        ),
        compiler_params=pltpu.CompilerParams(dimension_semantics=("arbitrary",)),
    )
    out = fn(*in_arrays)
    return out[:, :V].reshape(B, S, V)


# ---------------------- one-time parameter repacking ----------------------
def pack_params(p):
    """Repack the canonical parameter dict into a few lane-dense fused slabs."""
    ln_rows = []
    for l in range(N_LAYERS):
        ln_rows.append(jnp.concatenate([p["ln1a"][l], p["ln1b"][l]])[None, :])
        ln_rows.append(jnp.concatenate([p["ln2a"][l], p["ln2b"][l]])[None, :])
    ln_rows.append(jnp.concatenate([p["lnfa"][0], p["lnfb"][0]])[None, :])
    ln_ab = jnp.concatenate(ln_rows, axis=0)                              # (2N+1, 2D)

    wqkvo = jnp.concatenate([p["wattn"][:, i] for i in range(4)], axis=-1)  # (N, D, 4D)
    bqkvo = jnp.concatenate([p["battn"][:, i] for i in range(4)], axis=-1)  # (N, 4D)
    b12 = jnp.concatenate([p["b1"], p["b2"]], axis=-1)                      # (N, D_FF+D)

    wg_pad = jnp.zeros((D, V_PAD), jnp.float32).at[:, :V].set(p["wg"])
    bg_pad = jnp.full((1, V_PAD), -1e9, jnp.float32).at[:, :V].set(p["bg"])

    return {
        "we_s": p["we"] * jnp.float32(math.sqrt(D)),   # fold sqrt(d_model) into the weight
        "pe_b": p["pe"] + p["be"],                     # fold embed bias into the PE table
        "ln_ab": ln_ab,
        "wqkvo": wqkvo,
        "bqkvo": bqkvo,
        "w1": p["w1"],
        "w2": p["w2"],
        "b12": b12,
        "wg_pad": wg_pad,
        "bg_pad": bg_pad,
    }


# ------------------------- deterministic parameters -------------------------
def sinusoidal_pe(seq, d):
    pos = np.arange(seq)[:, None].astype(np.float64)
    div = np.exp(np.arange(0, d, 2).astype(np.float64) * -(math.log(10000.0) / d))
    pe = np.zeros((seq, d), np.float32)
    pe[:, 0::2] = np.sin(pos * div)
    pe[:, 1::2] = np.cos(pos * div)
    return jnp.asarray(pe)


def init_params(key):
    ks = jax.random.split(key, 12)

    def mat(k, shape, fan_in):
        return (jax.random.normal(k, shape, jnp.float32) / math.sqrt(fan_in)).astype(jnp.float32)

    return {
        "pe": sinusoidal_pe(S, D),
        "we": mat(ks[0], (F_IN, D), F_IN),
        "be": 0.01 * jax.random.normal(ks[1], (1, D), jnp.float32),
        "ln1a": jnp.ones((N_LAYERS, D), jnp.float32),
        "ln1b": jnp.zeros((N_LAYERS, D), jnp.float32),
        "wattn": mat(ks[2], (N_LAYERS, 4, D, D), D),
        "battn": 0.01 * jax.random.normal(ks[3], (N_LAYERS, 4, D), jnp.float32),
        "ln2a": jnp.ones((N_LAYERS, D), jnp.float32),
        "ln2b": jnp.zeros((N_LAYERS, D), jnp.float32),
        "w1": mat(ks[4], (N_LAYERS, D, D_FF), D),
        "b1": 0.01 * jax.random.normal(ks[5], (N_LAYERS, D_FF), jnp.float32),
        "w2": mat(ks[6], (N_LAYERS, D_FF, D), D_FF),
        "b2": 0.01 * jax.random.normal(ks[7], (N_LAYERS, D), jnp.float32),
        "lnfa": jnp.ones((1, D), jnp.float32),
        "lnfb": jnp.zeros((1, D), jnp.float32),
        "wg": mat(ks[8], (D, V), D),
        "bg": 0.01 * jax.random.normal(ks[9], (1, V), jnp.float32),
    }


# ------------------------- pure-JAX reference (sanity) -------------------------
def reference_forward(src, src_mask, p):
    def ln(x, a, b):
        mu = jnp.mean(x, -1, keepdims=True)
        var = jnp.mean((x - mu) ** 2, -1, keepdims=True)
        return a * (x - mu) / jnp.sqrt(var + EPS) + b

    x = src @ p["we"] * math.sqrt(D) + p["be"][0]
    x = x + p["pe"][None]
    m = (src_mask > 0.5)[:, :, None, :]            # (B,1,1,S)
    for l in range(N_LAYERS):
        xn = ln(x, p["ln1a"][l], p["ln1b"][l])
        q = xn @ p["wattn"][l, 0] + p["battn"][l, 0]
        k = xn @ p["wattn"][l, 1] + p["battn"][l, 1]
        v = xn @ p["wattn"][l, 2] + p["battn"][l, 2]
        split = lambda t: t.reshape(B, S, H, DK).transpose(0, 2, 1, 3)
        qh, kh, vh = split(q), split(k), split(v)
        s = (qh @ kh.transpose(0, 1, 3, 2)) / math.sqrt(DK)
        s = jnp.where(m, s, -1e9)
        pattn = jax.nn.softmax(s, axis=-1)
        o = (pattn @ vh).transpose(0, 2, 1, 3).reshape(B, S, D)
        x = x + (o @ p["wattn"][l, 3] + p["battn"][l, 3])
        xn = ln(x, p["ln2a"][l], p["ln2b"][l])
        x = x + (jnp.maximum(xn @ p["w1"][l] + p["b1"][l], 0.0) @ p["w2"][l] + p["b2"][l])
    x = ln(x, p["lnfa"][0], p["lnfb"][0])
    logits = x @ p["wg"] + p["bg"][0]
    return jax.nn.log_softmax(logits, axis=-1)


# ----------------------------------- main -----------------------------------
if __name__ == "__main__":
    key = jax.random.PRNGKey(0)
    k_param, k_src = jax.random.split(key)
    params = init_params(k_param)
    packed = pack_params(params)

    src = jax.random.normal(k_src, (B, S, F_IN), jnp.float32)
    # mark the last two positions of batch element 1 as padding (channel-0 == PAD),
    # exactly how class Batch derives src_mask: (src[:, :, 0] != pad).unsqueeze(-2)
    src = src.at[1, S - 2:, 0].set(PAD)
    src_mask = (src[:, :, 0] != PAD)[:, None, :].astype(jnp.float32)   # (B, 1, S)

    out = encoder_decoder_forward(src, src_mask, packed)
    out = jax.block_until_ready(out)

    ref = reference_forward(src, src_mask, params)
    np.testing.assert_allclose(np.asarray(out), np.asarray(ref), rtol=1e-3, atol=1e-3)

    print("KERNEL_OK")
</pallas_src>

<mosaic_0001>
module attributes {stable_mosaic.version = 11 : i64} {
  func.func @encoder_decoder_kernel(%arg0: i32, %arg1: memref<16x4xf32, #tpu.memory_space<vmem>>, %arg2: memref<2x8xf32, #tpu.memory_space<vmem>>, %arg3: memref<4x32xf32, #tpu.memory_space<vmem>>, %arg4: memref<8x32xf32, #tpu.memory_space<vmem>>, %arg5: memref<5x64xf32, #tpu.memory_space<vmem>>, %arg6: memref<2x32x128xf32, #tpu.memory_space<vmem>>, %arg7: memref<2x128xf32, #tpu.memory_space<vmem>>, %arg8: memref<2x32x64xf32, #tpu.memory_space<vmem>>, %arg9: memref<2x64x32xf32, #tpu.memory_space<vmem>>, %arg10: memref<2x96xf32, #tpu.memory_space<vmem>>, %arg11: memref<32x128xf32, #tpu.memory_space<vmem>>, %arg12: memref<1x128xf32, #tpu.memory_space<vmem>>, %arg13: memref<16x128xf32, #tpu.memory_space<vmem>>) attributes {dimension_semantics = [#tpu.dimension_semantics<arbitrary>], iteration_bounds = array<i64: 1>, scalar_prefetch = 0 : i64, scratch_operands = 0 : i64, tpu.core_type = #tpu.core_type<tc>, window_params = [{pipeline_mode = #tpu.pipeline_mode<synchronous>, transform_indices = @transform_0, window_bounds = array<i64: 16, 4>}, {pipeline_mode = #tpu.pipeline_mode<synchronous>, transform_indices = @transform_1, window_bounds = array<i64: 2, 8>}, {pipeline_mode = #tpu.pipeline_mode<synchronous>, transform_indices = @transform_2, window_bounds = array<i64: 4, 32>}, {pipeline_mode = #tpu.pipeline_mode<synchronous>, transform_indices = @transform_3, window_bounds = array<i64: 8, 32>}, {pipeline_mode = #tpu.pipeline_mode<synchronous>, transform_indices = @transform_4, window_bounds = array<i64: 5, 64>}, {pipeline_mode = #tpu.pipeline_mode<synchronous>, transform_indices = @transform_5, window_bounds = array<i64: 2, 32, 128>}, {pipeline_mode = #tpu.pipeline_mode<synchronous>, transform_indices = @transform_6, window_bounds = array<i64: 2, 128>}, {pipeline_mode = #tpu.pipeline_mode<synchronous>, transform_indices = @transform_7, window_bounds = array<i64: 2, 32, 64>}, {pipeline_mode = #tpu.pipeline_mode<synchronous>, transform_indices = @transform_8, window_bounds = array<i64: 2, 64, 32>}, {pipeline_mode = #tpu.pipeline_mode<synchronous>, transform_indices = @transform_9, window_bounds = array<i64: 2, 96>}, {pipeline_mode = #tpu.pipeline_mode<synchronous>, transform_indices = @transform_10, window_bounds = array<i64: 32, 128>}, {pipeline_mode = #tpu.pipeline_mode<synchronous>, transform_indices = @transform_11, window_bounds = array<i64: 1, 128>}, {pipeline_mode = #tpu.pipeline_mode<synchronous>, transform_indices = @transform_12, window_bounds = array<i64: 16, 128>}]} {
    %c0 = arith.constant 0 : index
    %c0_0 = arith.constant 0 : index
    %0 = vector.load %arg1[%c0, %c0_0] : memref<16x4xf32, #tpu.memory_space<vmem>>, vector<16x4xf32>
    %c0_1 = arith.constant 0 : index
    %c0_2 = arith.constant 0 : index
    %1 = vector.load %arg2[%c0_1, %c0_2] : memref<2x8xf32, #tpu.memory_space<vmem>>, vector<2x8xf32>
    %cst = arith.constant 1.000000e+00 : f32
    %2 = vector.broadcast %cst : f32 to vector<2x8xf32>
    %3 = arith.subf %1, %2 : vector<2x8xf32>
    %cst_3 = arith.constant 1.000000e+09 : f32
    %4 = vector.broadcast %cst_3 : f32 to vector<2x8xf32>
    %5 = arith.mulf %3, %4 : vector<2x8xf32>
    %c0_4 = arith.constant 0 : index
    %c0_5 = arith.constant 0 : index
    %6 = vector.load %arg3[%c0_4, %c0_5] : memref<4x32xf32, #tpu.memory_space<vmem>>, vector<4x32xf32>
    %cst_6 = arith.constant dense<0.000000e+00> : vector<16x32xf32>
    %7 = tpu.matmul %0, %6, %cst_6 {dimension_numbers = #tpu.dot_dimension_numbers<[1], [0], [0], [1], [0, 0, 1, 1], [], []>} : vector<16x4xf32>, vector<4x32xf32>, vector<16x32xf32> -> vector<16x32xf32>
    %c0_7 = arith.constant 0 : index
    %c0_8 = arith.constant 0 : index
    %8 = vector.load %arg4[%c0_7, %c0_8] : memref<8x32xf32, #tpu.memory_space<vmem>>, vector<8x32xf32>
    %9 = tpu.concatenate %8, %8 in 0 : vector<8x32xf32>, vector<8x32xf32> -> vector<16x32xf32>
    %10 = arith.addf %7, %9 : vector<16x32xf32>
    %c0_9 = arith.constant 0 : index
    %c0_10 = arith.constant 0 : index
    %11 = vector.load %arg5[%c0_9, %c0_10] : memref<5x64xf32, #tpu.memory_space<vmem>>, vector<1x64xf32>
    %12 = vector.extract_strided_slice %11 {offsets = [0, 0], sizes = [1, 32], strides = [1, 1]} : vector<1x64xf32> to vector<1x32xf32>
    %13 = vector.extract_strided_slice %11 {offsets = [0, 32], sizes = [1, 32], strides = [1, 1]} : vector<1x64xf32> to vector<1x32xf32>
    %cst_11 = arith.constant dense<0.000000e+00> : vector<16xf32>
    %14 = vector.multi_reduction <add>, %10, %cst_11 [1] : vector<16x32xf32> to vector<16xf32>
    %15 = vector.shape_cast %14 : vector<16xf32> to vector<16x1xf32>
    %cst_12 = arith.constant 3.200000e+01 : f32
    %16 = vector.broadcast %cst_12 : f32 to vector<16x1xf32>
    %17 = arith.divf %15, %16 : vector<16x1xf32>
    %18 = vector.broadcast %17 : vector<16x1xf32> to vector<16x32xf32>
    %19 = arith.subf %10, %18 : vector<16x32xf32>
    %20 = arith.mulf %19, %19 : vector<16x32xf32>
    %cst_13 = arith.constant dense<0.000000e+00> : vector<16xf32>
    %21 = vector.multi_reduction <add>, %20, %cst_13 [1] : vector<16x32xf32> to vector<16xf32>
    %22 = vector.shape_cast %21 : vector<16xf32> to vector<16x1xf32>
    %cst_14 = arith.constant 3.200000e+01 : f32
    %23 = vector.broadcast %cst_14 : f32 to vector<16x1xf32>
    %24 = arith.divf %22, %23 : vector<16x1xf32>
    %25 = vector.broadcast %17 : vector<16x1xf32> to vector<16x32xf32>
    %26 = arith.subf %10, %25 : vector<16x32xf32>
    %27 = vector.broadcast %12 : vector<1x32xf32> to vector<16x32xf32>
    %28 = arith.mulf %27, %26 : vector<16x32xf32>
    %cst_15 = arith.constant 9.99999997E-7 : f32
    %29 = vector.broadcast %cst_15 : f32 to vector<16x1xf32>
    %30 = arith.addf %24, %29 : vector<16x1xf32>
    %31 = math.rsqrt %30 : vector<16x1xf32>
    %32 = vector.broadcast %31 : vector<16x1xf32> to vector<16x32xf32>
    %33 = arith.mulf %28, %32 : vector<16x32xf32>
    %34 = vector.broadcast %13 : vector<1x32xf32> to vector<16x32xf32>
    %35 = arith.addf %33, %34 : vector<16x32xf32>
    %c0_16 = arith.constant 0 : index
    %c0_17 = arith.constant 0 : index
    %c0_18 = arith.constant 0 : index
    %36 = vector.load %arg6[%c0_16, %c0_17, %c0_18] : memref<2x32x128xf32, #tpu.memory_space<vmem>>, vector<1x32x128xf32>
    %37 = vector.shape_cast %36 : vector<1x32x128xf32> to vector<32x128xf32>
    %c0_19 = arith.constant 0 : index
    %c0_20 = arith.constant 0 : index
    %38 = vector.load %arg7[%c0_19, %c0_20] : memref<2x128xf32, #tpu.memory_space<vmem>>, vector<1x128xf32>
    %39 = vector.extract_strided_slice %37 {offsets = [0, 0], sizes = [32, 96], strides = [1, 1]} : vector<32x128xf32> to vector<32x96xf32>
    %cst_21 = arith.constant dense<0.000000e+00> : vector<16x96xf32>
    %40 = tpu.matmul %35, %39, %cst_21 {dimension_numbers = #tpu.dot_dimension_numbers<[1], [0], [0], [1], [0, 0, 1, 1], [], []>} : vector<16x32xf32>, vector<32x96xf32>, vector<16x96xf32> -> vector<16x96xf32>
    %41 = vector.extract_strided_slice %38 {offsets = [0, 0], sizes = [1, 96], strides = [1, 1]} : vector<1x128xf32> to vector<1x96xf32>
    %42 = vector.broadcast %41 : vector<1x96xf32> to vector<16x96xf32>
    %43 = arith.addf %40, %42 : vector<16x96xf32>
    %44 = vector.extract_strided_slice %37 {offsets = [0, 96], sizes = [32, 32], strides = [1, 1]} : vector<32x128xf32> to vector<32x32xf32>
    %45 = vector.extract_strided_slice %38 {offsets = [0, 96], sizes = [1, 32], strides = [1, 1]} : vector<1x128xf32> to vector<1x32xf32>
    %46 = vector.extract_strided_slice %43 {offsets = [0, 0], sizes = [8, 96], strides = [1, 1]} : vector<16x96xf32> to vector<8x96xf32>
    %47 = vector.extract_strided_slice %5 {offsets = [0, 0], sizes = [1, 8], strides = [1, 1]} : vector<2x8xf32> to vector<1x8xf32>
    %cst_22 = arith.constant 0.000000e+00 : f32
    %48 = vector.broadcast %cst_22 : f32 to vector<8x32xf32>
    %49 = vector.extract_strided_slice %46 {offsets = [0, 0], sizes = [8, 8], strides = [1, 1]} : vector<8x96xf32> to vector<8x8xf32>
    %50 = vector.extract_strided_slice %46 {offsets = [0, 32], sizes = [8, 8], strides = [1, 1]} : vector<8x96xf32> to vector<8x8xf32>
    %51 = vector.extract_strided_slice %46 {offsets = [0, 64], sizes = [8, 8], strides = [1, 1]} : vector<8x96xf32> to vector<8x8xf32>
    %52 = tpu.transpose %50, [1, 0] : vector<8x8xf32> -> vector<8x8xf32>
    %cst_23 = arith.constant dense<0.000000e+00> : vector<8x8xf32>
    %53 = tpu.matmul %49, %52, %cst_23 {dimension_numbers = #tpu.dot_dimension_numbers<[1], [0], [0], [1], [0, 0, 1, 1], [], []>} : vector<8x8xf32>, vector<8x8xf32>, vector<8x8xf32> -> vector<8x8xf32>
    %cst_24 = arith.constant 0.353553385 : f32
    %54 = vector.broadcast %cst_24 : f32 to vector<8x8xf32>
    %55 = arith.mulf %53, %54 : vector<8x8xf32>
    %56 = vector.broadcast %47 : vector<1x8xf32> to vector<8x8xf32>
    %57 = arith.addf %55, %56 : vector<8x8xf32>
    %cst_25 = arith.constant dense<0xFF800000> : vector<8xf32>
    %58 = vector.multi_reduction <maximumf>, %57, %cst_25 [1] : vector<8x8xf32> to vector<8xf32>
    %59 = vector.shape_cast %58 : vector<8xf32> to vector<8x1xf32>
    %60 = vector.broadcast %59 : vector<8x1xf32> to vector<8x8xf32>
    %61 = arith.subf %57, %60 : vector<8x8xf32>
    %62 = math.exp %61 : vector<8x8xf32>
    %cst_26 = arith.constant dense<0.000000e+00> : vector<8xf32>
    %63 = vector.multi_reduction <add>, %62, %cst_26 [1] : vector<8x8xf32> to vector<8xf32>
    %64 = vector.shape_cast %63 : vector<8xf32> to vector<8x1xf32>
    %65 = tpu.reciprocal %64 : vector<8x1xf32> -> vector<8x1xf32>
    %66 = vector.broadcast %65 : vector<8x1xf32> to vector<8x8xf32>
    %67 = arith.mulf %62, %66 : vector<8x8xf32>
    %cst_27 = arith.constant dense<0.000000e+00> : vector<8x8xf32>
    %68 = tpu.matmul %67, %51, %cst_27 {dimension_numbers = #tpu.dot_dimension_numbers<[1], [0], [0], [1], [0, 0, 1, 1], [], []>} : vector<8x8xf32>, vector<8x8xf32>, vector<8x8xf32> -> vector<8x8xf32>
    %69 = vector.extract_strided_slice %44 {offsets = [0, 0], sizes = [8, 32], strides = [1, 1]} : vector<32x32xf32> to vector<8x32xf32>
    %cst_28 = arith.constant dense<0.000000e+00> : vector<8x32xf32>
    %70 = tpu.matmul %68, %69, %cst_28 {dimension_numbers = #tpu.dot_dimension_numbers<[1], [0], [0], [1], [0, 0, 1, 1], [], []>} : vector<8x8xf32>, vector<8x32xf32>, vector<8x32xf32> -> vector<8x32xf32>
    %71 = arith.addf %48, %70 : vector<8x32xf32>
    %72 = vector.extract_strided_slice %46 {offsets = [0, 8], sizes = [8, 8], strides = [1, 1]} : vector<8x96xf32> to vector<8x8xf32>
    %73 = vector.extract_strided_slice %46 {offsets = [0, 40], sizes = [8, 8], strides = [1, 1]} : vector<8x96xf32> to vector<8x8xf32>
    %74 = vector.extract_strided_slice %46 {offsets = [0, 72], sizes = [8, 8], strides = [1, 1]} : vector<8x96xf32> to vector<8x8xf32>
    %75 = tpu.transpose %73, [1, 0] : vector<8x8xf32> -> vector<8x8xf32>
    %cst_29 = arith.constant dense<0.000000e+00> : vector<8x8xf32>
    %76 = tpu.matmul %72, %75, %cst_29 {dimension_numbers = #tpu.dot_dimension_numbers<[1], [0], [0], [1], [0, 0, 1, 1], [], []>} : vector<8x8xf32>, vector<8x8xf32>, vector<8x8xf32> -> vector<8x8xf32>
    %cst_30 = arith.constant 0.353553385 : f32
    %77 = vector.broadcast %cst_30 : f32 to vector<8x8xf32>
    %78 = arith.mulf %76, %77 : vector<8x8xf32>
    %79 = vector.broadcast %47 : vector<1x8xf32> to vector<8x8xf32>
    %80 = arith.addf %78, %79 : vector<8x8xf32>
    %cst_31 = arith.constant dense<0xFF800000> : vector<8xf32>
    %81 = vector.multi_reduction <maximumf>, %80, %cst_31 [1] : vector<8x8xf32> to vector<8xf32>
    %82 = vector.shape_cast %81 : vector<8xf32> to vector<8x1xf32>
    %83 = vector.broadcast %82 : vector<8x1xf32> to vector<8x8xf32>
    %84 = arith.subf %80, %83 : vector<8x8xf32>
    %85 = math.exp %84 : vector<8x8xf32>
    %cst_32 = arith.constant dense<0.000000e+00> : vector<8xf32>
    %86 = vector.multi_reduction <add>, %85, %cst_32 [1] : vector<8x8xf32> to vector<8xf32>
    %87 = vector.shape_cast %86 : vector<8xf32> to vector<8x1xf32>
    %88 = tpu.reciprocal %87 : vector<8x1xf32> -> vector<8x1xf32>
    %89 = vector.broadcast %88 : vector<8x1xf32> to vector<8x8xf32>
    %90 = arith.mulf %85, %89 : vector<8x8xf32>
    %cst_33 = arith.constant dense<0.000000e+00> : vector<8x8xf32>
    %91 = tpu.matmul %90, %74, %cst_33 {dimension_numbers = #tpu.dot_dimension_numbers<[1], [0], [0], [1], [0, 0, 1, 1], [], []>} : vector<8x8xf32>, vector<8x8xf32>, vector<8x8xf32> -> vector<8x8xf32>
    %92 = vector.extract_strided_slice %44 {offsets = [8, 0], sizes = [8, 32], strides = [1, 1]} : vector<32x32xf32> to vector<8x32xf32>
    %cst_34 = arith.constant dense<0.000000e+00> : vector<8x32xf32>
    %93 = tpu.matmul %91, %92, %cst_34 {dimension_numbers = #tpu.dot_dimension_numbers<[1], [0], [0], [1], [0, 0, 1, 1], [], []>} : vector<8x8xf32>, vector<8x32xf32>, vector<8x32xf32> -> vector<8x32xf32>
    %94 = arith.addf %71, %93 : vector<8x32xf32>
    %95 = vector.extract_strided_slice %46 {offsets = [0, 16], sizes = [8, 8], strides = [1, 1]} : vector<8x96xf32> to vector<8x8xf32>
    %96 = vector.extract_strided_slice %46 {offsets = [0, 48], sizes = [8, 8], strides = [1, 1]} : vector<8x96xf32> to vector<8x8xf32>
    %97 = vector.extract_strided_slice %46 {offsets = [0, 80], sizes = [8, 8], strides = [1, 1]} : vector<8x96xf32> to vector<8x8xf32>
    %98 = tpu.transpose %96, [1, 0] : vector<8x8xf32> -> vector<8x8xf32>
    %cst_35 = arith.constant dense<0.000000e+00> : vector<8x8xf32>
    %99 = tpu.matmul %95, %98, %cst_35 {dimension_numbers = #tpu.dot_dimension_numbers<[1], [0], [0], [1], [0, 0, 1, 1], [], []>} : vector<8x8xf32>, vector<8x8xf32>, vector<8x8xf32> -> vector<8x8xf32>
    %cst_36 = arith.constant 0.353553385 : f32
    %100 = vector.broadcast %cst_36 : f32 to vector<8x8xf32>
    %101 = arith.mulf %99, %100 : vector<8x8xf32>
    %102 = vector.broadcast %47 : vector<1x8xf32> to vector<8x8xf32>
    %103 = arith.addf %101, %102 : vector<8x8xf32>
    %cst_37 = arith.constant dense<0xFF800000> : vector<8xf32>
    %104 = vector.multi_reduction <maximumf>, %103, %cst_37 [1] : vector<8x8xf32> to vector<8xf32>
    %105 = vector.shape_cast %104 : vector<8xf32> to vector<8x1xf32>
    %106 = vector.broadcast %105 : vector<8x1xf32> to vector<8x8xf32>
    %107 = arith.subf %103, %106 : vector<8x8xf32>
    %108 = math.exp %107 : vector<8x8xf32>
    %cst_38 = arith.constant dense<0.000000e+00> : vector<8xf32>
    %109 = vector.multi_reduction <add>, %108, %cst_38 [1] : vector<8x8xf32> to vector<8xf32>
    %110 = vector.shape_cast %109 : vector<8xf32> to vector<8x1xf32>
    %111 = tpu.reciprocal %110 : vector<8x1xf32> -> vector<8x1xf32>
    %112 = vector.broadcast %111 : vector<8x1xf32> to vector<8x8xf32>
    %113 = arith.mulf %108, %112 : vector<8x8xf32>
    %cst_39 = arith.constant dense<0.000000e+00> : vector<8x8xf32>
    %114 = tpu.matmul %113, %97, %cst_39 {dimension_numbers = #tpu.dot_dimension_numbers<[1], [0], [0], [1], [0, 0, 1, 1], [], []>} : vector<8x8xf32>, vector<8x8xf32>, vector<8x8xf32> -> vector<8x8xf32>
    %115 = vector.extract_strided_slice %44 {offsets = [16, 0], sizes = [8, 32], strides = [1, 1]} : vector<32x32xf32> to vector<8x32xf32>
    %cst_40 = arith.constant dense<0.000000e+00> : vector<8x32xf32>
    %116 = tpu.matmul %114, %115, %cst_40 {dimension_numbers = #tpu.dot_dimension_numbers<[1], [0], [0], [1], [0, 0, 1, 1], [], []>} : vector<8x8xf32>, vector<8x32xf32>, vector<8x32xf32> -> vector<8x32xf32>
    %117 = arith.addf %94, %116 : vector<8x32xf32>
    %118 = vector.extract_strided_slice %46 {offsets = [0, 24], sizes = [8, 8], strides = [1, 1]} : vector<8x96xf32> to vector<8x8xf32>
    %119 = vector.extract_strided_slice %46 {offsets = [0, 56], sizes = [8, 8], strides = [1, 1]} : vector<8x96xf32> to vector<8x8xf32>
    %120 = vector.extract_strided_slice %46 {offsets = [0, 88], sizes = [8, 8], strides = [1, 1]} : vector<8x96xf32> to vector<8x8xf32>
    %121 = tpu.transpose %119, [1, 0] : vector<8x8xf32> -> vector<8x8xf32>
    %cst_41 = arith.constant dense<0.000000e+00> : vector<8x8xf32>
    %122 = tpu.matmul %118, %121, %cst_41 {dimension_numbers = #tpu.dot_dimension_numbers<[1], [0], [0], [1], [0, 0, 1, 1], [], []>} : vector<8x8xf32>, vector<8x8xf32>, vector<8x8xf32> -> vector<8x8xf32>
    %cst_42 = arith.constant 0.353553385 : f32
    %123 = vector.broadcast %cst_42 : f32 to vector<8x8xf32>
    %124 = arith.mulf %122, %123 : vector<8x8xf32>
    %125 = vector.broadcast %47 : vector<1x8xf32> to vector<8x8xf32>
    %126 = arith.addf %124, %125 : vector<8x8xf32>
    %cst_43 = arith.constant dense<0xFF800000> : vector<8xf32>
    %127 = vector.multi_reduction <maximumf>, %126, %cst_43 [1] : vector<8x8xf32> to vector<8xf32>
    %128 = vector.shape_cast %127 : vector<8xf32> to vector<8x1xf32>
    %129 = vector.broadcast %128 : vector<8x1xf32> to vector<8x8xf32>
    %130 = arith.subf %126, %129 : vector<8x8xf32>
    %131 = math.exp %130 : vector<8x8xf32>
    %cst_44 = arith.constant dense<0.000000e+00> : vector<8xf32>
    %132 = vector.multi_reduction <add>, %131, %cst_44 [1] : vector<8x8xf32> to vector<8xf32>
    %133 = vector.shape_cast %132 : vector<8xf32> to vector<8x1xf32>
    %134 = tpu.reciprocal %133 : vector<8x1xf32> -> vector<8x1xf32>
    %135 = vector.broadcast %134 : vector<8x1xf32> to vector<8x8xf32>
    %136 = arith.mulf %131, %135 : vector<8x8xf32>
    %cst_45 = arith.constant dense<0.000000e+00> : vector<8x8xf32>
    %137 = tpu.matmul %136, %120, %cst_45 {dimension_numbers = #tpu.dot_dimension_numbers<[1], [0], [0], [1], [0, 0, 1, 1], [], []>} : vector<8x8xf32>, vector<8x8xf32>, vector<8x8xf32> -> vector<8x8xf32>
    %138 = vector.extract_strided_slice %44 {offsets = [24, 0], sizes = [8, 32], strides = [1, 1]} : vector<32x32xf32> to vector<8x32xf32>
    %cst_46 = arith.constant dense<0.000000e+00> : vector<8x32xf32>
    %139 = tpu.matmul %137, %138, %cst_46 {dimension_numbers = #tpu.dot_dimension_numbers<[1], [0], [0], [1], [0, 0, 1, 1], [], []>} : vector<8x8xf32>, vector<8x32xf32>, vector<8x32xf32> -> vector<8x32xf32>
    %140 = arith.addf %117, %139 : vector<8x32xf32>
    %141 = vector.extract_strided_slice %43 {offsets = [8, 0], sizes = [8, 96], strides = [1, 1]} : vector<16x96xf32> to vector<8x96xf32>
    %142 = vector.extract_strided_slice %5 {offsets = [1, 0], sizes = [1, 8], strides = [1, 1]} : vector<2x8xf32> to vector<1x8xf32>
    %cst_47 = arith.constant 0.000000e+00 : f32
    %143 = vector.broadcast %cst_47 : f32 to vector<8x32xf32>
    %144 = vector.extract_strided_slice %141 {offsets = [0, 0], sizes = [8, 8], strides = [1, 1]} : vector<8x96xf32> to vector<8x8xf32>
    %145 = vector.extract_strided_slice %141 {offsets = [0, 32], sizes = [8, 8], strides = [1, 1]} : vector<8x96xf32> to vector<8x8xf32>
    %146 = vector.extract_strided_slice %141 {offsets = [0, 64], sizes = [8, 8], strides = [1, 1]} : vector<8x96xf32> to vector<8x8xf32>
    %147 = tpu.transpose %145, [1, 0] : vector<8x8xf32> -> vector<8x8xf32>
    %cst_48 = arith.constant dense<0.000000e+00> : vector<8x8xf32>
    %148 = tpu.matmul %144, %147, %cst_48 {dimension_numbers = #tpu.dot_dimension_numbers<[1], [0], [0], [1], [0, 0, 1, 1], [], []>} : vector<8x8xf32>, vector<8x8xf32>, vector<8x8xf32> -> vector<8x8xf32>
    %cst_49 = arith.constant 0.353553385 : f32
    %149 = vector.broadcast %cst_49 : f32 to vector<8x8xf32>
    %150 = arith.mulf %148, %149 : vector<8x8xf32>
    %151 = vector.broadcast %142 : vector<1x8xf32> to vector<8x8xf32>
    %152 = arith.addf %150, %151 : vector<8x8xf32>
    %cst_50 = arith.constant dense<0xFF800000> : vector<8xf32>
    %153 = vector.multi_reduction <maximumf>, %152, %cst_50 [1] : vector<8x8xf32> to vector<8xf32>
    %154 = vector.shape_cast %153 : vector<8xf32> to vector<8x1xf32>
    %155 = vector.broadcast %154 : vector<8x1xf32> to vector<8x8xf32>
    %156 = arith.subf %152, %155 : vector<8x8xf32>
    %157 = math.exp %156 : vector<8x8xf32>
    %cst_51 = arith.constant dense<0.000000e+00> : vector<8xf32>
    %158 = vector.multi_reduction <add>, %157, %cst_51 [1] : vector<8x8xf32> to vector<8xf32>
    %159 = vector.shape_cast %158 : vector<8xf32> to vector<8x1xf32>
    %160 = tpu.reciprocal %159 : vector<8x1xf32> -> vector<8x1xf32>
    %161 = vector.broadcast %160 : vector<8x1xf32> to vector<8x8xf32>
    %162 = arith.mulf %157, %161 : vector<8x8xf32>
    %cst_52 = arith.constant dense<0.000000e+00> : vector<8x8xf32>
    %163 = tpu.matmul %162, %146, %cst_52 {dimension_numbers = #tpu.dot_dimension_numbers<[1], [0], [0], [1], [0, 0, 1, 1], [], []>} : vector<8x8xf32>, vector<8x8xf32>, vector<8x8xf32> -> vector<8x8xf32>
    %164 = vector.extract_strided_slice %44 {offsets = [0, 0], sizes = [8, 32], strides = [1, 1]} : vector<32x32xf32> to vector<8x32xf32>
    %cst_53 = arith.constant dense<0.000000e+00> : vector<8x32xf32>
    %165 = tpu.matmul %163, %164, %cst_53 {dimension_numbers = #tpu.dot_dimension_numbers<[1], [0], [0], [1], [0, 0, 1, 1], [], []>} : vector<8x8xf32>, vector<8x32xf32>, vector<8x32xf32> -> vector<8x32xf32>
    %166 = arith.addf %143, %165 : vector<8x32xf32>
    %167 = vector.extract_strided_slice %141 {offsets = [0, 8], sizes = [8, 8], strides = [1, 1]} : vector<8x96xf32> to vector<8x8xf32>
    %168 = vector.extract_strided_slice %141 {offsets = [0, 40], sizes = [8, 8], strides = [1, 1]} : vector<8x96xf32> to vector<8x8xf32>
    %169 = vector.extract_strided_slice %141 {offsets = [0, 72], sizes = [8, 8], strides = [1, 1]} : vector<8x96xf32> to vector<8x8xf32>
    %170 = tpu.transpose %168, [1, 0] : vector<8x8xf32> -> vector<8x8xf32>
    %cst_54 = arith.constant dense<0.000000e+00> : vector<8x8xf32>
    %171 = tpu.matmul %167, %170, %cst_54 {dimension_numbers = #tpu.dot_dimension_numbers<[1], [0], [0], [1], [0, 0, 1, 1], [], []>} : vector<8x8xf32>, vector<8x8xf32>, vector<8x8xf32> -> vector<8x8xf32>
    %cst_55 = arith.constant 0.353553385 : f32
    %172 = vector.broadcast %cst_55 : f32 to vector<8x8xf32>
    %173 = arith.mulf %171, %172 : vector<8x8xf32>
    %174 = vector.broadcast %142 : vector<1x8xf32> to vector<8x8xf32>
    %175 = arith.addf %173, %174 : vector<8x8xf32>
    %cst_56 = arith.constant dense<0xFF800000> : vector<8xf32>
    %176 = vector.multi_reduction <maximumf>, %175, %cst_56 [1] : vector<8x8xf32> to vector<8xf32>
    %177 = vector.shape_cast %176 : vector<8xf32> to vector<8x1xf32>
    %178 = vector.broadcast %177 : vector<8x1xf32> to vector<8x8xf32>
    %179 = arith.subf %175, %178 : vector<8x8xf32>
    %180 = math.exp %179 : vector<8x8xf32>
    %cst_57 = arith.constant dense<0.000000e+00> : vector<8xf32>
    %181 = vector.multi_reduction <add>, %180, %cst_57 [1] : vector<8x8xf32> to vector<8xf32>
    %182 = vector.shape_cast %181 : vector<8xf32> to vector<8x1xf32>
    %183 = tpu.reciprocal %182 : vector<8x1xf32> -> vector<8x1xf32>
    %184 = vector.broadcast %183 : vector<8x1xf32> to vector<8x8xf32>
    %185 = arith.mulf %180, %184 : vector<8x8xf32>
    %cst_58 = arith.constant dense<0.000000e+00> : vector<8x8xf32>
    %186 = tpu.matmul %185, %169, %cst_58 {dimension_numbers = #tpu.dot_dimension_numbers<[1], [0], [0], [1], [0, 0, 1, 1], [], []>} : vector<8x8xf32>, vector<8x8xf32>, vector<8x8xf32> -> vector<8x8xf32>
    %187 = vector.extract_strided_slice %44 {offsets = [8, 0], sizes = [8, 32], strides = [1, 1]} : vector<32x32xf32> to vector<8x32xf32>
    %cst_59 = arith.constant dense<0.000000e+00> : vector<8x32xf32>
    %188 = tpu.matmul %186, %187, %cst_59 {dimension_numbers = #tpu.dot_dimension_numbers<[1], [0], [0], [1], [0, 0, 1, 1], [], []>} : vector<8x8xf32>, vector<8x32xf32>, vector<8x32xf32> -> vector<8x32xf32>
    %189 = arith.addf %166, %188 : vector<8x32xf32>
    %190 = vector.extract_strided_slice %141 {offsets = [0, 16], sizes = [8, 8], strides = [1, 1]} : vector<8x96xf32> to vector<8x8xf32>
    %191 = vector.extract_strided_slice %141 {offsets = [0, 48], sizes = [8, 8], strides = [1, 1]} : vector<8x96xf32> to vector<8x8xf32>
    %192 = vector.extract_strided_slice %141 {offsets = [0, 80], sizes = [8, 8], strides = [1, 1]} : vector<8x96xf32> to vector<8x8xf32>
    %193 = tpu.transpose %191, [1, 0] : vector<8x8xf32> -> vector<8x8xf32>
    %cst_60 = arith.constant dense<0.000000e+00> : vector<8x8xf32>
    %194 = tpu.matmul %190, %193, %cst_60 {dimension_numbers = #tpu.dot_dimension_numbers<[1], [0], [0], [1], [0, 0, 1, 1], [], []>} : vector<8x8xf32>, vector<8x8xf32>, vector<8x8xf32> -> vector<8x8xf32>
    %cst_61 = arith.constant 0.353553385 : f32
    %195 = vector.broadcast %cst_61 : f32 to vector<8x8xf32>
    %196 = arith.mulf %194, %195 : vector<8x8xf32>
    %197 = vector.broadcast %142 : vector<1x8xf32> to vector<8x8xf32>
    %198 = arith.addf %196, %197 : vector<8x8xf32>
    %cst_62 = arith.constant dense<0xFF800000> : vector<8xf32>
    %199 = vector.multi_reduction <maximumf>, %198, %cst_62 [1] : vector<8x8xf32> to vector<8xf32>
    %200 = vector.shape_cast %199 : vector<8xf32> to vector<8x1xf32>
    %201 = vector.broadcast %200 : vector<8x1xf32> to vector<8x8xf32>
    %202 = arith.subf %198, %201 : vector<8x8xf32>
    %203 = math.exp %202 : vector<8x8xf32>
    %cst_63 = arith.constant dense<0.000000e+00> : vector<8xf32>
    %204 = vector.multi_reduction <add>, %203, %cst_63 [1] : vector<8x8xf32> to vector<8xf32>
    %205 = vector.shape_cast %204 : vector<8xf32> to vector<8x1xf32>
    %206 = tpu.reciprocal %205 : vector<8x1xf32> -> vector<8x1xf32>
    %207 = vector.broadcast %206 : vector<8x1xf32> to vector<8x8xf32>
    %208 = arith.mulf %203, %207 : vector<8x8xf32>
    %cst_64 = arith.constant dense<0.000000e+00> : vector<8x8xf32>
    %209 = tpu.matmul %208, %192, %cst_64 {dimension_numbers = #tpu.dot_dimension_numbers<[1], [0], [0], [1], [0, 0, 1, 1], [], []>} : vector<8x8xf32>, vector<8x8xf32>, vector<8x8xf32> -> vector<8x8xf32>
    %210 = vector.extract_strided_slice %44 {offsets = [16, 0], sizes = [8, 32], strides = [1, 1]} : vector<32x32xf32> to vector<8x32xf32>
    %cst_65 = arith.constant dense<0.000000e+00> : vector<8x32xf32>
    %211 = tpu.matmul %209, %210, %cst_65 {dimension_numbers = #tpu.dot_dimension_numbers<[1], [0], [0], [1], [0, 0, 1, 1], [], []>} : vector<8x8xf32>, vector<8x32xf32>, vector<8x32xf32> -> vector<8x32xf32>
    %212 = arith.addf %189, %211 : vector<8x32xf32>
    %213 = vector.extract_strided_slice %141 {offsets = [0, 24], sizes = [8, 8], strides = [1, 1]} : vector<8x96xf32> to vector<8x8xf32>
    %214 = vector.extract_strided_slice %141 {offsets = [0, 56], sizes = [8, 8], strides = [1, 1]} : vector<8x96xf32> to vector<8x8xf32>
    %215 = vector.extract_strided_slice %141 {offsets = [0, 88], sizes = [8, 8], strides = [1, 1]} : vector<8x96xf32> to vector<8x8xf32>
    %216 = tpu.transpose %214, [1, 0] : vector<8x8xf32> -> vector<8x8xf32>
    %cst_66 = arith.constant dense<0.000000e+00> : vector<8x8xf32>
    %217 = tpu.matmul %213, %216, %cst_66 {dimension_numbers = #tpu.dot_dimension_numbers<[1], [0], [0], [1], [0, 0, 1, 1], [], []>} : vector<8x8xf32>, vector<8x8xf32>, vector<8x8xf32> -> vector<8x8xf32>
    %cst_67 = arith.constant 0.353553385 : f32
    %218 = vector.broadcast %cst_67 : f32 to vector<8x8xf32>
    %219 = arith.mulf %217, %218 : vector<8x8xf32>
    %220 = vector.broadcast %142 : vector<1x8xf32> to vector<8x8xf32>
    %221 = arith.addf %219, %220 : vector<8x8xf32>
    %cst_68 = arith.constant dense<0xFF800000> : vector<8xf32>
    %222 = vector.multi_reduction <maximumf>, %221, %cst_68 [1] : vector<8x8xf32> to vector<8xf32>
    %223 = vector.shape_cast %222 : vector<8xf32> to vector<8x1xf32>
    %224 = vector.broadcast %223 : vector<8x1xf32> to vector<8x8xf32>
    %225 = arith.subf %221, %224 : vector<8x8xf32>
    %226 = math.exp %225 : vector<8x8xf32>
    %cst_69 = arith.constant dense<0.000000e+00> : vector<8xf32>
    %227 = vector.multi_reduction <add>, %226, %cst_69 [1] : vector<8x8xf32> to vector<8xf32>
    %228 = vector.shape_cast %227 : vector<8xf32> to vector<8x1xf32>
    %229 = tpu.reciprocal %228 : vector<8x1xf32> -> vector<8x1xf32>
    %230 = vector.broadcast %229 : vector<8x1xf32> to vector<8x8xf32>
    %231 = arith.mulf %226, %230 : vector<8x8xf32>
    %cst_70 = arith.constant dense<0.000000e+00> : vector<8x8xf32>
    %232 = tpu.matmul %231, %215, %cst_70 {dimension_numbers = #tpu.dot_dimension_numbers<[1], [0], [0], [1], [0, 0, 1, 1], [], []>} : vector<8x8xf32>, vector<8x8xf32>, vector<8x8xf32> -> vector<8x8xf32>
    %233 = vector.extract_strided_slice %44 {offsets = [24, 0], sizes = [8, 32], strides = [1, 1]} : vector<32x32xf32> to vector<8x32xf32>
    %cst_71 = arith.constant dense<0.000000e+00> : vector<8x32xf32>
    %234 = tpu.matmul %232, %233, %cst_71 {dimension_numbers = #tpu.dot_dimension_numbers<[1], [0], [0], [1], [0, 0, 1, 1], [], []>} : vector<8x8xf32>, vector<8x32xf32>, vector<8x32xf32> -> vector<8x32xf32>
    %235 = arith.addf %212, %234 : vector<8x32xf32>
    %236 = tpu.concatenate %140, %235 in 0 : vector<8x32xf32>, vector<8x32xf32> -> vector<16x32xf32>
    %237 = vector.broadcast %45 : vector<1x32xf32> to vector<16x32xf32>
    %238 = arith.addf %236, %237 : vector<16x32xf32>
    %239 = arith.addf %10, %238 : vector<16x32xf32>
    %c1 = arith.constant 1 : index
    %c0_72 = arith.constant 0 : index
    %240 = vector.load %arg5[%c1, %c0_72] : memref<5x64xf32, #tpu.memory_space<vmem>>, vector<1x64xf32>
    %241 = vector.extract_strided_slice %240 {offsets = [0, 0], sizes = [1, 32], strides = [1, 1]} : vector<1x64xf32> to vector<1x32xf32>
    %242 = vector.extract_strided_slice %240 {offsets = [0, 32], sizes = [1, 32], strides = [1, 1]} : vector<1x64xf32> to vector<1x32xf32>
    %cst_73 = arith.constant dense<0.000000e+00> : vector<16xf32>
    %243 = vector.multi_reduction <add>, %239, %cst_73 [1] : vector<16x32xf32> to vector<16xf32>
    %244 = vector.shape_cast %243 : vector<16xf32> to vector<16x1xf32>
    %cst_74 = arith.constant 3.200000e+01 : f32
    %245 = vector.broadcast %cst_74 : f32 to vector<16x1xf32>
    %246 = arith.divf %244, %245 : vector<16x1xf32>
    %247 = vector.broadcast %246 : vector<16x1xf32> to vector<16x32xf32>
    %248 = arith.subf %239, %247 : vector<16x32xf32>
    %249 = arith.mulf %248, %248 : vector<16x32xf32>
    %cst_75 = arith.constant dense<0.000000e+00> : vector<16xf32>
    %250 = vector.multi_reduction <add>, %249, %cst_75 [1] : vector<16x32xf32> to vector<16xf32>
    %251 = vector.shape_cast %250 : vector<16xf32> to vector<16x1xf32>
    %cst_76 = arith.constant 3.200000e+01 : f32
    %252 = vector.broadcast %cst_76 : f32 to vector<16x1xf32>
    %253 = arith.divf %251, %252 : vector<16x1xf32>
    %254 = vector.broadcast %246 : vector<16x1xf32> to vector<16x32xf32>
    %255 = arith.subf %239, %254 : vector<16x32xf32>
    %256 = vector.broadcast %241 : vector<1x32xf32> to vector<16x32xf32>
    %257 = arith.mulf %256, %255 : vector<16x32xf32>
    %cst_77 = arith.constant 9.99999997E-7 : f32
    %258 = vector.broadcast %cst_77 : f32 to vector<16x1xf32>
    %259 = arith.addf %253, %258 : vector<16x1xf32>
    %260 = math.rsqrt %259 : vector<16x1xf32>
    %261 = vector.broadcast %260 : vector<16x1xf32> to vector<16x32xf32>
    %262 = arith.mulf %257, %261 : vector<16x32xf32>
    %263 = vector.broadcast %242 : vector<1x32xf32> to vector<16x32xf32>
    %264 = arith.addf %262, %263 : vector<16x32xf32>
    %c0_78 = arith.constant 0 : index
    %c0_79 = arith.constant 0 : index
    %265 = vector.load %arg10[%c0_78, %c0_79] : memref<2x96xf32, #tpu.memory_space<vmem>>, vector<1x96xf32>
    %c0_80 = arith.constant 0 : index
    %c0_81 = arith.constant 0 : index
    %c0_82 = arith.constant 0 : index
    %266 = vector.load %arg8[%c0_80, %c0_81, %c0_82] : memref<2x32x64xf32, #tpu.memory_space<vmem>>, vector<1x32x64xf32>
    %267 = vector.shape_cast %266 : vector<1x32x64xf32> to vector<32x64xf32>
    %cst_83 = arith.constant dense<0.000000e+00> : vector<16x64xf32>
    %268 = tpu.matmul %264, %267, %cst_83 {dimension_numbers = #tpu.dot_dimension_numbers<[1], [0], [0], [1], [0, 0, 1, 1], [], []>} : vector<16x32xf32>, vector<32x64xf32>, vector<16x64xf32> -> vector<16x64xf32>
    %269 = vector.extract_strided_slice %265 {offsets = [0, 0], sizes = [1, 64], strides = [1, 1]} : vector<1x96xf32> to vector<1x64xf32>
    %270 = vector.broadcast %269 : vector<1x64xf32> to vector<16x64xf32>
    %271 = arith.addf %268, %270 : vector<16x64xf32>
    %cst_84 = arith.constant 0.000000e+00 : f32
    %272 = vector.broadcast %cst_84 : f32 to vector<16x64xf32>
    %273 = arith.maximumf %271, %272 : vector<16x64xf32>
    %c0_85 = arith.constant 0 : index
    %c0_86 = arith.constant 0 : index
    %c0_87 = arith.constant 0 : index
    %274 = vector.load %arg9[%c0_85, %c0_86, %c0_87] : memref<2x64x32xf32, #tpu.memory_space<vmem>>, vector<1x64x32xf32>
    %275 = vector.shape_cast %274 : vector<1x64x32xf32> to vector<64x32xf32>
    %cst_88 = arith.constant dense<0.000000e+00> : vector<16x32xf32>
    %276 = tpu.matmul %273, %275, %cst_88 {dimension_numbers = #tpu.dot_dimension_numbers<[1], [0], [0], [1], [0, 0, 1, 1], [], []>} : vector<16x64xf32>, vector<64x32xf32>, vector<16x32xf32> -> vector<16x32xf32>
    %277 = arith.addf %239, %276 : vector<16x32xf32>
    %278 = vector.extract_strided_slice %265 {offsets = [0, 64], sizes = [1, 32], strides = [1, 1]} : vector<1x96xf32> to vector<1x32xf32>
    %279 = vector.broadcast %278 : vector<1x32xf32> to vector<16x32xf32>
    %280 = arith.addf %277, %279 : vector<16x32xf32>
    %c2 = arith.constant 2 : index
    %c0_89 = arith.constant 0 : index
    %281 = vector.load %arg5[%c2, %c0_89] : memref<5x64xf32, #tpu.memory_space<vmem>>, vector<1x64xf32>
    %282 = vector.extract_strided_slice %281 {offsets = [0, 0], sizes = [1, 32], strides = [1, 1]} : vector<1x64xf32> to vector<1x32xf32>
    %283 = vector.extract_strided_slice %281 {offsets = [0, 32], sizes = [1, 32], strides = [1, 1]} : vector<1x64xf32> to vector<1x32xf32>
    %cst_90 = arith.constant dense<0.000000e+00> : vector<16xf32>
    %284 = vector.multi_reduction <add>, %280, %cst_90 [1] : vector<16x32xf32> to vector<16xf32>
    %285 = vector.shape_cast %284 : vector<16xf32> to vector<16x1xf32>
    %cst_91 = arith.constant 3.200000e+01 : f32
    %286 = vector.broadcast %cst_91 : f32 to vector<16x1xf32>
    %287 = arith.divf %285, %286 : vector<16x1xf32>
    %288 = vector.broadcast %287 : vector<16x1xf32> to vector<16x32xf32>
    %289 = arith.subf %280, %288 : vector<16x32xf32>
    %290 = arith.mulf %289, %289 : vector<16x32xf32>
    %cst_92 = arith.constant dense<0.000000e+00> : vector<16xf32>
    %291 = vector.multi_reduction <add>, %290, %cst_92 [1] : vector<16x32xf32> to vector<16xf32>
    %292 = vector.shape_cast %291 : vector<16xf32> to vector<16x1xf32>
    %cst_93 = arith.constant 3.200000e+01 : f32
    %293 = vector.broadcast %cst_93 : f32 to vector<16x1xf32>
    %294 = arith.divf %292, %293 : vector<16x1xf32>
    %295 = vector.broadcast %287 : vector<16x1xf32> to vector<16x32xf32>
    %296 = arith.subf %280, %295 : vector<16x32xf32>
    %297 = vector.broadcast %282 : vector<1x32xf32> to vector<16x32xf32>
    %298 = arith.mulf %297, %296 : vector<16x32xf32>
    %cst_94 = arith.constant 9.99999997E-7 : f32
    %299 = vector.broadcast %cst_94 : f32 to vector<16x1xf32>
    %300 = arith.addf %294, %299 : vector<16x1xf32>
    %301 = math.rsqrt %300 : vector<16x1xf32>
    %302 = vector.broadcast %301 : vector<16x1xf32> to vector<16x32xf32>
    %303 = arith.mulf %298, %302 : vector<16x32xf32>
    %304 = vector.broadcast %283 : vector<1x32xf32> to vector<16x32xf32>
    %305 = arith.addf %303, %304 : vector<16x32xf32>
    %c1_95 = arith.constant 1 : index
    %c0_96 = arith.constant 0 : index
    %c0_97 = arith.constant 0 : index
    %306 = vector.load %arg6[%c1_95, %c0_96, %c0_97] : memref<2x32x128xf32, #tpu.memory_space<vmem>>, vector<1x32x128xf32>
    %307 = vector.shape_cast %306 : vector<1x32x128xf32> to vector<32x128xf32>
    %c1_98 = arith.constant 1 : index
    %c0_99 = arith.constant 0 : index
    %308 = vector.load %arg7[%c1_98, %c0_99] : memref<2x128xf32, #tpu.memory_space<vmem>>, vector<1x128xf32>
    %309 = vector.extract_strided_slice %307 {offsets = [0, 0], sizes = [32, 96], strides = [1, 1]} : vector<32x128xf32> to vector<32x96xf32>
    %cst_100 = arith.constant dense<0.000000e+00> : vector<16x96xf32>
    %310 = tpu.matmul %305, %309, %cst_100 {dimension_numbers = #tpu.dot_dimension_numbers<[1], [0], [0], [1], [0, 0, 1, 1], [], []>} : vector<16x32xf32>, vector<32x96xf32>, vector<16x96xf32> -> vector<16x96xf32>
    %311 = vector.extract_strided_slice %308 {offsets = [0, 0], sizes = [1, 96], strides = [1, 1]} : vector<1x128xf32> to vector<1x96xf32>
    %312 = vector.broadcast %311 : vector<1x96xf32> to vector<16x96xf32>
    %313 = arith.addf %310, %312 : vector<16x96xf32>
    %314 = vector.extract_strided_slice %307 {offsets = [0, 96], sizes = [32, 32], strides = [1, 1]} : vector<32x128xf32> to vector<32x32xf32>
    %315 = vector.extract_strided_slice %308 {offsets = [0, 96], sizes = [1, 32], strides = [1, 1]} : vector<1x128xf32> to vector<1x32xf32>
    %316 = vector.extract_strided_slice %313 {offsets = [0, 0], sizes = [8, 96], strides = [1, 1]} : vector<16x96xf32> to vector<8x96xf32>
    %317 = vector.extract_strided_slice %5 {offsets = [0, 0], sizes = [1, 8], strides = [1, 1]} : vector<2x8xf32> to vector<1x8xf32>
    %cst_101 = arith.constant 0.000000e+00 : f32
    %318 = vector.broadcast %cst_101 : f32 to vector<8x32xf32>
    %319 = vector.extract_strided_slice %316 {offsets = [0, 0], sizes = [8, 8], strides = [1, 1]} : vector<8x96xf32> to vector<8x8xf32>
    %320 = vector.extract_strided_slice %316 {offsets = [0, 32], sizes = [8, 8], strides = [1, 1]} : vector<8x96xf32> to vector<8x8xf32>
    %321 = vector.extract_strided_slice %316 {offsets = [0, 64], sizes = [8, 8], strides = [1, 1]} : vector<8x96xf32> to vector<8x8xf32>
    %322 = tpu.transpose %320, [1, 0] : vector<8x8xf32> -> vector<8x8xf32>
    %cst_102 = arith.constant dense<0.000000e+00> : vector<8x8xf32>
    %323 = tpu.matmul %319, %322, %cst_102 {dimension_numbers = #tpu.dot_dimension_numbers<[1], [0], [0], [1], [0, 0, 1, 1], [], []>} : vector<8x8xf32>, vector<8x8xf32>, vector<8x8xf32> -> vector<8x8xf32>
    %cst_103 = arith.constant 0.353553385 : f32
    %324 = vector.broadcast %cst_103 : f32 to vector<8x8xf32>
    %325 = arith.mulf %323, %324 : vector<8x8xf32>
    %326 = vector.broadcast %317 : vector<1x8xf32> to vector<8x8xf32>
    %327 = arith.addf %325, %326 : vector<8x8xf32>
    %cst_104 = arith.constant dense<0xFF800000> : vector<8xf32>
    %328 = vector.multi_reduction <maximumf>, %327, %cst_104 [1] : vector<8x8xf32> to vector<8xf32>
    %329 = vector.shape_cast %328 : vector<8xf32> to vector<8x1xf32>
    %330 = vector.broadcast %329 : vector<8x1xf32> to vector<8x8xf32>
    %331 = arith.subf %327, %330 : vector<8x8xf32>
    %332 = math.exp %331 : vector<8x8xf32>
    %cst_105 = arith.constant dense<0.000000e+00> : vector<8xf32>
    %333 = vector.multi_reduction <add>, %332, %cst_105 [1] : vector<8x8xf32> to vector<8xf32>
    %334 = vector.shape_cast %333 : vector<8xf32> to vector<8x1xf32>
    %335 = tpu.reciprocal %334 : vector<8x1xf32> -> vector<8x1xf32>
    %336 = vector.broadcast %335 : vector<8x1xf32> to vector<8x8xf32>
    %337 = arith.mulf %332, %336 : vector<8x8xf32>
    %cst_106 = arith.constant dense<0.000000e+00> : vector<8x8xf32>
    %338 = tpu.matmul %337, %321, %cst_106 {dimension_numbers = #tpu.dot_dimension_numbers<[1], [0], [0], [1], [0, 0, 1, 1], [], []>} : vector<8x8xf32>, vector<8x8xf32>, vector<8x8xf32> -> vector<8x8xf32>
    %339 = vector.extract_strided_slice %314 {offsets = [0, 0], sizes = [8, 32], strides = [1, 1]} : vector<32x32xf32> to vector<8x32xf32>
    %cst_107 = arith.constant dense<0.000000e+00> : vector<8x32xf32>
    %340 = tpu.matmul %338, %339, %cst_107 {dimension_numbers = #tpu.dot_dimension_numbers<[1], [0], [0], [1], [0, 0, 1, 1], [], []>} : vector<8x8xf32>, vector<8x32xf32>, vector<8x32xf32> -> vector<8x32xf32>
    %341 = arith.addf %318, %340 : vector<8x32xf32>
    %342 = vector.extract_strided_slice %316 {offsets = [0, 8], sizes = [8, 8], strides = [1, 1]} : vector<8x96xf32> to vector<8x8xf32>
    %343 = vector.extract_strided_slice %316 {offsets = [0, 40], sizes = [8, 8], strides = [1, 1]} : vector<8x96xf32> to vector<8x8xf32>
    %344 = vector.extract_strided_slice %316 {offsets = [0, 72], sizes = [8, 8], strides = [1, 1]} : vector<8x96xf32> to vector<8x8xf32>
    %345 = tpu.transpose %343, [1, 0] : vector<8x8xf32> -> vector<8x8xf32>
    %cst_108 = arith.constant dense<0.000000e+00> : vector<8x8xf32>
    %346 = tpu.matmul %342, %345, %cst_108 {dimension_numbers = #tpu.dot_dimension_numbers<[1], [0], [0], [1], [0, 0, 1, 1], [], []>} : vector<8x8xf32>, vector<8x8xf32>, vector<8x8xf32> -> vector<8x8xf32>
    %cst_109 = arith.constant 0.353553385 : f32
    %347 = vector.broadcast %cst_109 : f32 to vector<8x8xf32>
    %348 = arith.mulf %346, %347 : vector<8x8xf32>
    %349 = vector.broadcast %317 : vector<1x8xf32> to vector<8x8xf32>
    %350 = arith.addf %348, %349 : vector<8x8xf32>
    %cst_110 = arith.constant dense<0xFF800000> : vector<8xf32>
    %351 = vector.multi_reduction <maximumf>, %350, %cst_110 [1] : vector<8x8xf32> to vector<8xf32>
    %352 = vector.shape_cast %351 : vector<8xf32> to vector<8x1xf32>
    %353 = vector.broadcast %352 : vector<8x1xf32> to vector<8x8xf32>
    %354 = arith.subf %350, %353 : vector<8x8xf32>
    %355 = math.exp %354 : vector<8x8xf32>
    %cst_111 = arith.constant dense<0.000000e+00> : vector<8xf32>
    %356 = vector.multi_reduction <add>, %355, %cst_111 [1] : vector<8x8xf32> to vector<8xf32>
    %357 = vector.shape_cast %356 : vector<8xf32> to vector<8x1xf32>
    %358 = tpu.reciprocal %357 : vector<8x1xf32> -> vector<8x1xf32>
    %359 = vector.broadcast %358 : vector<8x1xf32> to vector<8x8xf32>
    %360 = arith.mulf %355, %359 : vector<8x8xf32>
    %cst_112 = arith.constant dense<0.000000e+00> : vector<8x8xf32>
    %361 = tpu.matmul %360, %344, %cst_112 {dimension_numbers = #tpu.dot_dimension_numbers<[1], [0], [0], [1], [0, 0, 1, 1], [], []>} : vector<8x8xf32>, vector<8x8xf32>, vector<8x8xf32> -> vector<8x8xf32>
    %362 = vector.extract_strided_slice %314 {offsets = [8, 0], sizes = [8, 32], strides = [1, 1]} : vector<32x32xf32> to vector<8x32xf32>
    %cst_113 = arith.constant dense<0.000000e+00> : vector<8x32xf32>
    %363 = tpu.matmul %361, %362, %cst_113 {dimension_numbers = #tpu.dot_dimension_numbers<[1], [0], [0], [1], [0, 0, 1, 1], [], []>} : vector<8x8xf32>, vector<8x32xf32>, vector<8x32xf32> -> vector<8x32xf32>
    %364 = arith.addf %341, %363 : vector<8x32xf32>
    %365 = vector.extract_strided_slice %316 {offsets = [0, 16], sizes = [8, 8], strides = [1, 1]} : vector<8x96xf32> to vector<8x8xf32>
    %366 = vector.extract_strided_slice %316 {offsets = [0, 48], sizes = [8, 8], strides = [1, 1]} : vector<8x96xf32> to vector<8x8xf32>
    %367 = vector.extract_strided_slice %316 {offsets = [0, 80], sizes = [8, 8], strides = [1, 1]} : vector<8x96xf32> to vector<8x8xf32>
    %368 = tpu.transpose %366, [1, 0] : vector<8x8xf32> -> vector<8x8xf32>
    %cst_114 = arith.constant dense<0.000000e+00> : vector<8x8xf32>
    %369 = tpu.matmul %365, %368, %cst_114 {dimension_numbers = #tpu.dot_dimension_numbers<[1], [0], [0], [1], [0, 0, 1, 1], [], []>} : vector<8x8xf32>, vector<8x8xf32>, vector<8x8xf32> -> vector<8x8xf32>
    %cst_115 = arith.constant 0.353553385 : f32
    %370 = vector.broadcast %cst_115 : f32 to vector<8x8xf32>
    %371 = arith.mulf %369, %370 : vector<8x8xf32>
    %372 = vector.broadcast %317 : vector<1x8xf32> to vector<8x8xf32>
    %373 = arith.addf %371, %372 : vector<8x8xf32>
    %cst_116 = arith.constant dense<0xFF800000> : vector<8xf32>
    %374 = vector.multi_reduction <maximumf>, %373, %cst_116 [1] : vector<8x8xf32> to vector<8xf32>
    %375 = vector.shape_cast %374 : vector<8xf32> to vector<8x1xf32>
    %376 = vector.broadcast %375 : vector<8x1xf32> to vector<8x8xf32>
    %377 = arith.subf %373, %376 : vector<8x8xf32>
    %378 = math.exp %377 : vector<8x8xf32>
    %cst_117 = arith.constant dense<0.000000e+00> : vector<8xf32>
    %379 = vector.multi_reduction <add>, %378, %cst_117 [1] : vector<8x8xf32> to vector<8xf32>
    %380 = vector.shape_cast %379 : vector<8xf32> to vector<8x1xf32>
    %381 = tpu.reciprocal %380 : vector<8x1xf32> -> vector<8x1xf32>
    %382 = vector.broadcast %381 : vector<8x1xf32> to vector<8x8xf32>
    %383 = arith.mulf %378, %382 : vector<8x8xf32>
    %cst_118 = arith.constant dense<0.000000e+00> : vector<8x8xf32>
    %384 = tpu.matmul %383, %367, %cst_118 {dimension_numbers = #tpu.dot_dimension_numbers<[1], [0], [0], [1], [0, 0, 1, 1], [], []>} : vector<8x8xf32>, vector<8x8xf32>, vector<8x8xf32> -> vector<8x8xf32>
    %385 = vector.extract_strided_slice %314 {offsets = [16, 0], sizes = [8, 32], strides = [1, 1]} : vector<32x32xf32> to vector<8x32xf32>
    %cst_119 = arith.constant dense<0.000000e+00> : vector<8x32xf32>
    %386 = tpu.matmul %384, %385, %cst_119 {dimension_numbers = #tpu.dot_dimension_numbers<[1], [0], [0], [1], [0, 0, 1, 1], [], []>} : vector<8x8xf32>, vector<8x32xf32>, vector<8x32xf32> -> vector<8x32xf32>
    %387 = arith.addf %364, %386 : vector<8x32xf32>
    %388 = vector.extract_strided_slice %316 {offsets = [0, 24], sizes = [8, 8], strides = [1, 1]} : vector<8x96xf32> to vector<8x8xf32>
    %389 = vector.extract_strided_slice %316 {offsets = [0, 56], sizes = [8, 8], strides = [1, 1]} : vector<8x96xf32> to vector<8x8xf32>
    %390 = vector.extract_strided_slice %316 {offsets = [0, 88], sizes = [8, 8], strides = [1, 1]} : vector<8x96xf32> to vector<8x8xf32>
    %391 = tpu.transpose %389, [1, 0] : vector<8x8xf32> -> vector<8x8xf32>
    %cst_120 = arith.constant dense<0.000000e+00> : vector<8x8xf32>
    %392 = tpu.matmul %388, %391, %cst_120 {dimension_numbers = #tpu.dot_dimension_numbers<[1], [0], [0], [1], [0, 0, 1, 1], [], []>} : vector<8x8xf32>, vector<8x8xf32>, vector<8x8xf32> -> vector<8x8xf32>
    %cst_121 = arith.constant 0.353553385 : f32
    %393 = vector.broadcast %cst_121 : f32 to vector<8x8xf32>
    %394 = arith.mulf %392, %393 : vector<8x8xf32>
    %395 = vector.broadcast %317 : vector<1x8xf32> to vector<8x8xf32>
    %396 = arith.addf %394, %395 : vector<8x8xf32>
    %cst_122 = arith.constant dense<0xFF800000> : vector<8xf32>
    %397 = vector.multi_reduction <maximumf>, %396, %cst_122 [1] : vector<8x8xf32> to vector<8xf32>
    %398 = vector.shape_cast %397 : vector<8xf32> to vector<8x1xf32>
    %399 = vector.broadcast %398 : vector<8x1xf32> to vector<8x8xf32>
    %400 = arith.subf %396, %399 : vector<8x8xf32>
    %401 = math.exp %400 : vector<8x8xf32>
    %cst_123 = arith.constant dense<0.000000e+00> : vector<8xf32>
    %402 = vector.multi_reduction <add>, %401, %cst_123 [1] : vector<8x8xf32> to vector<8xf32>
    %403 = vector.shape_cast %402 : vector<8xf32> to vector<8x1xf32>
    %404 = tpu.reciprocal %403 : vector<8x1xf32> -> vector<8x1xf32>
    %405 = vector.broadcast %404 : vector<8x1xf32> to vector<8x8xf32>
    %406 = arith.mulf %401, %405 : vector<8x8xf32>
    %cst_124 = arith.constant dense<0.000000e+00> : vector<8x8xf32>
    %407 = tpu.matmul %406, %390, %cst_124 {dimension_numbers = #tpu.dot_dimension_numbers<[1], [0], [0], [1], [0, 0, 1, 1], [], []>} : vector<8x8xf32>, vector<8x8xf32>, vector<8x8xf32> -> vector<8x8xf32>
    %408 = vector.extract_strided_slice %314 {offsets = [24, 0], sizes = [8, 32], strides = [1, 1]} : vector<32x32xf32> to vector<8x32xf32>
    %cst_125 = arith.constant dense<0.000000e+00> : vector<8x32xf32>
    %409 = tpu.matmul %407, %408, %cst_125 {dimension_numbers = #tpu.dot_dimension_numbers<[1], [0], [0], [1], [0, 0, 1, 1], [], []>} : vector<8x8xf32>, vector<8x32xf32>, vector<8x32xf32> -> vector<8x32xf32>
    %410 = arith.addf %387, %409 : vector<8x32xf32>
    %411 = vector.extract_strided_slice %313 {offsets = [8, 0], sizes = [8, 96], strides = [1, 1]} : vector<16x96xf32> to vector<8x96xf32>
    %412 = vector.extract_strided_slice %5 {offsets = [1, 0], sizes = [1, 8], strides = [1, 1]} : vector<2x8xf32> to vector<1x8xf32>
    %cst_126 = arith.constant 0.000000e+00 : f32
    %413 = vector.broadcast %cst_126 : f32 to vector<8x32xf32>
    %414 = vector.extract_strided_slice %411 {offsets = [0, 0], sizes = [8, 8], strides = [1, 1]} : vector<8x96xf32> to vector<8x8xf32>
    %415 = vector.extract_strided_slice %411 {offsets = [0, 32], sizes = [8, 8], strides = [1, 1]} : vector<8x96xf32> to vector<8x8xf32>
    %416 = vector.extract_strided_slice %411 {offsets = [0, 64], sizes = [8, 8], strides = [1, 1]} : vector<8x96xf32> to vector<8x8xf32>
    %417 = tpu.transpose %415, [1, 0] : vector<8x8xf32> -> vector<8x8xf32>
    %cst_127 = arith.constant dense<0.000000e+00> : vector<8x8xf32>
    %418 = tpu.matmul %414, %417, %cst_127 {dimension_numbers = #tpu.dot_dimension_numbers<[1], [0], [0], [1], [0, 0, 1, 1], [], []>} : vector<8x8xf32>, vector<8x8xf32>, vector<8x8xf32> -> vector<8x8xf32>
    %cst_128 = arith.constant 0.353553385 : f32
    %419 = vector.broadcast %cst_128 : f32 to vector<8x8xf32>
    %420 = arith.mulf %418, %419 : vector<8x8xf32>
    %421 = vector.broadcast %412 : vector<1x8xf32> to vector<8x8xf32>
    %422 = arith.addf %420, %421 : vector<8x8xf32>
    %cst_129 = arith.constant dense<0xFF800000> : vector<8xf32>
    %423 = vector.multi_reduction <maximumf>, %422, %cst_129 [1] : vector<8x8xf32> to vector<8xf32>
    %424 = vector.shape_cast %423 : vector<8xf32> to vector<8x1xf32>
    %425 = vector.broadcast %424 : vector<8x1xf32> to vector<8x8xf32>
    %426 = arith.subf %422, %425 : vector<8x8xf32>
    %427 = math.exp %426 : vector<8x8xf32>
    %cst_130 = arith.constant dense<0.000000e+00> : vector<8xf32>
    %428 = vector.multi_reduction <add>, %427, %cst_130 [1] : vector<8x8xf32> to vector<8xf32>
    %429 = vector.shape_cast %428 : vector<8xf32> to vector<8x1xf32>
    %430 = tpu.reciprocal %429 : vector<8x1xf32> -> vector<8x1xf32>
    %431 = vector.broadcast %430 : vector<8x1xf32> to vector<8x8xf32>
    %432 = arith.mulf %427, %431 : vector<8x8xf32>
    %cst_131 = arith.constant dense<0.000000e+00> : vector<8x8xf32>
    %433 = tpu.matmul %432, %416, %cst_131 {dimension_numbers = #tpu.dot_dimension_numbers<[1], [0], [0], [1], [0, 0, 1, 1], [], []>} : vector<8x8xf32>, vector<8x8xf32>, vector<8x8xf32> -> vector<8x8xf32>
    %434 = vector.extract_strided_slice %314 {offsets = [0, 0], sizes = [8, 32], strides = [1, 1]} : vector<32x32xf32> to vector<8x32xf32>
    %cst_132 = arith.constant dense<0.000000e+00> : vector<8x32xf32>
    %435 = tpu.matmul %433, %434, %cst_132 {dimension_numbers = #tpu.dot_dimension_numbers<[1], [0], [0], [1], [0, 0, 1, 1], [], []>} : vector<8x8xf32>, vector<8x32xf32>, vector<8x32xf32> -> vector<8x32xf32>
    %436 = arith.addf %413, %435 : vector<8x32xf32>
    %437 = vector.extract_strided_slice %411 {offsets = [0, 8], sizes = [8, 8], strides = [1, 1]} : vector<8x96xf32> to vector<8x8xf32>
    %438 = vector.extract_strided_slice %411 {offsets = [0, 40], sizes = [8, 8], strides = [1, 1]} : vector<8x96xf32> to vector<8x8xf32>
    %439 = vector.extract_strided_slice %411 {offsets = [0, 72], sizes = [8, 8], strides = [1, 1]} : vector<8x96xf32> to vector<8x8xf32>
    %440 = tpu.transpose %438, [1, 0] : vector<8x8xf32> -> vector<8x8xf32>
    %cst_133 = arith.constant dense<0.000000e+00> : vector<8x8xf32>
    %441 = tpu.matmul %437, %440, %cst_133 {dimension_numbers = #tpu.dot_dimension_numbers<[1], [0], [0], [1], [0, 0, 1, 1], [], []>} : vector<8x8xf32>, vector<8x8xf32>, vector<8x8xf32> -> vector<8x8xf32>
    %cst_134 = arith.constant 0.353553385 : f32
    %442 = vector.broadcast %cst_134 : f32 to vector<8x8xf32>
    %443 = arith.mulf %441, %442 : vector<8x8xf32>
    %444 = vector.broadcast %412 : vector<1x8xf32> to vector<8x8xf32>
    %445 = arith.addf %443, %444 : vector<8x8xf32>
    %cst_135 = arith.constant dense<0xFF800000> : vector<8xf32>
    %446 = vector.multi_reduction <maximumf>, %445, %cst_135 [1] : vector<8x8xf32> to vector<8xf32>
    %447 = vector.shape_cast %446 : vector<8xf32> to vector<8x1xf32>
    %448 = vector.broadcast %447 : vector<8x1xf32> to vector<8x8xf32>
    %449 = arith.subf %445, %448 : vector<8x8xf32>
    %450 = math.exp %449 : vector<8x8xf32>
    %cst_136 = arith.constant dense<0.000000e+00> : vector<8xf32>
    %451 = vector.multi_reduction <add>, %450, %cst_136 [1] : vector<8x8xf32> to vector<8xf32>
    %452 = vector.shape_cast %451 : vector<8xf32> to vector<8x1xf32>
    %453 = tpu.reciprocal %452 : vector<8x1xf32> -> vector<8x1xf32>
    %454 = vector.broadcast %453 : vector<8x1xf32> to vector<8x8xf32>
    %455 = arith.mulf %450, %454 : vector<8x8xf32>
    %cst_137 = arith.constant dense<0.000000e+00> : vector<8x8xf32>
    %456 = tpu.matmul %455, %439, %cst_137 {dimension_numbers = #tpu.dot_dimension_numbers<[1], [0], [0], [1], [0, 0, 1, 1], [], []>} : vector<8x8xf32>, vector<8x8xf32>, vector<8x8xf32> -> vector<8x8xf32>
    %457 = vector.extract_strided_slice %314 {offsets = [8, 0], sizes = [8, 32], strides = [1, 1]} : vector<32x32xf32> to vector<8x32xf32>
    %cst_138 = arith.constant dense<0.000000e+00> : vector<8x32xf32>
    %458 = tpu.matmul %456, %457, %cst_138 {dimension_numbers = #tpu.dot_dimension_numbers<[1], [0], [0], [1], [0, 0, 1, 1], [], []>} : vector<8x8xf32>, vector<8x32xf32>, vector<8x32xf32> -> vector<8x32xf32>
    %459 = arith.addf %436, %458 : vector<8x32xf32>
    %460 = vector.extract_strided_slice %411 {offsets = [0, 16], sizes = [8, 8], strides = [1, 1]} : vector<8x96xf32> to vector<8x8xf32>
    %461 = vector.extract_strided_slice %411 {offsets = [0, 48], sizes = [8, 8], strides = [1, 1]} : vector<8x96xf32> to vector<8x8xf32>
    %462 = vector.extract_strided_slice %411 {offsets = [0, 80], sizes = [8, 8], strides = [1, 1]} : vector<8x96xf32> to vector<8x8xf32>
    %463 = tpu.transpose %461, [1, 0] : vector<8x8xf32> -> vector<8x8xf32>
    %cst_139 = arith.constant dense<0.000000e+00> : vector<8x8xf32>
    %464 = tpu.matmul %460, %463, %cst_139 {dimension_numbers = #tpu.dot_dimension_numbers<[1], [0], [0], [1], [0, 0, 1, 1], [], []>} : vector<8x8xf32>, vector<8x8xf32>, vector<8x8xf32> -> vector<8x8xf32>
    %cst_140 = arith.constant 0.353553385 : f32
    %465 = vector.broadcast %cst_140 : f32 to vector<8x8xf32>
    %466 = arith.mulf %464, %465 : vector<8x8xf32>
    %467 = vector.broadcast %412 : vector<1x8xf32> to vector<8x8xf32>
    %468 = arith.addf %466, %467 : vector<8x8xf32>
    %cst_141 = arith.constant dense<0xFF800000> : vector<8xf32>
    %469 = vector.multi_reduction <maximumf>, %468, %cst_141 [1] : vector<8x8xf32> to vector<8xf32>
    %470 = vector.shape_cast %469 : vector<8xf32> to vector<8x1xf32>
    %471 = vector.broadcast %470 : vector<8x1xf32> to vector<8x8xf32>
    %472 = arith.subf %468, %471 : vector<8x8xf32>
    %473 = math.exp %472 : vector<8x8xf32>
    %cst_142 = arith.constant dense<0.000000e+00> : vector<8xf32>
    %474 = vector.multi_reduction <add>, %473, %cst_142 [1] : vector<8x8xf32> to vector<8xf32>
    %475 = vector.shape_cast %474 : vector<8xf32> to vector<8x1xf32>
    %476 = tpu.reciprocal %475 : vector<8x1xf32> -> vector<8x1xf32>
    %477 = vector.broadcast %476 : vector<8x1xf32> to vector<8x8xf32>
    %478 = arith.mulf %473, %477 : vector<8x8xf32>
    %cst_143 = arith.constant dense<0.000000e+00> : vector<8x8xf32>
    %479 = tpu.matmul %478, %462, %cst_143 {dimension_numbers = #tpu.dot_dimension_numbers<[1], [0], [0], [1], [0, 0, 1, 1], [], []>} : vector<8x8xf32>, vector<8x8xf32>, vector<8x8xf32> -> vector<8x8xf32>
    %480 = vector.extract_strided_slice %314 {offsets = [16, 0], sizes = [8, 32], strides = [1, 1]} : vector<32x32xf32> to vector<8x32xf32>
    %cst_144 = arith.constant dense<0.000000e+00> : vector<8x32xf32>
    %481 = tpu.matmul %479, %480, %cst_144 {dimension_numbers = #tpu.dot_dimension_numbers<[1], [0], [0], [1], [0, 0, 1, 1], [], []>} : vector<8x8xf32>, vector<8x32xf32>, vector<8x32xf32> -> vector<8x32xf32>
    %482 = arith.addf %459, %481 : vector<8x32xf32>
    %483 = vector.extract_strided_slice %411 {offsets = [0, 24], sizes = [8, 8], strides = [1, 1]} : vector<8x96xf32> to vector<8x8xf32>
    %484 = vector.extract_strided_slice %411 {offsets = [0, 56], sizes = [8, 8], strides = [1, 1]} : vector<8x96xf32> to vector<8x8xf32>
    %485 = vector.extract_strided_slice %411 {offsets = [0, 88], sizes = [8, 8], strides = [1, 1]} : vector<8x96xf32> to vector<8x8xf32>
    %486 = tpu.transpose %484, [1, 0] : vector<8x8xf32> -> vector<8x8xf32>
    %cst_145 = arith.constant dense<0.000000e+00> : vector<8x8xf32>
    %487 = tpu.matmul %483, %486, %cst_145 {dimension_numbers = #tpu.dot_dimension_numbers<[1], [0], [0], [1], [0, 0, 1, 1], [], []>} : vector<8x8xf32>, vector<8x8xf32>, vector<8x8xf32> -> vector<8x8xf32>
    %cst_146 = arith.constant 0.353553385 : f32
    %488 = vector.broadcast %cst_146 : f32 to vector<8x8xf32>
    %489 = arith.mulf %487, %488 : vector<8x8xf32>
    %490 = vector.broadcast %412 : vector<1x8xf32> to vector<8x8xf32>
    %491 = arith.addf %489, %490 : vector<8x8xf32>
    %cst_147 = arith.constant dense<0xFF800000> : vector<8xf32>
    %492 = vector.multi_reduction <maximumf>, %491, %cst_147 [1] : vector<8x8xf32> to vector<8xf32>
    %493 = vector.shape_cast %492 : vector<8xf32> to vector<8x1xf32>
    %494 = vector.broadcast %493 : vector<8x1xf32> to vector<8x8xf32>
    %495 = arith.subf %491, %494 : vector<8x8xf32>
    %496 = math.exp %495 : vector<8x8xf32>
    %cst_148 = arith.constant dense<0.000000e+00> : vector<8xf32>
    %497 = vector.multi_reduction <add>, %496, %cst_148 [1] : vector<8x8xf32> to vector<8xf32>
    %498 = vector.shape_cast %497 : vector<8xf32> to vector<8x1xf32>
    %499 = tpu.reciprocal %498 : vector<8x1xf32> -> vector<8x1xf32>
    %500 = vector.broadcast %499 : vector<8x1xf32> to vector<8x8xf32>
    %501 = arith.mulf %496, %500 : vector<8x8xf32>
    %cst_149 = arith.constant dense<0.000000e+00> : vector<8x8xf32>
    %502 = tpu.matmul %501, %485, %cst_149 {dimension_numbers = #tpu.dot_dimension_numbers<[1], [0], [0], [1], [0, 0, 1, 1], [], []>} : vector<8x8xf32>, vector<8x8xf32>, vector<8x8xf32> -> vector<8x8xf32>
    %503 = vector.extract_strided_slice %314 {offsets = [24, 0], sizes = [8, 32], strides = [1, 1]} : vector<32x32xf32> to vector<8x32xf32>
    %cst_150 = arith.constant dense<0.000000e+00> : vector<8x32xf32>
    %504 = tpu.matmul %502, %503, %cst_150 {dimension_numbers = #tpu.dot_dimension_numbers<[1], [0], [0], [1], [0, 0, 1, 1], [], []>} : vector<8x8xf32>, vector<8x32xf32>, vector<8x32xf32> -> vector<8x32xf32>
    %505 = arith.addf %482, %504 : vector<8x32xf32>
    %506 = tpu.concatenate %410, %505 in 0 : vector<8x32xf32>, vector<8x32xf32> -> vector<16x32xf32>
    %507 = vector.broadcast %315 : vector<1x32xf32> to vector<16x32xf32>
    %508 = arith.addf %506, %507 : vector<16x32xf32>
    %509 = arith.addf %280, %508 : vector<16x32xf32>
    %c3 = arith.constant 3 : index
    %c0_151 = arith.constant 0 : index
    %510 = vector.load %arg5[%c3, %c0_151] : memref<5x64xf32, #tpu.memory_space<vmem>>, vector<1x64xf32>
    %511 = vector.extract_strided_slice %510 {offsets = [0, 0], sizes = [1, 32], strides = [1, 1]} : vector<1x64xf32> to vector<1x32xf32>
    %512 = vector.extract_strided_slice %510 {offsets = [0, 32], sizes = [1, 32], strides = [1, 1]} : vector<1x64xf32> to vector<1x32xf32>
    %cst_152 = arith.constant dense<0.000000e+00> : vector<16xf32>
    %513 = vector.multi_reduction <add>, %509, %cst_152 [1] : vector<16x32xf32> to vector<16xf32>
    %514 = vector.shape_cast %513 : vector<16xf32> to vector<16x1xf32>
    %cst_153 = arith.constant 3.200000e+01 : f32
    %515 = vector.broadcast %cst_153 : f32 to vector<16x1xf32>
    %516 = arith.divf %514, %515 : vector<16x1xf32>
    %517 = vector.broadcast %516 : vector<16x1xf32> to vector<16x32xf32>
    %518 = arith.subf %509, %517 : vector<16x32xf32>
    %519 = arith.mulf %518, %518 : vector<16x32xf32>
    %cst_154 = arith.constant dense<0.000000e+00> : vector<16xf32>
    %520 = vector.multi_reduction <add>, %519, %cst_154 [1] : vector<16x32xf32> to vector<16xf32>
    %521 = vector.shape_cast %520 : vector<16xf32> to vector<16x1xf32>
    %cst_155 = arith.constant 3.200000e+01 : f32
    %522 = vector.broadcast %cst_155 : f32 to vector<16x1xf32>
    %523 = arith.divf %521, %522 : vector<16x1xf32>
    %524 = vector.broadcast %516 : vector<16x1xf32> to vector<16x32xf32>
    %525 = arith.subf %509, %524 : vector<16x32xf32>
    %526 = vector.broadcast %511 : vector<1x32xf32> to vector<16x32xf32>
    %527 = arith.mulf %526, %525 : vector<16x32xf32>
    %cst_156 = arith.constant 9.99999997E-7 : f32
    %528 = vector.broadcast %cst_156 : f32 to vector<16x1xf32>
    %529 = arith.addf %523, %528 : vector<16x1xf32>
    %530 = math.rsqrt %529 : vector<16x1xf32>
    %531 = vector.broadcast %530 : vector<16x1xf32> to vector<16x32xf32>
    %532 = arith.mulf %527, %531 : vector<16x32xf32>
    %533 = vector.broadcast %512 : vector<1x32xf32> to vector<16x32xf32>
    %534 = arith.addf %532, %533 : vector<16x32xf32>
    %c1_157 = arith.constant 1 : index
    %c0_158 = arith.constant 0 : index
    %535 = vector.load %arg10[%c1_157, %c0_158] : memref<2x96xf32, #tpu.memory_space<vmem>>, vector<1x96xf32>
    %c1_159 = arith.constant 1 : index
    %c0_160 = arith.constant 0 : index
    %c0_161 = arith.constant 0 : index
    %536 = vector.load %arg8[%c1_159, %c0_160, %c0_161] : memref<2x32x64xf32, #tpu.memory_space<vmem>>, vector<1x32x64xf32>
    %537 = vector.shape_cast %536 : vector<1x32x64xf32> to vector<32x64xf32>
    %cst_162 = arith.constant dense<0.000000e+00> : vector<16x64xf32>
    %538 = tpu.matmul %534, %537, %cst_162 {dimension_numbers = #tpu.dot_dimension_numbers<[1], [0], [0], [1], [0, 0, 1, 1], [], []>} : vector<16x32xf32>, vector<32x64xf32>, vector<16x64xf32> -> vector<16x64xf32>
    %539 = vector.extract_strided_slice %535 {offsets = [0, 0], sizes = [1, 64], strides = [1, 1]} : vector<1x96xf32> to vector<1x64xf32>
    %540 = vector.broadcast %539 : vector<1x64xf32> to vector<16x64xf32>
    %541 = arith.addf %538, %540 : vector<16x64xf32>
    %cst_163 = arith.constant 0.000000e+00 : f32
    %542 = vector.broadcast %cst_163 : f32 to vector<16x64xf32>
    %543 = arith.maximumf %541, %542 : vector<16x64xf32>
    %c1_164 = arith.constant 1 : index
    %c0_165 = arith.constant 0 : index
    %c0_166 = arith.constant 0 : index
    %544 = vector.load %arg9[%c1_164, %c0_165, %c0_166] : memref<2x64x32xf32, #tpu.memory_space<vmem>>, vector<1x64x32xf32>
    %545 = vector.shape_cast %544 : vector<1x64x32xf32> to vector<64x32xf32>
    %cst_167 = arith.constant dense<0.000000e+00> : vector<16x32xf32>
    %546 = tpu.matmul %543, %545, %cst_167 {dimension_numbers = #tpu.dot_dimension_numbers<[1], [0], [0], [1], [0, 0, 1, 1], [], []>} : vector<16x64xf32>, vector<64x32xf32>, vector<16x32xf32> -> vector<16x32xf32>
    %547 = arith.addf %509, %546 : vector<16x32xf32>
    %548 = vector.extract_strided_slice %535 {offsets = [0, 64], sizes = [1, 32], strides = [1, 1]} : vector<1x96xf32> to vector<1x32xf32>
    %549 = vector.broadcast %548 : vector<1x32xf32> to vector<16x32xf32>
    %550 = arith.addf %547, %549 : vector<16x32xf32>
    %c4 = arith.constant 4 : index
    %c0_168 = arith.constant 0 : index
    %551 = vector.load %arg5[%c4, %c0_168] : memref<5x64xf32, #tpu.memory_space<vmem>>, vector<1x64xf32>
    %552 = vector.extract_strided_slice %551 {offsets = [0, 0], sizes = [1, 32], strides = [1, 1]} : vector<1x64xf32> to vector<1x32xf32>
    %553 = vector.extract_strided_slice %551 {offsets = [0, 32], sizes = [1, 32], strides = [1, 1]} : vector<1x64xf32> to vector<1x32xf32>
    %cst_169 = arith.constant dense<0.000000e+00> : vector<16xf32>
    %554 = vector.multi_reduction <add>, %550, %cst_169 [1] : vector<16x32xf32> to vector<16xf32>
    %555 = vector.shape_cast %554 : vector<16xf32> to vector<16x1xf32>
    %cst_170 = arith.constant 3.200000e+01 : f32
    %556 = vector.broadcast %cst_170 : f32 to vector<16x1xf32>
    %557 = arith.divf %555, %556 : vector<16x1xf32>
    %558 = vector.broadcast %557 : vector<16x1xf32> to vector<16x32xf32>
    %559 = arith.subf %550, %558 : vector<16x32xf32>
    %560 = arith.mulf %559, %559 : vector<16x32xf32>
    %cst_171 = arith.constant dense<0.000000e+00> : vector<16xf32>
    %561 = vector.multi_reduction <add>, %560, %cst_171 [1] : vector<16x32xf32> to vector<16xf32>
    %562 = vector.shape_cast %561 : vector<16xf32> to vector<16x1xf32>
    %cst_172 = arith.constant 3.200000e+01 : f32
    %563 = vector.broadcast %cst_172 : f32 to vector<16x1xf32>
    %564 = arith.divf %562, %563 : vector<16x1xf32>
    %565 = vector.broadcast %557 : vector<16x1xf32> to vector<16x32xf32>
    %566 = arith.subf %550, %565 : vector<16x32xf32>
    %567 = vector.broadcast %552 : vector<1x32xf32> to vector<16x32xf32>
    %568 = arith.mulf %567, %566 : vector<16x32xf32>
    %cst_173 = arith.constant 9.99999997E-7 : f32
    %569 = vector.broadcast %cst_173 : f32 to vector<16x1xf32>
    %570 = arith.addf %564, %569 : vector<16x1xf32>
    %571 = math.rsqrt %570 : vector<16x1xf32>
    %572 = vector.broadcast %571 : vector<16x1xf32> to vector<16x32xf32>
    %573 = arith.mulf %568, %572 : vector<16x32xf32>
    %574 = vector.broadcast %553 : vector<1x32xf32> to vector<16x32xf32>
    %575 = arith.addf %573, %574 : vector<16x32xf32>
    %c0_174 = arith.constant 0 : index
    %c0_175 = arith.constant 0 : index
    %576 = vector.load %arg11[%c0_174, %c0_175] : memref<32x128xf32, #tpu.memory_space<vmem>>, vector<32x128xf32>
    %cst_176 = arith.constant dense<0.000000e+00> : vector<16x128xf32>
    %577 = tpu.matmul %575, %576, %cst_176 {dimension_numbers = #tpu.dot_dimension_numbers<[1], [0], [0], [1], [0, 0, 1, 1], [], []>} : vector<16x32xf32>, vector<32x128xf32>, vector<16x128xf32> -> vector<16x128xf32>
    %c0_177 = arith.constant 0 : index
    %c0_178 = arith.constant 0 : index
    %578 = vector.load %arg12[%c0_177, %c0_178] : memref<1x128xf32, #tpu.memory_space<vmem>>, vector<1x128xf32>
    %579 = vector.broadcast %578 : vector<1x128xf32> to vector<16x128xf32>
    %580 = arith.addf %577, %579 : vector<16x128xf32>
    %cst_179 = arith.constant dense<0xFF800000> : vector<16xf32>
    %581 = vector.multi_reduction <maximumf>, %580, %cst_179 [1] : vector<16x128xf32> to vector<16xf32>
    %582 = vector.shape_cast %581 : vector<16xf32> to vector<16x1xf32>
    %583 = vector.broadcast %582 : vector<16x1xf32> to vector<16x128xf32>
    %584 = arith.subf %580, %583 : vector<16x128xf32>
    %585 = math.exp %584 : vector<16x128xf32>
    %cst_180 = arith.constant dense<0.000000e+00> : vector<16xf32>
    %586 = vector.multi_reduction <add>, %585, %cst_180 [1] : vector<16x128xf32> to vector<16xf32>
    %587 = vector.shape_cast %586 : vector<16xf32> to vector<16x1xf32>
    %588 = math.log %587 : vector<16x1xf32>
    %589 = vector.broadcast %588 : vector<16x1xf32> to vector<16x128xf32>
    %590 = arith.subf %584, %589 : vector<16x128xf32>
    %c0_181 = arith.constant 0 : index
    %c0_182 = arith.constant 0 : index
    %591 = vector.load %arg13[%c0_181, %c0_182] : memref<16x128xf32, #tpu.memory_space<vmem>>, vector<16x128xf32>
    tpu.vector_store %arg13[%c0_181, %c0_182], %590 {strides = array<i32>} : memref<16x128xf32, #tpu.memory_space<vmem>>, vector<16x128xf32>,
    return
  }
  func.func @transform_0(%arg0: i32) -> (i32, i32) {
    %c0_i32 = arith.constant 0 : i32
    %c0_i32_0 = arith.constant 0 : i32
    %c0_i32_1 = arith.constant 0 : i32
    return %c0_i32, %c0_i32_0 : i32, i32
  }
  func.func @transform_1(%arg0: i32) -> (i32, i32) {
    %c0_i32 = arith.constant 0 : i32
    %c0_i32_0 = arith.constant 0 : i32
    %c0_i32_1 = arith.constant 0 : i32
    return %c0_i32, %c0_i32_0 : i32, i32
  }
  func.func @transform_2(%arg0: i32) -> (i32, i32) {
    %c0_i32 = arith.constant 0 : i32
    %c0_i32_0 = arith.constant 0 : i32
    %c0_i32_1 = arith.constant 0 : i32
    return %c0_i32, %c0_i32_0 : i32, i32
  }
  func.func @transform_3(%arg0: i32) -> (i32, i32) {
    %c0_i32 = arith.constant 0 : i32
    %c0_i32_0 = arith.constant 0 : i32
    %c0_i32_1 = arith.constant 0 : i32
    return %c0_i32, %c0_i32_0 : i32, i32
  }
  func.func @transform_4(%arg0: i32) -> (i32, i32) {
    %c0_i32 = arith.constant 0 : i32
    %c0_i32_0 = arith.constant 0 : i32
    %c0_i32_1 = arith.constant 0 : i32
    return %c0_i32, %c0_i32_0 : i32, i32
  }
  func.func @transform_5(%arg0: i32) -> (i32, i32, i32) {
    %c0_i32 = arith.constant 0 : i32
    %c0_i32_0 = arith.constant 0 : i32
    %c0_i32_1 = arith.constant 0 : i32
    %c0_i32_2 = arith.constant 0 : i32
    return %c0_i32, %c0_i32_0, %c0_i32_1 : i32, i32, i32
  }
  func.func @transform_6(%arg0: i32) -> (i32, i32) {
    %c0_i32 = arith.constant 0 : i32
    %c0_i32_0 = arith.constant 0 : i32
    %c0_i32_1 = arith.constant 0 : i32
    return %c0_i32, %c0_i32_0 : i32, i32
  }
  func.func @transform_7(%arg0: i32) -> (i32, i32, i32) {
    %c0_i32 = arith.constant 0 : i32
    %c0_i32_0 = arith.constant 0 : i32
    %c0_i32_1 = arith.constant 0 : i32
    %c0_i32_2 = arith.constant 0 : i32
    return %c0_i32, %c0_i32_0, %c0_i32_1 : i32, i32, i32
  }
  func.func @transform_8(%arg0: i32) -> (i32, i32, i32) {
    %c0_i32 = arith.constant 0 : i32
    %c0_i32_0 = arith.constant 0 : i32
    %c0_i32_1 = arith.constant 0 : i32
    %c0_i32_2 = arith.constant 0 : i32
    return %c0_i32, %c0_i32_0, %c0_i32_1 : i32, i32, i32
  }
  func.func @transform_9(%arg0: i32) -> (i32, i32) {
    %c0_i32 = arith.constant 0 : i32
    %c0_i32_0 = arith.constant 0 : i32
    %c0_i32_1 = arith.constant 0 : i32
    return %c0_i32, %c0_i32_0 : i32, i32
  }
  func.func @transform_10(%arg0: i32) -> (i32, i32) {
    %c0_i32 = arith.constant 0 : i32
    %c0_i32_0 = arith.constant 0 : i32
    %c0_i32_1 = arith.constant 0 : i32
    return %c0_i32, %c0_i32_0 : i32, i32
  }
  func.func @transform_11(%arg0: i32) -> (i32, i32) {
    %c0_i32 = arith.constant 0 : i32
    %c0_i32_0 = arith.constant 0 : i32
    %c0_i32_1 = arith.constant 0 : i32
    return %c0_i32, %c0_i32_0 : i32, i32
  }
  func.func @transform_12(%arg0: i32) -> (i32, i32) {
    %c0_i32 = arith.constant 0 : i32
    %c0_i32_0 = arith.constant 0 : i32
    %c0_i32_1 = arith.constant 0 : i32
    return %c0_i32, %c0_i32_0 : i32, i32
  }
}

</mosaic_0001>

<bundles_post_ra>
// kernel: tpu_custom_call.1
= control target key start
LH: loop header
LB: loop body
LE: loop exit
PB: predicated region body
PF: predicated region fallthrough
CT: control target
= control target key end

     0   :  { %vm56_vm0 = vcmask 1043456   ;;  %vm49_vm1 = vcmask 31744   ;;  %s3330_s0 = inlined_call_operand.vmem [shape: f32[16,4], index: 0, kind: input, shape index: {}]   ;;  %s3331_s1 = inlined_call_operand.vmem [shape: f32[2,8], index: 1, kind: input, shape index: {}]   ;;  %s3332_s2 = inlined_call_operand.vmem [shape: f32[4,32], index: 2, kind: input, shape index: {}]   ;;  %s3333_s3 = inlined_call_operand.vmem [shape: f32[8,32], index: 3, kind: input, shape index: {}]   ;;  %s3334_s4 = inlined_call_operand.vmem [shape: f32[5,64], index: 4, kind: input, shape index: {}]   ;;  %s3335_s5 = inlined_call_operand.vmem [shape: f32[2,32,128], index: 5, kind: input, shape index: {}]   ;;  %s3336_s6 = inlined_call_operand.vmem [shape: f32[2,128], index: 6, kind: input, shape index: {}]   ;;  %s3337_s7 = inlined_call_operand.vmem [shape: f32[2,32,64], index: 7, kind: input, shape index: {}]   ;;  %s3338_s8 = inlined_call_operand.vmem [shape: f32[2,64,32], index: 8, kind: input, shape index: {}]   ;;  %s3339_s9 = inlined_call_operand.vmem [shape: f32[2,96], index: 9, kind: input, shape index: {}]   ;;  %s3340_s10 = inlined_call_operand.vmem [shape: f32[32,128], index: 10, kind: input, shape index: {}]   ;;  %s3341_s11 = inlined_call_operand.vmem [shape: f32[1,128], index: 11, kind: input, shape index: {}]   ;;  %s3342_s12 = inlined_call_operand.hbm [shape: f32[16,128], index: 12, kind: output, shape index: {}]  }
   0x1   :  { %v47_v0 = vld [vmem:[%s3332_s2] sm:$0xf] }
   0x2   :  { %v42_v1 = vld [vmem:[%s3330_s0] sm:$0xff]  ;;  %2380 = vmatpush.msk.msra.mxu2 %vm56_vm0, %v47_v0 }
   0x3   :  { %2381 = vmatmul.msk.f32.vlgmr.msra.gmra.mxu2 %vm49_vm1, %v42_v1 }
   0x4   :  { %17 = vsyncpa [#allocation3], 0  ;;  %v2714_v2 = vld [vmem:[%s3333_s3] sm:$0xff]  ;;  %vm84_vm2 = vcmask 261120   ;;  %v2623_v7 = vmov 32.0   ;;  %s2624_s28 = smov 96  }
   0x5   :  { %v2724_v6 = vld [vmem:[%s3334_s4] ss:$0 sm:$0xff]  ;;  %2503 = vrcp.f32 %v2623_v7  ;;  %v2736_v19 = vld [vmem:[%s3335_s5 + $0x18] sm:$0xff]  ;;  %v2741_v20 = vld [vmem:[%s3335_s5 + $0x10] sm:$0xff]  ;;  %s2625_s22 = smov 64   ;;  %s2626_s23 = smov 88  }
   0x6   :  { %140 = vrot.lane.b32.xlu1 %v2724_v6, %s2624_s28  ;;  %169 = vmatpush.msra.mxu1 %v2736_v19  ;;  %v2747_v21 = vld [vmem:[%s3335_s5 + $0x8] sm:$0xff]  ;;  %v2754_v22 = vld [vmem:[%s3335_s5] sm:$0xff]  ;;  %vm183_vm7 = vcmask 64512   ;;  %s2628_s25 = smov 56   ;;  %s2629_s26 = smov 80  }
   0x7   :  { %v43_v37 = vld [vmem:[%s3330_s0 + $0x8] sm:$0xff]  ;;  %v2770_v38 = vld [vmem:[%s3336_s6] ss:$0 sm:$0xff]  ;;  %s2630_s2 = smov 112   ;;  %s2631_s27 = smov 72  }
   0x8   :  { %170 = vmatpush.msra.mxu1 %v2741_v20  ;;  %v44_v44 = vld [vmem:[%s3331_s1] sm:$0x3]  ;;  %s2627_s1 = smov 120   ;;  %s2632_s3 = smov 48  }
   0x9   :  { %v2379_v46 = vadd.f32 -1.0, %v44_v44  ;;  %s2633_s29 = smov 32   ;;  %s2634_s30 = smov 104  }
   0xa   :  { %171 = vmatpush.msra.mxu1 %v2747_v21  ;;  %s2635_s13 = smov 40   ;;  %s2637_s16 = smov 128  }
   0xb   :  { %v2504_v8 = vpop.eup %2503  ;;  %2382 = vmatmul.msk.f32.gmra.mxu2 %vm49_vm1, %v43_v37  ;;  %v2788_v47 = vmul.f32 1e+09, %v2379_v46  ;;  %s2638_s17 = smov 8  }
   0xc   :  { %v92_v9 = vmul.f32 32.0, %v2504_v8  ;;  %vm96_vm3 = vweird.f32 %v2504_v8  ;;  %172 = vmatpush.msra.mxu1 %v2754_v22 }
   0xd   :  { %v2791_v48 = vperm.slane %v2788_v47, 0 }
   0xe   :  { %v93_v10 = vsub.f32 1.0, %v92_v9 }
  0x10   :  { %v94_v11 = vmul.f32 %v2504_v8, %v93_v10 }
  0x12   :  { %v95_v12 = vadd.f32 %v2504_v8, %v94_v11 }
  0x14   :  { %v2728_v13 = vsel %vm96_vm3, %v2504_v8, %v95_v12 }
  0x78   :  { %v2759_v33 = vpop.permute.xlu1 %140 }
  0x86   :  { %v77_v3 = vpop.f32.mrf.mxu2 }
  0x87   :  { %v2717_v4 = vadd.f32 %v77_v3, %v2714_v2 }
  0x89   :  { %v85_v5 = vsel %vm84_vm2, %v2717_v4, 0.0 }
  0x8a   :  { %86 = vadd.xlane.f32.xlu0 %v85_v5 }
  0x8e   :  { %v80_v45 = vpop.f32.mrf.mxu2 }
  0x8f   :  { %v2805_v58 = vadd.f32 %v80_v45, %v2714_v2 }
  0x91   :  { %v88_v59 = vsel %vm84_vm2, %v2805_v58, 0.0 }
  0xfd   :  { %v87_v14 = vpop.xlane.xlu0 %86 }
  0xfe   :  { %v98_v15 = vmul.f32 %v2728_v13, %v87_v14 }
 0x100   :  { %v100_v16 = vsub.f32 %v2717_v4, %v98_v15 }
 0x102   :  { %v102_v17 = vmul.f32 %v100_v16, %v100_v16  ;;  %v113_v32 = vmul.f32 %v2724_v6, %v100_v16 }
 0x104   :  { %v104_v18 = vsel %vm84_vm2, %v102_v17, 0.0 }
 0x105   :  { %105 = vadd.xlane.f32.xlu0 %v104_v18 }
 0x178   :  { %v106_v23 = vpop.xlane.xlu0 %105 }
 0x179   :  { %v110_v24 = vmul.f32 %v106_v23, %v2728_v13 }
 0x17b   :  { %v115_v25 = vadd.f32 1e-06, %v110_v24 }
 0x17d   :  { %2505 = vrsqrt.f32 %v115_v25  ;;  %vm123_vm5 = vweird.f32 %v115_v25 }
 0x183   :  { %v2506_v26 = vpop.eup %2505 }
 0x184   :  { %v118_v27 = vmul.f32 %v2506_v26, %v115_v25  ;;  %vm124_vm4 = vweird.f32 %v2506_v26 }
 0x185   :  { %vm125_vm6 = vmor %vm123_vm5, %vm124_vm4 }
 0x186   :  { %v119_v28 = vmul.f32 %v2506_v26, %v118_v27 }
 0x188   :  { %v120_v29 = vmul.f32 0.5, %v119_v28 }
 0x18a   :  { %v121_v30 = vsub.f32 1.5, %v120_v29 }
 0x18c   :  { %v122_v31 = vmul.f32 %v2506_v26, %v121_v30 }
 0x18e   :  { %v126_v34 = vsel %vm125_vm6, %v2506_v26, %v122_v31 }
 0x18f   :  { %v137_v35 = vmul.f32 %v126_v34, %v113_v32 }
 0x191   :  { %v143_v36 = vadd.f32 %v2759_v33, %v137_v35 }
 0x193   :  { %2383 = vmatmul.msk.f32.vlgmr.msra.gmra.mxu1 %vm84_vm2, %v143_v36 }
 0x210   :  { %v174_v39 = vpop.f32.mrf.mxu1 }
 0x211   :  { %v2773_v40 = vadd.f32 %v2770_v38, %v174_v39 }
 0x213   :  { %235 = vrot.lane.b32.xlu0 %v2773_v40, %s2625_s22  ;;  %181 = vrot.lane.b32.xlu1 %v2773_v40, %s2624_s28 }
 0x21b   :  { %263 = vrot.lane.b32.xlu1 %v2773_v40, %s2626_s23 }
 0x285   :  { %v236_v41 = vpop.permute.xlu0 %235  ;;  %v182_v42 = vpop.permute.xlu1 %181 }
 0x286   :  { %2385 = vmatpush.xpose.msk.msrb.mxu2 %vm183_vm7, %v182_v42  ;;  %256 = vmatpush.msra.mxu3 %v236_v41 }
 0x289   :  { %2386 = vmatmul.msk.f32.vlgmr.msrb.gmra.mxu2 %vm183_vm7, %v2773_v40 }
 0x28d   :  { %v264_v43 = vpop.permute.xlu1 %263 }
 0x28e   :  { %2388 = vmatpush.xpose.msk.msrb.mxu3 %vm183_vm7, %v264_v43 }
 0x30c   :  { %v205_v49 = vpop.f32.mrf.mxu2 }
 0x30d   :  { %v208_v50 = vmul.f32 0.35355338, %v205_v49 }
 0x30f   :  { %v210_v51 = vadd.f32 %v2791_v48, %v208_v50 }
 0x311   :  { %v211_v52 = vsel %vm183_vm7, %v210_v51, -inf }
 0x312   :  { %212 = vmax.xlane.f32.xlu2 %v211_v52 }
 0x385   :  { %v213_v53 = vpop.xlane.xlu2 %212 }
 0x386   :  { %v214_v54 = vsub.f32 %v210_v51, %v213_v53 }
 0x388   :  { %v215_v55 = vmul.f32 1.442695, %v214_v54 }
 0x38a   :  { %2507 = vpow2.f32 %v215_v55 }
 0x390   :  { %v2508_v56 = vpop.eup %2507 }
 0x391   :  { %v217_v57 = vsel %vm183_vm7, %v2508_v56, 0.0 }
 0x392   :  { %218 = vadd.xlane.f32.xlu2 %v217_v57 }
 0x3aa   :  { %261 = vrot.lane.b32.xlu2 %v2773_v40, %s2627_s1 }
 0x3b2   :  { %315 = vrot.lane.b32.xlu2 %v2773_v40, %s2628_s25 }
 0x3ba   :  { %397 = vrot.lane.b32.xlu2 %v2773_v40, %s2629_s26 }
 0x3c2   :  { %395 = vrot.lane.b32.xlu2 %v2773_v40, %s2630_s2 }
 0x3eb   :  { %89 = vadd.xlane.f32.xlu2 %v88_v59 }
 0x403   :  { %505 = vrot.lane.b32.xlu2 %v2773_v40, %s2631_s27 }
 0x405   :  { %v219_v60 = vpop.xlane.xlu2 %218 }
 0x406   :  { %2509 = vrcp.f32 %v219_v60  ;;  %v231_v1 = vand.u32 2147483648, %v219_v60  ;;  %v229_v5 = vand.u32 2147483647, %v219_v60  ;;  %vm225_vm9 = vweird.f32 %v219_v60 }
 0x408   :  { %v232_v7 = vor.u32 1.1754944e-38, %v231_v1  ;;  %vm230_vm11 = vcmp.eq.f32.partialorder %v229_v5, 8.507059e+37 }
 0x40c   :  { %v2510_v61 = vpop.eup %2509 }
 0x40d   :  { %v221_v62 = vmul.f32 %v2510_v61, %v219_v60  ;;  %v262_v63 = vpop.permute.xlu2 %261  ;;  %vm226_vm8 = vweird.f32 %v2510_v61 }
 0x40e   :  { %vm227_vm10 = vmor %vm225_vm9, %vm226_vm8 }
 0x40f   :  { %v222_v0 = vsub.f32 1.0, %v221_v62 }
 0x411   :  { %v223_v3 = vmul.f32 %v2510_v61, %v222_v0 }
 0x413   :  { %v224_v2 = vadd.f32 %v2510_v61, %v223_v3 }
 0x415   :  { %v316_v8 = vpop.permute.xlu2 %315  ;;  %v228_v9 = vsel %vm227_vm10, %v2510_v61, %v224_v2 }
 0x416   :  { %336 = vmatpush.msra.mxu2 %v316_v8  ;;  %v233_v10 = vsel %vm230_vm11, %v232_v7, %v228_v9 }
 0x417   :  { %v234_v11 = vmul.f32 %v2508_v56, %v233_v10 }
 0x419   :  { %2387 = vmatmul.msk.f32.vlgmr.msra.gmra.mxu3 %vm183_vm7, %v234_v11 }
 0x41d   :  { %v398_v12 = vpop.permute.xlu2 %397 }
 0x41e   :  { %2393 = vmatpush.xpose.msk.msrb.mxu2 %vm183_vm7, %v398_v12 }
 0x421   :  { %2389 = vmatmul.msk.f32.vlgmr.msrb.gmra.mxu3 %vm183_vm7, %v262_v63 }
 0x425   :  { %v396_v43 = vpop.permute.xlu2 %395 }
 0x45e   :  { %v90_v45 = vpop.xlane.xlu2 %89 }
 0x45f   :  { %v99_v49 = vmul.f32 %v2728_v13, %v90_v45 }
 0x461   :  { %v101_v52 = vsub.f32 %v2805_v58, %v99_v49  ;;  %v2872_v49 = vperm.slane %v2788_v47, 1 }
 0x463   :  { %v103_v54 = vmul.f32 %v101_v52, %v101_v52  ;;  %v114_v8 = vmul.f32 %v2724_v6, %v101_v52 }
 0x465   :  { %v107_v55 = vsel %vm84_vm2, %v103_v54, 0.0 }
 0x49c   :  { %v2814_v14 = vpop.f32.mrf.mxu3 }
 0x4a4   :  { %v286_v15 = vpop.f32.mrf.mxu3 }
 0x4a5   :  { %v289_v16 = vmul.f32 0.35355338, %v286_v15 }
 0x4a7   :  { %v290_v17 = vadd.f32 %v289_v16, %v2791_v48 }
 0x4a9   :  { %v291_v18 = vsel %vm183_vm7, %v290_v17, -inf }
 0x4aa   :  { %292 = vmax.xlane.f32.xlu1 %v291_v18 }
 0x51d   :  { %v293_v23 = vpop.xlane.xlu1 %292 }
 0x51e   :  { %v294_v24 = vsub.f32 %v290_v17, %v293_v23 }
 0x520   :  { %v295_v25 = vmul.f32 1.442695, %v294_v24 }
 0x522   :  { %2511 = vpow2.f32 %v295_v25 }
 0x528   :  { %v2512_v26 = vpop.eup %2511 }
 0x529   :  { %v297_v27 = vsel %vm183_vm7, %v2512_v26, 0.0 }
 0x52a   :  { %298 = vadd.xlane.f32.xlu0 %v297_v27 }
 0x59d   :  { %v299_v28 = vpop.xlane.xlu0 %298 }
 0x59e   :  { %2513 = vrcp.f32 %v299_v28  ;;  %v311_v32 = vand.u32 2147483648, %v299_v28  ;;  %v309_v35 = vand.u32 2147483647, %v299_v28  ;;  %vm305_vm13 = vweird.f32 %v299_v28 }
 0x5a0   :  { %v312_v37 = vor.u32 1.1754944e-38, %v311_v32  ;;  %vm310_vm15 = vcmp.eq.f32.partialorder %v309_v35, 8.507059e+37 }
 0x5a4   :  { %v2514_v29 = vpop.eup %2513 }
 0x5a5   :  { %v301_v30 = vmul.f32 %v2514_v29, %v299_v28  ;;  %vm306_vm12 = vweird.f32 %v2514_v29 }
 0x5a6   :  { %vm307_vm14 = vmor %vm305_vm13, %vm306_vm12 }
 0x5a7   :  { %v302_v31 = vsub.f32 1.0, %v301_v30 }
 0x5a9   :  { %v303_v34 = vmul.f32 %v2514_v29, %v302_v31 }
 0x5ab   :  { %v304_v36 = vadd.f32 %v2514_v29, %v303_v34 }
 0x5ad   :  { %v308_v39 = vsel %vm307_vm14, %v2514_v29, %v304_v36 }
 0x5ae   :  { %v313_v41 = vsel %vm310_vm15, %v312_v37, %v308_v39 }
 0x5af   :  { %v314_v42 = vmul.f32 %v2512_v26, %v313_v41 }
 0x5b1   :  { %2390 = vmatmul.msk.f32.vlgmr.msra.gmra.mxu2 %vm183_vm7, %v314_v42 }
 0x5b9   :  { %2394 = vmatmul.msk.f32.vlgmr.msrb.gmra.mxu2 %vm183_vm7, %v396_v43 }
 0x634   :  { %v338_v44 = vpop.f32.mrf.mxu2 }
 0x63c   :  { %v420_v46 = vpop.f32.mrf.mxu2 }
 0x63d   :  { %v423_v50 = vmul.f32 0.35355338, %v420_v46 }
 0x63f   :  { %v424_v51 = vadd.f32 %v423_v50, %v2791_v48 }
 0x641   :  { %v425_v53 = vsel %vm183_vm7, %v424_v51, -inf }
 0x642   :  { %426 = vmax.xlane.f32.xlu1 %v425_v53 }
 0x64a   :  { %108 = vadd.xlane.f32.xlu1 %v107_v55 }
 0x663   :  { %449 = vrot.lane.b32.xlu1 %v2773_v40, %s2632_s3 }
 0x66b   :  { %342 = vrot.lane.b32.xlu1 %v2747_v21, %s2633_s29 }
 0x6b5   :  { %v427_v56 = vpop.xlane.xlu1 %426 }
 0x6b6   :  { %v428_v57 = vsub.f32 %v424_v51, %v427_v56 }
 0x6b8   :  { %v429_v59 = vmul.f32 1.442695, %v428_v57 }
 0x6ba   :  { %2515 = vpow2.f32 %v429_v59 }
 0x6bd   :  { %v109_v60 = vpop.xlane.xlu1 %108 }
 0x6be   :  { %v111_v61 = vmul.f32 %v109_v60, %v2728_v13 }
 0x6c0   :  { %v2516_v62 = vpop.eup %2515  ;;  %v116_v63 = vadd.f32 1e-06, %v111_v61 }
 0x6c1   :  { %v431_v0 = vsel %vm183_vm7, %v2516_v62, 0.0 }
 0x6c2   :  { %2517 = vrsqrt.f32 %v116_v63  ;;  %432 = vadd.xlane.f32.xlu0 %v431_v0  ;;  %vm133_vm1 = vweird.f32 %v116_v63 }
 0x6c8   :  { %v2518_v1 = vpop.eup %2517 }
 0x6c9   :  { %v128_v3 = vmul.f32 %v2518_v1, %v116_v63  ;;  %vm134_vm0 = vweird.f32 %v2518_v1 }
 0x6ca   :  { %vm135_vm3 = vmor %vm133_vm1, %vm134_vm0 }
 0x6cb   :  { %v129_v5 = vmul.f32 %v2518_v1, %v128_v3 }
 0x6cd   :  { %v130_v2 = vmul.f32 0.5, %v129_v5 }
 0x6cf   :  { %v131_v7 = vsub.f32 1.5, %v130_v2 }
 0x6d1   :  { %v132_v21 = vmul.f32 %v2518_v1, %v131_v7 }
 0x6d3   :  { %v136_v9 = vsel %vm135_vm3, %v2518_v1, %v132_v21 }
 0x6d4   :  { %v138_v10 = vmul.f32 %v136_v9, %v114_v8 }
 0x6d5   :  { %v450_v11 = vpop.permute.xlu1 %449 }
 0x6d6   :  { %369 = vrot.lane.b32.xlu0 %v2754_v22, %s2633_s29  ;;  %470 = vmatpush.msrb.mxu1 %v450_v11  ;;  %v144_v12 = vadd.f32 %v2759_v33, %v138_v10 }
 0x6d8   :  { %2384 = vmatmul.msk.f32.gmra.mxu1 %vm84_vm2, %v144_v12 }
 0x6dd   :  { %v343_v15 = vpop.permute.xlu1 %342 }
 0x6de   :  { %503 = vrot.lane.b32.xlu0 %v2773_v40, %s2634_s30  ;;  %363 = vmatpush.msra.mxu0 %v343_v15 }
 0x6df   :  { %2391 = vmatmul.msk.f32.vlgmr.msra.gmra.mxu0 %vm183_vm7, %v338_v44 }
 0x6e6   :  { %476 = vrot.lane.b32.xlu0 %v2741_v20, %s2633_s29  ;;  %v506_v20 = vpop.permute.xlu2 %505 }
 0x735   :  { %v433_v6 = vpop.xlane.xlu0 %432 }
 0x736   :  { %2519 = vrcp.f32 %v433_v6  ;;  %v445_v18 = vand.u32 2147483648, %v433_v6  ;;  %v443_v23 = vand.u32 2147483647, %v433_v6  ;;  %vm439_vm5 = vweird.f32 %v433_v6 }
 0x738   :  { %v446_v25 = vor.u32 1.1754944e-38, %v445_v18  ;;  %vm444_vm8 = vcmp.eq.f32.partialorder %v443_v23, 8.507059e+37 }
 0x73c   :  { %v2520_v16 = vpop.eup %2519 }
 0x73d   :  { %v435_v22 = vmul.f32 %v2520_v16, %v433_v6  ;;  %vm440_vm4 = vweird.f32 %v2520_v16 }
 0x73e   :  { %vm441_vm6 = vmor %vm439_vm5, %vm440_vm4 }
 0x73f   :  { %v436_v17 = vsub.f32 1.0, %v435_v22 }
 0x741   :  { %v437_v33 = vmul.f32 %v2520_v16, %v436_v17 }
 0x743   :  { %v438_v24 = vadd.f32 %v2520_v16, %v437_v33 }
 0x745   :  { %v442_v26 = vsel %vm441_vm6, %v2520_v16, %v438_v24 }
 0x746   :  { %v447_v27 = vsel %vm444_vm8, %v446_v25, %v442_v26 }
 0x747   :  { %v448_v28 = vmul.f32 %v2516_v62, %v447_v27 }
 0x748   :  { %v2842_v29 = vpop.permute.xlu0 %369 }
 0x749   :  { %390 = vmatpush.msra.mxu3 %v2842_v29  ;;  %2395 = vmatmul.msk.f32.vlgmr.msrb.gmra.mxu1 %vm183_vm7, %v448_v28 }
 0x74a   :  { %2392 = vmatmul.msk.f32.vlgmr.msra.gmra.mxu3 %vm183_vm7, %v2814_v14 }
 0x74b   :  { %2397 = vmatpush.xpose.msk.msrb.mxu3 %vm183_vm7, %v506_v20 }
 0x750   :  { %v504_v30 = vpop.permute.xlu0 %503 }
 0x752   :  { %2398 = vmatmul.msk.f32.vlgmr.msrb.gmra.mxu3 %vm183_vm7, %v504_v30 }
 0x755   :  { %v177_v31 = vpop.f32.mrf.mxu1 }
 0x756   :  { %v2851_v32 = vadd.f32 %v2770_v38, %v177_v31 }
 0x758   :  { %612 = vrot.lane.b32.xlu1 %v2851_v32, %s2624_s28  ;;  %v477_v34 = vpop.permute.xlu0 %476 }
 0x759   :  { %497 = vmatpush.msrb.mxu0 %v477_v34 }
 0x75c   :  { %v365_v43 = vpop.f32.mrf.mxu0 }
 0x7c6   :  { %v472_v35 = vpop.f32.mrf.mxu1 }
 0x7c7   :  { %2396 = vmatmul.msk.f32.vlgmr.msrb.gmra.mxu0 %vm183_vm7, %v472_v35 }
 0x7ca   :  { %v613_v36 = vpop.permute.xlu1 %612 }
 0x7cb   :  { %2401 = vmatpush.xpose.msk.msra.mxu0 %vm183_vm7, %v613_v36 }
 0x7cd   :  { %v392_v14 = vpop.f32.mrf.mxu3 }
 0x7ce   :  { %v393_v44 = vadd.f32 %v392_v14, %v365_v43 }
 0x7cf   :  { %789 = vmatpush.msrb.mxu0 %v343_v15 }
 0x7d0   :  { %2402 = vmatmul.msk.f32.vlgmr.msra.gmra.mxu0 %vm183_vm7, %v2851_v32 }
 0x7d1   :  { %915 = vmatpush.msra.mxu0 %v477_v34 }
 0x7d5   :  { %v528_v37 = vpop.f32.mrf.mxu3 }
 0x7d6   :  { %v531_v39 = vmul.f32 0.35355338, %v528_v37 }
 0x7d8   :  { %v532_v41 = vadd.f32 %v531_v39, %v2791_v48 }
 0x7da   :  { %v533_v42 = vsel %vm183_vm7, %v532_v41, -inf }
 0x7db   :  { %534 = vmax.xlane.f32.xlu0 %v533_v42 }
 0x7ef   :  { %557 = vrot.lane.b32.xlu0 %v2773_v40, %s2635_s13 }
 0x7f7   :  { %819 = vrot.lane.b32.xlu0 %v2851_v32, %s2629_s26 }
 0x7ff   :  { %817 = vrot.lane.b32.xlu0 %v2851_v32, %s2630_s2 }
 0x807   :  { %923 = vrot.lane.b32.xlu0 %v2851_v32, %s2631_s27 }
 0x844   :  { %v499_v45 = vpop.f32.mrf.mxu0 }
 0x845   :  { %v2869_v46 = vadd.f32 %v499_v45, %v393_v44 }
 0x84d   :  { %v635_v50 = vpop.f32.mrf.mxu0 }
 0x84e   :  { %v638_v51 = vmul.f32 0.35355338, %v635_v50  ;;  %v535_v40 = vpop.xlane.xlu0 %534 }
 0x84f   :  { %v536_v52 = vsub.f32 %v532_v41, %v535_v40 }
 0x850   :  { %v640_v53 = vadd.f32 %v2872_v49, %v638_v51 }
 0x851   :  { %v537_v54 = vmul.f32 1.442695, %v536_v52 }
 0x852   :  { %v641_v55 = vsel %vm183_vm7, %v640_v53, -inf }
 0x853   :  { %642 = vmax.xlane.f32.xlu1 %v641_v55  ;;  %2521 = vpow2.f32 %v537_v54 }
 0x859   :  { %v2522_v56 = vpop.eup %2521 }
 0x85a   :  { %v539_v57 = vsel %vm183_vm7, %v2522_v56, 0.0 }
 0x85b   :  { %540 = vadd.xlane.f32.xlu2 %v539_v57 }
 0x861   :  { %v558_v59 = vpop.permute.xlu0 %557 }
 0x862   :  { %578 = vmatpush.msra.mxu2 %v558_v59 }
 0x869   :  { %v820_v16 = vpop.permute.xlu0 %819 }
 0x871   :  { %v818_v33 = vpop.permute.xlu0 %817 }
 0x873   :  { %693 = vrot.lane.b32.xlu2 %v2851_v32, %s2626_s23 }
 0x879   :  { %v924_v31 = vpop.permute.xlu0 %923 }
 0x87b   :  { %665 = vrot.lane.b32.xlu2 %v2851_v32, %s2625_s22 }
 0x883   :  { %921 = vrot.lane.b32.xlu2 %v2851_v32, %s2634_s30 }
 0x8c6   :  { %v643_v47 = vpop.xlane.xlu1 %642 }
 0x8c7   :  { %v644_v60 = vsub.f32 %v640_v53, %v643_v47 }
 0x8c9   :  { %v645_v61 = vmul.f32 1.442695, %v644_v60 }
 0x8cb   :  { %2523 = vpow2.f32 %v645_v61 }
 0x8ce   :  { %v541_v62 = vpop.xlane.xlu2 %540 }
 0x8cf   :  { %2525 = vrcp.f32 %v541_v62  ;;  %v553_v7 = vand.u32 2147483648, %v541_v62  ;;  %v551_v8 = vand.u32 2147483647, %v541_v62  ;;  %vm547_vm10 = vweird.f32 %v541_v62 }
 0x8d1   :  { %v2524_v63 = vpop.eup %2523  ;;  %v554_v10 = vor.u32 1.1754944e-38, %v553_v7  ;;  %vm552_vm12 = vcmp.eq.f32.partialorder %v551_v8, 8.507059e+37 }
 0x8d2   :  { %v647_v0 = vsel %vm183_vm7, %v2524_v63, 0.0 }
 0x8d3   :  { %648 = vadd.xlane.f32.xlu1 %v647_v0 }
 0x8d5   :  { %v2526_v1 = vpop.eup %2525 }
 0x8d6   :  { %v543_v3 = vmul.f32 %v2526_v1, %v541_v62  ;;  %v694_v5 = vpop.permute.xlu2 %693  ;;  %vm548_vm9 = vweird.f32 %v2526_v1 }
 0x8d7   :  { %2404 = vmatpush.xpose.msk.msrb.mxu2 %vm183_vm7, %v694_v5  ;;  %vm549_vm11 = vmor %vm547_vm10, %vm548_vm9 }
 0x8d8   :  { %v544_v2 = vsub.f32 1.0, %v543_v3 }
 0x8da   :  { %v545_v21 = vmul.f32 %v2526_v1, %v544_v2 }
 0x8dc   :  { %v546_v9 = vadd.f32 %v2526_v1, %v545_v21 }
 0x8de   :  { %v550_v11 = vsel %vm549_vm11, %v2526_v1, %v546_v9  ;;  %v666_v12 = vpop.permute.xlu2 %665 }
 0x8df   :  { %v555_v15 = vsel %vm552_vm12, %v554_v10, %v550_v11  ;;  %686 = vmatpush.msra.mxu3 %v666_v12 }
 0x8e0   :  { %v556_v6 = vmul.f32 %v2522_v56, %v555_v15 }
 0x8e1   :  { %812 = vmatpush.msrb.mxu3 %v2842_v29 }
 0x8e2   :  { %2399 = vmatmul.msk.f32.vlgmr.msra.gmra.mxu2 %vm183_vm7, %v556_v6 }
 0x8e3   :  { %2409 = vmatpush.xpose.msk.msra.mxu2 %vm183_vm7, %v820_v16 }
 0x8e6   :  { %v922_v39 = vpop.permute.xlu2 %921 }
 0x8ec   :  { %691 = vrot.lane.b32.xlu1 %v2851_v32, %s2627_s1 }
 0x8f4   :  { %584 = vrot.lane.b32.xlu1 %v2736_v19, %s2633_s29 }
 0x946   :  { %v649_v22 = vpop.xlane.xlu1 %648 }
 0x947   :  { %2527 = vrcp.f32 %v649_v22  ;;  %v661_v24 = vand.u32 2147483648, %v649_v22  ;;  %v659_v26 = vand.u32 2147483647, %v649_v22  ;;  %vm655_vm14 = vweird.f32 %v649_v22 }
 0x949   :  { %v662_v28 = vor.u32 1.1754944e-38, %v661_v24  ;;  %vm660_vm0 = vcmp.eq.f32.partialorder %v659_v26, 8.507059e+37 }
 0x94d   :  { %v2528_v17 = vpop.eup %2527 }
 0x94e   :  { %v651_v18 = vmul.f32 %v2528_v17, %v649_v22  ;;  %vm656_vm13 = vweird.f32 %v2528_v17 }
 0x94f   :  { %vm657_vm15 = vmor %vm655_vm14, %vm656_vm13 }
 0x950   :  { %v652_v23 = vsub.f32 1.0, %v651_v18 }
 0x952   :  { %v653_v25 = vmul.f32 %v2528_v17, %v652_v23 }
 0x954   :  { %v654_v27 = vadd.f32 %v2528_v17, %v653_v25 }
 0x956   :  { %v658_v29 = vsel %vm657_vm15, %v2528_v17, %v654_v27 }
 0x957   :  { %v663_v20 = vsel %vm660_vm0, %v662_v28, %v658_v29 }
 0x958   :  { %v664_v30 = vmul.f32 %v2524_v63, %v663_v20 }
 0x95a   :  { %2403 = vmatmul.msk.f32.vlgmr.msra.gmra.mxu3 %vm183_vm7, %v664_v30 }
 0x95b   :  { %2413 = vmatpush.xpose.msk.msra.mxu3 %vm183_vm7, %v924_v31 }
 0x95e   :  { %v692_v19 = vpop.permute.xlu1 %691 }
 0x95f   :  { %2405 = vmatmul.msk.f32.vlgmr.msrb.gmra.mxu2 %vm183_vm7, %v692_v19 }
 0x965   :  { %v580_v34 = vpop.f32.mrf.mxu2 }
 0x966   :  { %v2895_v35 = vpop.permute.xlu1 %584 }
 0x967   :  { %605 = vmatpush.msra.mxu1 %v2895_v35  ;;  %2410 = vmatmul.msk.f32.vlgmr.msra.gmra.mxu2 %vm183_vm7, %v818_v33 }
 0x968   :  { %2400 = vmatmul.msk.f32.vlgmr.msra.gmra.mxu1 %vm183_vm7, %v580_v34 }
 0x9dd   :  { %v688_v36 = vpop.f32.mrf.mxu3 }
 0x9de   :  { %2408 = vmatmul.msk.f32.vlgmr.msrb.gmra.mxu3 %vm183_vm7, %v688_v36 }
 0x9e2   :  { %v716_v14 = vpop.f32.mrf.mxu2 }
 0x9e3   :  { %v719_v37 = vmul.f32 0.35355338, %v716_v14 }
 0x9e5   :  { %v720_v41 = vadd.f32 %v719_v37, %v2872_v49  ;;  %v607_v20 = vpop.f32.mrf.mxu1 }
 0x9e6   :  { %2414 = vmatmul.msk.f32.vlgmr.msra.gmra.mxu3 %vm183_vm7, %v922_v39  ;;  %v610_v30 = vadd.f32 %v607_v20, %v2869_v46  ;;  %v1124_v20 = vld [vmem:[%s3338_s8] sm:$0xff] }
 0x9e7   :  { %v721_v42 = vsel %vm183_vm7, %v720_v41, -inf }
 0x9e8   :  { %722 = vmax.xlane.f32.xlu1 %v721_v42 }
 0x9ea   :  { %v842_v43 = vpop.f32.mrf.mxu2 }
 0x9eb   :  { %v845_v44 = vmul.f32 0.35355338, %v842_v43 }
 0x9ed   :  { %v846_v45 = vadd.f32 %v845_v44, %v2872_v49 }
 0x9ef   :  { %v847_v50 = vsel %vm183_vm7, %v846_v45, -inf }
 0x9f0   :  { %848 = vmax.xlane.f32.xlu0 %v847_v50 }
 0xa04   :  { %745 = vrot.lane.b32.xlu0 %v2851_v32, %s2628_s25 }
 0xa5b   :  { %v723_v51 = vpop.xlane.xlu1 %722 }
 0xa5c   :  { %v724_v40 = vsub.f32 %v720_v41, %v723_v51 }
 0xa5e   :  { %v725_v52 = vmul.f32 1.442695, %v724_v40 }
 0xa60   :  { %2529 = vpow2.f32 %v725_v52 }
 0xa61   :  { %v2914_v61 = vpop.f32.mrf.mxu3 }
 0xa63   :  { %v849_v53 = vpop.xlane.xlu0 %848 }
 0xa64   :  { %v850_v54 = vsub.f32 %v846_v45, %v849_v53 }
 0xa66   :  { %v2530_v55 = vpop.eup %2529  ;;  %v851_v56 = vmul.f32 1.442695, %v850_v54 }
 0xa67   :  { %v727_v57 = vsel %vm183_vm7, %v2530_v55, 0.0 }
 0xa68   :  { %2531 = vpow2.f32 %v851_v56  ;;  %728 = vadd.xlane.f32.xlu2 %v727_v57 }
 0xa69   :  { %v946_v62 = vpop.f32.mrf.mxu3 }
 0xa6a   :  { %v949_v63 = vmul.f32 0.35355338, %v946_v62 }
 0xa6c   :  { %v950_v0 = vadd.f32 %v949_v63, %v2872_v49 }
 0xa6e   :  { %v2532_v59 = vpop.eup %2531  ;;  %v951_v1 = vsel %vm183_vm7, %v950_v0, -inf }
 0xa6f   :  { %v853_v47 = vsel %vm183_vm7, %v2532_v59, 0.0 }
 0xa70   :  { %854 = vadd.xlane.f32.xlu1 %v853_v47 }
 0xa76   :  { %v746_v60 = vpop.permute.xlu0 %745 }
 0xa77   :  { %766 = vmatpush.msrb.mxu1 %v746_v60 }
 0xa80   :  { %871 = vrot.lane.b32.xlu2 %v2851_v32, %s2632_s3 }
 0xa89   :  { %1026 = vrot.lane.b32.xlu1 %v2770_v38, %s2633_s29 }
 0xaa9   :  { %952 = vmax.xlane.f32.xlu2 %v951_v1  ;;  %v1090_v1 = vld [vmem:[%s3337_s7 + $0x10] sm:$0xff] }
 0xadb   :  { %v729_v3 = vpop.xlane.xlu2 %728 }
 0xadc   :  { %2533 = vrcp.f32 %v729_v3  ;;  %v741_v9 = vand.u32 2147483648, %v729_v3  ;;  %v739_v10 = vand.u32 2147483647, %v729_v3  ;;  %vm735_vm3 = vweird.f32 %v729_v3 }
 0xade   :  { %v742_v15 = vor.u32 1.1754944e-38, %v741_v9  ;;  %vm740_vm5 = vcmp.eq.f32.partialorder %v739_v10, 8.507059e+37 }
 0xae2   :  { %v2534_v5 = vpop.eup %2533 }
 0xae3   :  { %v731_v2 = vmul.f32 %v2534_v5, %v729_v3  ;;  %v872_v7 = vpop.permute.xlu2 %871  ;;  %v855_v21 = vpop.xlane.xlu1 %854  ;;  %vm736_vm1 = vweird.f32 %v2534_v5  ;;  %v1089_v3 = vld [vmem:[%s3337_s7 + $0x8] sm:$0xff] }
 0xae4   :  { %2535 = vrcp.f32 %v855_v21  ;;  %892 = vmatpush.msra.mxu1 %v872_v7  ;;  %vm737_vm4 = vmor %vm735_vm3, %vm736_vm1  ;;  %v867_v33 = vand.u32 2147483648, %v855_v21  ;;  %v865_v24 = vand.u32 2147483647, %v855_v21  ;;  %vm861_vm8 = vweird.f32 %v855_v21 }
 0xae5   :  { %v732_v8 = vsub.f32 1.0, %v731_v2  ;;  %vm1132_vm3 = vcmask 523264  }
 0xae6   :  { %v868_v26 = vor.u32 1.1754944e-38, %v867_v33  ;;  %vm866_vm10 = vcmp.eq.f32.partialorder %v865_v24, 8.507059e+37  ;;  %v1130_v33 = vld [vmem:[%s3338_s8 + $0x30] sm:$0xff]  ;;  %v1129_v24 = vld [vmem:[%s3338_s8 + $0x28] sm:$0xff] }
 0xae7   :  { %v733_v38 = vmul.f32 %v2534_v5, %v732_v8 }
 0xae9   :  { %v734_v11 = vadd.f32 %v2534_v5, %v733_v38 }
 0xaea   :  { %v2536_v12 = vpop.eup %2535 }
 0xaeb   :  { %v738_v6 = vsel %vm737_vm4, %v2534_v5, %v734_v11  ;;  %v857_v16 = vmul.f32 %v2536_v12, %v855_v21  ;;  %vm862_vm6 = vweird.f32 %v2536_v12  ;;  %v1088_v5 = vld [vmem:[%s3337_s7] sm:$0xff] }
 0xaec   :  { %v743_v22 = vsel %vm740_vm5, %v742_v15, %v738_v6  ;;  %vm863_vm9 = vmor %vm861_vm8, %vm862_vm6 }
 0xaed   :  { %v858_v17 = vsub.f32 1.0, %v857_v16  ;;  %v744_v18 = vmul.f32 %v2530_v55, %v743_v22 }
 0xaef   :  { %v859_v23 = vmul.f32 %v2536_v12, %v858_v17  ;;  %2406 = vmatmul.msk.f32.vlgmr.msrb.gmra.mxu1 %vm183_vm7, %v744_v18  ;;  %v1131_v18 = vld [vmem:[%s3338_s8 + $0x38] sm:$0xff] }
 0xaf0   :  { %1019 = vmatpush.msrb.mxu1 %v2895_v35  ;;  %1147 = vmatpush.msrb.mxu3 %v1131_v18 }
 0xaf1   :  { %v860_v25 = vadd.f32 %v2536_v12, %v859_v23  ;;  %v2973_v23 = vld [vmem:[%s3339_s9] ss:$0 sm:$0xff] }
 0xaf2   :  { %1148 = vmatpush.msrb.mxu3 %v1130_v33 }
 0xaf3   :  { %v864_v27 = vsel %vm863_vm9, %v2536_v12, %v860_v25  ;;  %v1128_v25 = vld [vmem:[%s3338_s8 + $0x20] sm:$0xff] }
 0xaf4   :  { %v869_v28 = vsel %vm866_vm10, %v868_v26, %v864_v27  ;;  %1149 = vmatpush.msrb.mxu3 %v1129_v24  ;;  %v1127_v26 = vld [vmem:[%s3338_s8 + $0x18] sm:$0xff] }
 0xaf5   :  { %v870_v29 = vmul.f32 %v2532_v59, %v869_v28  ;;  %v1126_v28 = vld [vmem:[%s3338_s8 + $0x10] sm:$0xff] }
 0xaf6   :  { %1150 = vmatpush.msrb.mxu3 %v1128_v25 }
 0xaf7   :  { %2411 = vmatmul.msk.f32.vlgmr.msra.gmra.mxu1 %vm183_vm7, %v870_v29  ;;  %v1125_v29 = vld [vmem:[%s3338_s8 + $0x8] sm:$0xff] }
 0xaf8   :  { %1151 = vmatpush.msrb.mxu3 %v1127_v26 }
 0xafa   :  { %1152 = vmatpush.msrb.mxu3 %v1126_v28 }
 0xafb   :  { %v2922_v31 = vpop.permute.xlu1 %1026 }
 0xafc   :  { %v1029_v19 = vadd.f32 %v2922_v31, %v610_v30  ;;  %1153 = vmatpush.msrb.mxu3 %v1125_v29 }
 0xafe   :  { %v2926_v34 = vadd.f32 %v1029_v19, %v2717_v4  ;;  %v2936_v4 = vld [vmem:[%s3334_s4 + $0x1] ss:$0 sm:$0xff]  ;;  %1154 = vmatpush.msrb.mxu3 %v1124_v20 }
 0xaff   :  { %1082 = vrot.lane.b32.xlu2 %v2936_v4, %s2624_s28 }
 0xb00   :  { %v1034_v35 = vsel %vm84_vm2, %v2926_v34, 0.0 }
 0xb01   :  { %1035 = vadd.xlane.f32.xlu0 %v1034_v35 }
 0xb1c   :  { %v953_v36 = vpop.xlane.xlu2 %952 }
 0xb1d   :  { %v954_v14 = vsub.f32 %v950_v0, %v953_v36  ;;  %v1091_v0 = vld [vmem:[%s3337_s7 + $0x18] sm:$0xff] }
 0xb1f   :  { %v955_v37 = vmul.f32 1.442695, %v954_v14 }
 0xb21   :  { %2537 = vpow2.f32 %v955_v37 }
 0xb27   :  { %v2538_v39 = vpop.eup %2537 }
 0xb28   :  { %v957_v41 = vsel %vm183_vm7, %v2538_v39, 0.0 }
 0xb29   :  { %958 = vadd.xlane.f32.xlu0 %v957_v41 }
 0xb3d   :  { %975 = vrot.lane.b32.xlu0 %v2851_v32, %s2635_s13 }
 0xb59   :  { %v2960_v6 = vpop.permute.xlu2 %1082 }
 0xb6c   :  { %v768_v46 = vpop.f32.mrf.mxu1 }
 0xb6d   :  { %2407 = vmatmul.msk.f32.vlgmr.msrb.gmra.mxu0 %vm183_vm7, %v768_v46 }
 0xb6e   :  { %1111 = vmatpush.msrb.mxu0 %v1091_v0 }
 0xb70   :  { %1112 = vmatpush.msrb.mxu0 %v1090_v1 }
 0xb72   :  { %1113 = vmatpush.msrb.mxu0 %v1089_v3 }
 0xb74   :  { %v894_v42 = vpop.f32.mrf.mxu1  ;;  %v1036_v43 = vpop.xlane.xlu0 %1035  ;;  %1114 = vmatpush.msrb.mxu0 %v1088_v5 }
 0xb75   :  { %v1040_v44 = vmul.f32 %v1036_v43, %v2728_v13  ;;  %2412 = vmatmul.msk.f32.vlgmr.msra.gmra.mxu0 %vm183_vm7, %v894_v42 }
 0xb77   :  { %v1042_v45 = vsub.f32 %v2926_v34, %v1040_v44 }
 0xb79   :  { %v1044_v32 = vmul.f32 %v1042_v45, %v1042_v45  ;;  %v1055_v15 = vmul.f32 %v2936_v4, %v1042_v45 }
 0xb7b   :  { %v1046_v50 = vsel %vm84_vm2, %v1044_v32, 0.0 }
 0xb7c   :  { %1047 = vadd.xlane.f32.xlu1 %v1046_v50 }
 0xb95   :  { %1165 = vrot.lane.b32.xlu1 %v2973_v23, %s2625_s22 }
 0xb9c   :  { %v959_v51 = vpop.xlane.xlu0 %958 }
 0xb9d   :  { %2539 = vrcp.f32 %v959_v51  ;;  %v971_v54 = vand.u32 2147483648, %v959_v51  ;;  %v969_v56 = vand.u32 2147483647, %v959_v51  ;;  %vm965_vm12 = vweird.f32 %v959_v51 }
 0xb9f   :  { %v972_v59 = vor.u32 1.1754944e-38, %v971_v54  ;;  %vm970_vm14 = vcmp.eq.f32.partialorder %v969_v56, 8.507059e+37 }
 0xba3   :  { %v2540_v40 = vpop.eup %2539 }
 0xba4   :  { %v961_v52 = vmul.f32 %v2540_v40, %v959_v51  ;;  %vm966_vm11 = vweird.f32 %v2540_v40 }
 0xba5   :  { %vm967_vm13 = vmor %vm965_vm12, %vm966_vm11 }
 0xba6   :  { %v962_v53 = vsub.f32 1.0, %v961_v52 }
 0xba8   :  { %v963_v55 = vmul.f32 %v2540_v40, %v962_v53 }
 0xbaa   :  { %v964_v57 = vadd.f32 %v2540_v40, %v963_v55 }
 0xbac   :  { %v968_v47 = vsel %vm967_vm13, %v2540_v40, %v964_v57 }
 0xbad   :  { %v973_v60 = vsel %vm970_vm14, %v972_v59, %v968_v47 }
 0xbae   :  { %v974_v62 = vmul.f32 %v2538_v39, %v973_v60 }
 0xbaf   :  { %v976_v63 = vpop.permute.xlu0 %975 }
 0xbb0   :  { %996 = vmatpush.msrb.mxu2 %v976_v63 }
 0xbb1   :  { %2415 = vmatmul.msk.f32.vlgmr.msrb.gmra.mxu2 %vm183_vm7, %v974_v62 }
 0xbea   :  { %v791_v30 = vpop.f32.mrf.mxu0 }
 0xbeb   :  { %v815_v37 = vadd.f32 %v2914_v61, %v791_v30 }
 0xbef   :  { %v1048_v2 = vpop.xlane.xlu1 %1047 }
 0xbf0   :  { %v1052_v7 = vmul.f32 %v1048_v2, %v2728_v13 }
 0xbf2   :  { %v1057_v21 = vadd.f32 1e-06, %v1052_v7  ;;  %v917_v19 = vpop.f32.mrf.mxu0 }
 0xbf3   :  { %v920_v39 = vadd.f32 %v917_v19, %v815_v37 }
 0xbf4   :  { %2541 = vrsqrt.f32 %v1057_v21  ;;  %vm1065_vm0 = vweird.f32 %v1057_v21 }
 0xbfa   :  { %v2542_v8 = vpop.eup %2541 }
 0xbfb   :  { %v1060_v9 = vmul.f32 %v2542_v8, %v1057_v21  ;;  %vm1066_vm15 = vweird.f32 %v2542_v8 }
 0xbfc   :  { %vm1067_vm1 = vmor %vm1065_vm0, %vm1066_vm15 }
 0xbfd   :  { %v1061_v38 = vmul.f32 %v2542_v8, %v1060_v9 }
 0xbff   :  { %v1062_v10 = vmul.f32 0.5, %v1061_v38  ;;  %v3033_v38 = vld [vmem:[%s3335_s5 + $0x38] sm:$0xff] }
 0xc00   :  { %1249 = vmatpush.msra.mxu2 %v3033_v38 }
 0xc01   :  { %v1063_v11 = vsub.f32 1.5, %v1062_v10  ;;  %v2423_v10 = vld [vmem:[%s3335_s5 + $0x30] sm:$0xff] }
 0xc02   :  { %1250 = vmatpush.msra.mxu2 %v2423_v10 }
 0xc03   :  { %v1064_v12 = vmul.f32 %v2542_v8, %v1063_v11  ;;  %v2421_v11 = vld [vmem:[%s3335_s5 + $0x20] sm:$0xff] }
 0xc05   :  { %v1068_v16 = vsel %vm1067_vm1, %v2542_v8, %v1064_v12 }
 0xc06   :  { %v1079_v22 = vmul.f32 %v1068_v16, %v1055_v15 }
 0xc07   :  { %v3005_v32 = vpop.permute.xlu1 %1165 }
 0xc08   :  { %v1085_v17 = vadd.f32 %v2960_v6, %v1079_v22 }
 0xc0a   :  { %2417 = vmatmul.msk.f32.vlgmr.msrb.gmra.mxu0 %vm84_vm2, %v1085_v17 }
 0xc34   :  { %v998_v27 = vpop.f32.mrf.mxu2 }
 0xc35   :  { %2416 = vmatmul.msk.f32.vlgmr.msrb.gmra.mxu1 %vm183_vm7, %v998_v27 }
 0xc87   :  { %v1116_v35 = vpop.f32.mrf.mxu0 }
 0xc88   :  { %v1117_v36 = vadd.f32 %v2973_v23, %v1116_v35  ;;  %v3059_v35 = vld [vmem:[%s3336_s6 + $0x1] ss:$0 sm:$0xff] }
 0xc8a   :  { %v1122_v14 = vmax.f32 %v1117_v36, 0.0 }
 0xc8c   :  { %2419 = vmatmul.msk.f32.vlgmr.msrb.gmra.mxu3 %vm1132_vm3, %v1122_v14 }
 0xcb2   :  { %v1021_v41 = vpop.f32.mrf.mxu1 }
 0xcb3   :  { %v1024_v46 = vadd.f32 %v1021_v41, %v920_v39 }
 0xcb5   :  { %v1030_v42 = vadd.f32 %v2922_v31, %v1024_v46 }
 0xcb7   :  { %v3001_v43 = vadd.f32 %v1030_v42, %v2805_v58 }
 0xcb9   :  { %v1037_v44 = vsel %vm84_vm2, %v3001_v43, 0.0 }
 0xcba   :  { %1038 = vadd.xlane.f32.xlu2 %v1037_v44 }
 0xd0f   :  { %v1156_v45 = vpop.f32.mrf.mxu3 }
 0xd10   :  { %v1162_v50 = vadd.f32 %v1156_v45, %v2926_v34  ;;  %v3019_v34 = vld [vmem:[%s3334_s4 + $0x2] ss:$0 sm:$0xff] }
 0xd12   :  { %v3009_v51 = vadd.f32 %v3005_v32, %v1162_v50 }
 0xd14   :  { %v1171_v61 = vsel %vm84_vm2, %v3009_v51, 0.0 }
 0xd15   :  { %1172 = vadd.xlane.f32.xlu0 %v1171_v61 }
 0xd29   :  { %1219 = vrot.lane.b32.xlu0 %v3019_v34, %s2624_s28 }
 0xd2d   :  { %v1039_v31 = vpop.xlane.xlu2 %1038 }
 0xd2e   :  { %v1041_v58 = vmul.f32 %v1039_v31, %v2728_v13 }
 0xd30   :  { %v1043_v40 = vsub.f32 %v3001_v43, %v1041_v58 }
 0xd32   :  { %v1045_v52 = vmul.f32 %v1043_v40, %v1043_v40  ;;  %v1056_v7 = vmul.f32 %v2936_v4, %v1043_v40  ;;  %v3042_v4 = vld [vmem:[%s3335_s5 + $0x28] sm:$0xff] }
 0xd33   :  { %1251 = vmatpush.msra.mxu2 %v3042_v4 }
 0xd34   :  { %v1049_v53 = vsel %vm84_vm2, %v1045_v52, 0.0 }
 0xd35   :  { %1050 = vadd.xlane.f32.xlu2 %v1049_v53  ;;  %1252 = vmatpush.msra.mxu2 %v2421_v11 }
 0xd88   :  { %v1173_v54 = vpop.xlane.xlu0 %1172 }
 0xd89   :  { %v1177_v55 = vmul.f32 %v1173_v54, %v2728_v13 }
 0xd8b   :  { %v1179_v56 = vsub.f32 %v3009_v51, %v1177_v55 }
 0xd8d   :  { %v1181_v57 = vmul.f32 %v1179_v56, %v1179_v56  ;;  %v1192_v25 = vmul.f32 %v3019_v34, %v1179_v56 }
 0xd8f   :  { %v1183_v59 = vsel %vm84_vm2, %v1181_v57, 0.0 }
 0xd90   :  { %1184 = vadd.xlane.f32.xlu1 %v1183_v59 }
 0xd9b   :  { %v3050_v27 = vpop.permute.xlu0 %1219 }
 0xda8   :  { %v1051_v47 = vpop.xlane.xlu2 %1050 }
 0xda9   :  { %v1053_v60 = vmul.f32 %v1051_v47, %v2728_v13 }
 0xdab   :  { %v1058_v62 = vadd.f32 1e-06, %v1053_v60 }
 0xdad   :  { %2543 = vrsqrt.f32 %v1058_v62  ;;  %vm1075_vm5 = vweird.f32 %v1058_v62 }
 0xdb3   :  { %v2544_v63 = vpop.eup %2543 }
 0xdb4   :  { %v1070_v0 = vmul.f32 %v2544_v63, %v1058_v62  ;;  %vm1076_vm4 = vweird.f32 %v2544_v63 }
 0xdb5   :  { %vm1077_vm6 = vmor %vm1075_vm5, %vm1076_vm4 }
 0xdb6   :  { %v1071_v1 = vmul.f32 %v2544_v63, %v1070_v0 }
 0xdb8   :  { %v1072_v3 = vmul.f32 0.5, %v1071_v1 }
 0xdba   :  { %v1073_v5 = vsub.f32 1.5, %v1072_v3 }
 0xdbc   :  { %v1074_v2 = vmul.f32 %v2544_v63, %v1073_v5 }
 0xdbe   :  { %v1078_v21 = vsel %vm1077_vm6, %v2544_v63, %v1074_v2 }
 0xdbf   :  { %v1080_v8 = vmul.f32 %v1078_v21, %v1056_v7 }
 0xdc1   :  { %v1086_v9 = vadd.f32 %v2960_v6, %v1080_v8 }
 0xdc3   :  { %2418 = vmatmul.msk.f32.gmra.mxu0 %vm84_vm2, %v1086_v9 }
 0xe03   :  { %v1185_v12 = vpop.xlane.xlu1 %1184 }
 0xe04   :  { %v1189_v15 = vmul.f32 %v1185_v12, %v2728_v13 }
 0xe06   :  { %v1194_v6 = vadd.f32 1e-06, %v1189_v15 }
 0xe08   :  { %2545 = vrsqrt.f32 %v1194_v6  ;;  %vm1202_vm9 = vweird.f32 %v1194_v6 }
 0xe0e   :  { %v2546_v16 = vpop.eup %2545 }
 0xe0f   :  { %v1197_v22 = vmul.f32 %v2546_v16, %v1194_v6  ;;  %vm1203_vm8 = vweird.f32 %v2546_v16 }
 0xe10   :  { %vm1204_vm10 = vmor %vm1202_vm9, %vm1203_vm8 }
 0xe11   :  { %v1198_v17 = vmul.f32 %v2546_v16, %v1197_v22 }
 0xe13   :  { %v1199_v18 = vmul.f32 0.5, %v1198_v17 }
 0xe15   :  { %v1200_v33 = vsub.f32 1.5, %v1199_v18 }
 0xe17   :  { %v1201_v24 = vmul.f32 %v2546_v16, %v1200_v33 }
 0xe19   :  { %v1205_v26 = vsel %vm1204_vm10, %v2546_v16, %v1201_v24 }
 0xe1a   :  { %v1216_v28 = vmul.f32 %v1205_v26, %v1192_v25 }
 0xe1c   :  { %v1222_v29 = vadd.f32 %v3050_v27, %v1216_v28 }
 0xe1e   :  { %2425 = vmatmul.msk.f32.vlgmr.msra.gmra.mxu2 %vm84_vm2, %v1222_v29 }
 0xe40   :  { %v1119_v20 = vpop.f32.mrf.mxu0 }
 0xe41   :  { %v1120_v30 = vadd.f32 %v2973_v23, %v1119_v20 }
 0xe43   :  { %v1123_v19 = vmax.f32 %v1120_v30, 0.0 }
 0xe45   :  { %2420 = vmatmul.msk.f32.gmra.mxu3 %vm1132_vm3, %v1123_v19 }
 0xea1   :  { %v1254_v36 = vpop.f32.mrf.mxu2 }
 0xea2   :  { %v3062_v14 = vadd.f32 %v3059_v35, %v1254_v36 }
 0xea4   :  { %1339 = vrot.lane.b32.xlu0 %v3062_v14, %s2627_s1  ;;  %1475 = vrot.lane.b32.xlu1 %v3062_v14, %s2629_s26 }
 0xea5   :  { %1341 = vrot.lane.b32.xlu2 %v3062_v14, %s2626_s23 }
 0xeac   :  { %1473 = vrot.lane.b32.xlu0 %v3062_v14, %s2630_s2 }
 0xead   :  { %1261 = vrot.lane.b32.xlu2 %v3062_v14, %s2624_s28 }
 0xec8   :  { %v1159_v23 = vpop.f32.mrf.mxu3 }
 0xec9   :  { %v1163_v37 = vadd.f32 %v1159_v23, %v3001_v43 }
 0xecb   :  { %v3076_v39 = vadd.f32 %v3005_v32, %v1163_v37 }
 0xecd   :  { %v1174_v41 = vsel %vm84_vm2, %v3076_v39, 0.0 }
 0xece   :  { %1175 = vadd.xlane.f32.xlu1 %v1174_v41 }
 0xeff   :  { %v1342_v46 = vpop.permute.xlu2 %1341 }
 0xf00   :  { %2430 = vmatpush.xpose.msk.msra.mxu0 %vm183_vm7, %v1342_v46 }
 0xf07   :  { %v1262_v42 = vpop.permute.xlu2 %1261 }
 0xf08   :  { %2427 = vmatpush.xpose.msk.msra.mxu1 %vm183_vm7, %v1262_v42 }
 0xf0b   :  { %2428 = vmatmul.msk.f32.vlgmr.msra.gmra.mxu1 %vm183_vm7, %v3062_v14 }
 0xf16   :  { %v1340_v44 = vpop.permute.xlu0 %1339  ;;  %v1476_v45 = vpop.permute.xlu1 %1475 }
 0xf17   :  { %2431 = vmatmul.msk.f32.vlgmr.msra.gmra.mxu0 %vm183_vm7, %v1340_v44  ;;  %2435 = vmatpush.xpose.msk.msra.mxu3 %vm183_vm7, %v1476_v45 }
 0xf1e   :  { %v1474_v43 = vpop.permute.xlu0 %1473 }
 0xf1f   :  { %2436 = vmatmul.msk.f32.vlgmr.msra.gmra.mxu3 %vm183_vm7, %v1474_v43 }
 0xf41   :  { %v1176_v32 = vpop.xlane.xlu1 %1175 }
 0xf42   :  { %v1178_v50 = vmul.f32 %v1176_v32, %v2728_v13 }
 0xf44   :  { %v1180_v61 = vsub.f32 %v3076_v39, %v1178_v50 }
 0xf46   :  { %v1182_v31 = vmul.f32 %v1180_v61, %v1180_v61  ;;  %v1193_v7 = vmul.f32 %v3019_v34, %v1180_v61 }
 0xf48   :  { %v1186_v58 = vsel %vm84_vm2, %v1182_v31, 0.0 }
 0xf49   :  { %1187 = vadd.xlane.f32.xlu1 %v1186_v58 }
 0xf62   :  { %1393 = vrot.lane.b32.xlu1 %v3062_v14, %s2628_s25 }
 0xf6a   :  { %1554 = vrot.lane.b32.xlu1 %v2423_v10, %s2633_s29 }
 0xf72   :  { %1447 = vrot.lane.b32.xlu1 %v2421_v11, %s2633_s29 }
 0xf7a   :  { %1581 = vrot.lane.b32.xlu1 %v3062_v14, %s2634_s30 }
 0xf88   :  { %v1284_v24 = vpop.f32.mrf.mxu1 }
 0xf89   :  { %v1287_v26 = vmul.f32 0.35355338, %v1284_v24 }
 0xf8b   :  { %v1288_v28 = vadd.f32 %v1287_v26, %v2791_v48 }
 0xf8d   :  { %v1289_v29 = vsel %vm183_vm7, %v1288_v28, -inf }
 0xf94   :  { %v1364_v40 = vpop.f32.mrf.mxu0 }
 0xf95   :  { %v1367_v52 = vmul.f32 0.35355338, %v1364_v40 }
 0xf97   :  { %v1368_v53 = vadd.f32 %v1367_v52, %v2791_v48 }
 0xf99   :  { %v1369_v54 = vsel %vm183_vm7, %v1368_v53, -inf }
 0xf9a   :  { %1370 = vmax.xlane.f32.xlu0 %v1369_v54 }
 0xfa2   :  { %v1498_v55 = vpop.f32.mrf.mxu3 }
 0xfa3   :  { %v1501_v56 = vmul.f32 0.35355338, %v1498_v55 }
 0xfa5   :  { %v1502_v57 = vadd.f32 %v1501_v56, %v2791_v48 }
 0xfa7   :  { %v1503_v59 = vsel %vm183_vm7, %v1502_v57, -inf }
 0xfa8   :  { %1504 = vmax.xlane.f32.xlu2 %v1503_v59 }
 0xfbc   :  { %v1188_v47 = vpop.xlane.xlu1 %1187 }
 0xfbd   :  { %v1190_v60 = vmul.f32 %v1188_v47, %v2728_v13 }
 0xfbf   :  { %v1195_v62 = vadd.f32 1e-06, %v1190_v60 }
 0xfc1   :  { %2547 = vrsqrt.f32 %v1195_v62  ;;  %vm1212_vm12 = vweird.f32 %v1195_v62 }
 0xfc7   :  { %v2548_v63 = vpop.eup %2547 }
 0xfc8   :  { %v1207_v0 = vmul.f32 %v2548_v63, %v1195_v62  ;;  %vm1213_vm11 = vweird.f32 %v2548_v63 }
 0xfc9   :  { %vm1214_vm13 = vmor %vm1212_vm12, %vm1213_vm11 }
 0xfca   :  { %v1208_v1 = vmul.f32 %v2548_v63, %v1207_v0 }
 0xfcc   :  { %v1209_v3 = vmul.f32 0.5, %v1208_v1 }
 0xfce   :  { %v1210_v5 = vsub.f32 1.5, %v1209_v3 }
 0xfd0   :  { %v1211_v2 = vmul.f32 %v2548_v63, %v1210_v5 }
 0xfd2   :  { %v1215_v21 = vsel %vm1214_vm13, %v2548_v63, %v1211_v2 }
 0xfd3   :  { %v1217_v8 = vmul.f32 %v1215_v21, %v1193_v7 }
 0xfd4   :  { %v1394_v9 = vpop.permute.xlu1 %1393 }
 0xfd5   :  { %1414 = vmatpush.msrb.mxu2 %v1394_v9  ;;  %v1223_v10 = vadd.f32 %v3050_v27, %v1217_v8 }
 0xfd7   :  { %2426 = vmatmul.msk.f32.gmra.mxu2 %vm84_vm2, %v1223_v10 }
 0xfdc   :  { %v3104_v11 = vpop.permute.xlu1 %1554 }
 0xfe4   :  { %v3106_v12 = vpop.permute.xlu1 %1447 }
 0xfe5   :  { %1468 = vmatpush.msrb.mxu0 %v3106_v12 }
 0xfec   :  { %v1582_v26 = vpop.permute.xlu1 %1581 }
0x100d   :  { %v1371_v15 = vpop.xlane.xlu0 %1370 }
0x100e   :  { %v1372_v6 = vsub.f32 %v1368_v53, %v1371_v15 }
0x1010   :  { %v1373_v16 = vmul.f32 1.442695, %v1372_v6 }
0x1012   :  { %2549 = vpow2.f32 %v1373_v16 }
0x1018   :  { %v2550_v34 = vpop.eup %2549 }
0x1019   :  { %v1375_v22 = vsel %vm183_vm7, %v2550_v34, 0.0 }
0x101a   :  { %1376 = vadd.xlane.f32.xlu0 %v1375_v22 }
0x101b   :  { %v1505_v17 = vpop.xlane.xlu2 %1504 }
0x101c   :  { %v1506_v18 = vsub.f32 %v1502_v57, %v1505_v17 }
0x101e   :  { %v1507_v33 = vmul.f32 1.442695, %v1506_v18 }
0x1020   :  { %2551 = vpow2.f32 %v1507_v33 }
0x1026   :  { %v2552_v25 = vpop.eup %2551 }
0x1027   :  { %v1509_v27 = vsel %vm183_vm7, %v2552_v25, 0.0 }
0x1028   :  { %1510 = vadd.xlane.f32.xlu2 %v1509_v27 }
0x102e   :  { %1527 = vrot.lane.b32.xlu0 %v3062_v14, %s2632_s3 }
0x1030   :  { %1290 = vmax.xlane.f32.xlu2 %v1289_v29 }
0x1036   :  { %1420 = vrot.lane.b32.xlu0 %v3042_v4, %s2633_s29 }
0x105a   :  { %v1257_v20 = vpop.f32.mrf.mxu2 }
0x105b   :  { %v3118_v30 = vadd.f32 %v3059_v35, %v1257_v20 }
0x105d   :  { %1742 = vrot.lane.b32.xlu1 %v3118_v30, %s2625_s22  ;;  %1690 = vrot.lane.b32.xlu0 %v3118_v30, %s2624_s28 }
0x1065   :  { %1583 = vrot.lane.b32.xlu0 %v3062_v14, %s2631_s27 }
0x108d   :  { %v1377_v19 = vpop.xlane.xlu0 %1376 }
0x108e   :  { %2553 = vrcp.f32 %v1377_v19  ;;  %v1389_v41 = vand.u32 2147483648, %v1377_v19  ;;  %v1387_v46 = vand.u32 2147483647, %v1377_v19  ;;  %vm1383_vm15 = vweird.f32 %v1377_v19 }
0x1090   :  { %v1390_v45 = vor.u32 1.1754944e-38, %v1389_v41  ;;  %vm1388_vm1 = vcmp.eq.f32.partialorder %v1387_v46, 8.507059e+37 }
0x1094   :  { %v2554_v36 = vpop.eup %2553 }
0x1095   :  { %v1379_v23 = vmul.f32 %v2554_v36, %v1377_v19  ;;  %vm1384_vm14 = vweird.f32 %v2554_v36 }
0x1096   :  { %vm1385_vm0 = vmor %vm1383_vm15, %vm1384_vm14 }
0x1097   :  { %v1380_v37 = vsub.f32 1.0, %v1379_v23 }
0x1099   :  { %v1381_v4 = vmul.f32 %v2554_v36, %v1380_v37 }
0x109b   :  { %v1382_v42 = vadd.f32 %v2554_v36, %v1381_v4  ;;  %v1511_v44 = vpop.xlane.xlu2 %1510 }
0x109c   :  { %2555 = vrcp.f32 %v1511_v44  ;;  %v1523_v54 = vand.u32 2147483648, %v1511_v44  ;;  %v1521_v57 = vand.u32 2147483647, %v1511_v44  ;;  %vm1517_vm5 = vweird.f32 %v1511_v44 }
0x109d   :  { %v1386_v43 = vsel %vm1385_vm0, %v2554_v36, %v1382_v42 }
0x109e   :  { %v1391_v32 = vsel %vm1388_vm1, %v1390_v45, %v1386_v43  ;;  %v1524_v47 = vor.u32 1.1754944e-38, %v1523_v54  ;;  %vm1522_vm8 = vcmp.eq.f32.partialorder %v1521_v57, 8.507059e+37 }
0x109f   :  { %v1392_v50 = vmul.f32 %v2550_v34, %v1391_v32 }
0x10a0   :  { %v1528_v61 = vpop.permute.xlu0 %1527 }
0x10a1   :  { %2432 = vmatmul.msk.f32.vlgmr.msrb.gmra.mxu2 %vm183_vm7, %v1392_v50 }
0x10a2   :  { %v2556_v31 = vpop.eup %2555  ;;  %1548 = vmatpush.msra.mxu2 %v1528_v61 }
0x10a3   :  { %v1513_v58 = vmul.f32 %v2556_v31, %v1511_v44  ;;  %v1291_v40 = vpop.xlane.xlu2 %1290  ;;  %vm1518_vm4 = vweird.f32 %v2556_v31 }
0x10a4   :  { %v1292_v52 = vsub.f32 %v1288_v28, %v1291_v40  ;;  %vm1519_vm6 = vmor %vm1517_vm5, %vm1518_vm4 }
0x10a5   :  { %v1514_v53 = vsub.f32 1.0, %v1513_v58 }
0x10a6   :  { %v1293_v55 = vmul.f32 1.442695, %v1292_v52 }
0x10a7   :  { %v1515_v56 = vmul.f32 %v2556_v31, %v1514_v53 }
0x10a8   :  { %2557 = vpow2.f32 %v1293_v55  ;;  %v1421_v3 = vpop.permute.xlu0 %1420 }
0x10a9   :  { %v1516_v59 = vadd.f32 %v2556_v31, %v1515_v56 }
0x10ab   :  { %v1520_v60 = vsel %vm1519_vm6, %v2556_v31, %v1516_v59 }
0x10ac   :  { %v1525_v62 = vsel %vm1522_vm8, %v1524_v47, %v1520_v60 }
0x10ad   :  { %v1526_v63 = vmul.f32 %v2552_v25, %v1525_v62 }
0x10ae   :  { %v2558_v0 = vpop.eup %2557 }
0x10af   :  { %2437 = vmatmul.msk.f32.vlgmr.msra.gmra.mxu2 %vm183_vm7, %v1526_v63  ;;  %v1295_v1 = vsel %vm183_vm7, %v2558_v0, 0.0 }
0x10b0   :  { %1296 = vadd.xlane.f32.xlu2 %v1295_v1 }
0x10c8   :  { %1313 = vrot.lane.b32.xlu2 %v3062_v14, %s2625_s22 }
0x10cf   :  { %v1691_v5 = vpop.permute.xlu0 %1690  ;;  %v1743_v28 = vpop.permute.xlu1 %1742 }
0x10d7   :  { %v1584_v2 = vpop.permute.xlu0 %1583 }
0x10d8   :  { %2439 = vmatpush.xpose.msk.msra.mxu0 %vm183_vm7, %v1584_v2 }
0x1123   :  { %v1297_v7 = vpop.xlane.xlu2 %1296 }
0x1124   :  { %2559 = vrcp.f32 %v1297_v7  ;;  %v1309_v15 = vand.u32 2147483648, %v1297_v7  ;;  %v1307_v16 = vand.u32 2147483647, %v1297_v7  ;;  %vm1303_vm10 = vweird.f32 %v1297_v7  ;;  %v1416_v24 = vpop.f32.mrf.mxu2 }
0x1126   :  { %v1310_v22 = vor.u32 1.1754944e-38, %v1309_v15  ;;  %vm1308_vm12 = vcmp.eq.f32.partialorder %v1307_v16, 8.507059e+37 }
0x112a   :  { %v2560_v21 = vpop.eup %2559 }
0x112b   :  { %v1299_v8 = vmul.f32 %v2560_v21, %v1297_v7  ;;  %v1314_v9 = vpop.permute.xlu2 %1313  ;;  %vm1304_vm9 = vweird.f32 %v2560_v21 }
0x112c   :  { %1334 = vmatpush.msrb.mxu1 %v1314_v9  ;;  %vm1305_vm11 = vmor %vm1303_vm10, %vm1304_vm9 }
0x112d   :  { %v1300_v10 = vsub.f32 1.0, %v1299_v8 }
0x112e   :  { %1441 = vmatpush.msra.mxu1 %v1421_v3 }
0x112f   :  { %v1301_v6 = vmul.f32 %v2560_v21, %v1300_v10 }
0x1131   :  { %v1302_v34 = vadd.f32 %v2560_v21, %v1301_v6 }
0x1132   :  { %v1550_v25 = vpop.f32.mrf.mxu2 }
0x1133   :  { %v1306_v17 = vsel %vm1305_vm11, %v2560_v21, %v1302_v34 }
0x1134   :  { %v1311_v18 = vsel %vm1308_vm12, %v1310_v22, %v1306_v17 }
0x1135   :  { %v1312_v33 = vmul.f32 %v2558_v0, %v1311_v18 }
0x1137   :  { %2429 = vmatmul.msk.f32.vlgmr.msrb.gmra.mxu1 %vm183_vm7, %v1312_v33 }
0x1138   :  { %1575 = vmatpush.msrb.mxu1 %v3104_v11 }
0x113f   :  { %2433 = vmatmul.msk.f32.vlgmr.msra.gmra.mxu1 %vm183_vm7, %v1416_v24 }
0x1140   :  { %2443 = vmatpush.xpose.msk.msra.mxu1 %vm183_vm7, %v1691_v5 }
0x1147   :  { %2438 = vmatmul.msk.f32.vlgmr.msrb.gmra.mxu1 %vm183_vm7, %v1550_v25 }
0x1148   :  { %1866 = vmatpush.msrb.mxu1 %v1421_v3 }
0x114f   :  { %2444 = vmatmul.msk.f32.vlgmr.msra.gmra.mxu1 %vm183_vm7, %v3118_v30 }
0x1150   :  { %1992 = vmatpush.msra.mxu1 %v3104_v11 }
0x11b4   :  { %v1336_v27 = vpop.f32.mrf.mxu1 }
0x11b5   :  { %2434 = vmatmul.msk.f32.vlgmr.msrb.gmra.mxu0 %vm183_vm7, %v1336_v27 }
0x11b6   :  { %1763 = vmatpush.msrb.mxu0 %v1743_v28 }
0x11bc   :  { %v3141_v29 = vpop.f32.mrf.mxu1 }
0x11bd   :  { %2440 = vmatmul.msk.f32.vlgmr.msra.gmra.mxu0 %vm183_vm7, %v1582_v26 }
0x11be   :  { %1889 = vmatpush.msra.mxu0 %v3106_v12 }
0x11c4   :  { %v3145_v20 = vpop.f32.mrf.mxu1 }
0x11cc   :  { %v1713_v19 = vpop.f32.mrf.mxu1 }
0x11cd   :  { %v1716_v36 = vmul.f32 0.35355338, %v1713_v19 }
0x11cf   :  { %v1717_v23 = vadd.f32 %v1716_v36, %v2872_v49 }
0x11d1   :  { %v1718_v11 = vsel %vm183_vm7, %v1717_v23, -inf }
0x11d2   :  { %1719 = vmax.xlane.f32.xlu2 %v1718_v11 }
0x1232   :  { %v3149_v37 = vpop.f32.mrf.mxu0 }
0x123a   :  { %v1606_v41 = vpop.f32.mrf.mxu0 }
0x123b   :  { %v1609_v4 = vmul.f32 0.35355338, %v1606_v41 }
0x123d   :  { %v1610_v46 = vadd.f32 %v1609_v4, %v2791_v48 }
0x123f   :  { %v1611_v42 = vsel %vm183_vm7, %v1610_v46, -inf }
0x1240   :  { %1612 = vmax.xlane.f32.xlu1 %v1611_v42 }
0x1245   :  { %v1720_v44 = vpop.xlane.xlu2 %1719 }
0x1246   :  { %v1721_v12 = vsub.f32 %v1717_v23, %v1720_v44 }
0x1248   :  { %v1722_v45 = vmul.f32 1.442695, %v1721_v12 }
0x124a   :  { %2561 = vpow2.f32 %v1722_v45 }
0x1250   :  { %v2562_v43 = vpop.eup %2561 }
0x1251   :  { %v1724_v32 = vsel %vm183_vm7, %v2562_v43, 0.0 }
0x1252   :  { %1725 = vadd.xlane.f32.xlu0 %v1724_v32 }
0x1259   :  { %1768 = vrot.lane.b32.xlu1 %v3118_v30, %s2627_s1 }
0x1261   :  { %1998 = vrot.lane.b32.xlu1 %v3118_v30, %s2634_s30 }
0x1266   :  { %1635 = vrot.lane.b32.xlu0 %v3062_v14, %s2635_s13 }
0x126e   :  { %1896 = vrot.lane.b32.xlu0 %v3118_v30, %s2629_s26 }
0x1276   :  { %2000 = vrot.lane.b32.xlu0 %v3118_v30, %s2631_s27 }
0x12b3   :  { %v1613_v48 = vpop.xlane.xlu1 %1612 }
0x12b4   :  { %v1614_v50 = vsub.f32 %v1610_v46, %v1613_v48 }
0x12b6   :  { %v1615_v61 = vmul.f32 1.442695, %v1614_v50 }
0x12b8   :  { %2563 = vpow2.f32 %v1615_v61 }
0x12be   :  { %v2564_v31 = vpop.eup %2563 }
0x12bf   :  { %v1617_v58 = vsel %vm183_vm7, %v2564_v31, 0.0 }
0x12c0   :  { %1618 = vadd.xlane.f32.xlu2 %v1617_v58 }
0x12c5   :  { %v1726_v40 = vpop.xlane.xlu0 %1725 }
0x12c6   :  { %2565 = vrcp.f32 %v1726_v40  ;;  %v1738_v14 = vand.u32 2147483648, %v1726_v40  ;;  %v1736_v56 = vand.u32 2147483647, %v1726_v40  ;;  %vm1732_vm14 = vweird.f32 %v1726_v40 }
0x12c8   :  { %v1739_v59 = vor.u32 1.1754944e-38, %v1738_v14  ;;  %vm1737_vm0 = vcmp.eq.f32.partialorder %v1736_v56, 8.507059e+37 }
0x12cb   :  { %v1769_v17 = vpop.permute.xlu1 %1768 }
0x12cc   :  { %v2566_v52 = vpop.eup %2565 }
0x12cd   :  { %v1728_v53 = vmul.f32 %v2566_v52, %v1726_v40  ;;  %vm1733_vm13 = vweird.f32 %v2566_v52 }
0x12ce   :  { %vm1734_vm15 = vmor %vm1732_vm14, %vm1733_vm13 }
0x12cf   :  { %v1729_v54 = vsub.f32 1.0, %v1728_v53 }
0x12d1   :  { %v1730_v55 = vmul.f32 %v2566_v52, %v1729_v54 }
0x12d3   :  { %v1731_v57 = vadd.f32 %v2566_v52, %v1730_v55  ;;  %v1999_v24 = vpop.permute.xlu1 %1998 }
0x12d5   :  { %v1735_v47 = vsel %vm1734_vm15, %v2566_v52, %v1731_v57 }
0x12d6   :  { %v1740_v60 = vsel %vm1737_vm0, %v1739_v59, %v1735_v47 }
0x12d7   :  { %v1741_v62 = vmul.f32 %v2562_v43, %v1740_v60 }
0x12d8   :  { %1770 = vrot.lane.b32.xlu2 %v3118_v30, %s2626_s23  ;;  %v1636_v63 = vpop.permute.xlu0 %1635 }
0x12d9   :  { %1656 = vmatpush.msrb.mxu3 %v1636_v63  ;;  %2445 = vmatmul.msk.f32.vlgmr.msrb.gmra.mxu0 %vm183_vm7, %v1741_v62 }
0x12e0   :  { %1894 = vrot.lane.b32.xlu2 %v3118_v30, %s2630_s2  ;;  %v1897_v0 = vpop.permute.xlu0 %1896 }
0x12e8   :  { %v2001_v1 = vpop.permute.xlu0 %2000 }
0x12e9   :  { %2455 = vmatpush.xpose.msk.msrb.mxu0 %vm183_vm7, %v2001_v1 }
0x1333   :  { %v1619_v3 = vpop.xlane.xlu2 %1618 }
0x1334   :  { %2567 = vrcp.f32 %v1619_v3  ;;  %v1631_v8 = vand.u32 2147483648, %v1619_v3  ;;  %v1629_v10 = vand.u32 2147483647, %v1619_v3  ;;  %vm1625_vm4 = vweird.f32 %v1619_v3 }
0x1336   :  { %v1632_v6 = vor.u32 1.1754944e-38, %v1631_v8  ;;  %vm1630_vm6 = vcmp.eq.f32.partialorder %v1629_v10, 8.507059e+37 }
0x133a   :  { %v2568_v5 = vpop.eup %2567 }
0x133b   :  { %v1621_v2 = vmul.f32 %v2568_v5, %v1619_v3  ;;  %v1771_v7 = vpop.permute.xlu2 %1770  ;;  %vm1626_vm1 = vweird.f32 %v2568_v5 }
0x133c   :  { %2446 = vmatpush.xpose.msk.msra.mxu3 %vm183_vm7, %v1771_v7  ;;  %vm1627_vm5 = vmor %vm1625_vm4, %vm1626_vm1 }
0x133d   :  { %v1622_v21 = vsub.f32 1.0, %v1621_v2 }
0x133f   :  { %v1623_v9 = vmul.f32 %v2568_v5, %v1622_v21 }
0x1341   :  { %v1624_v15 = vadd.f32 %v2568_v5, %v1623_v9 }
0x1343   :  { %v1628_v16 = vsel %vm1627_vm5, %v2568_v5, %v1624_v15  ;;  %v1895_v18 = vpop.permute.xlu2 %1894 }
0x1344   :  { %v1633_v34 = vsel %vm1630_vm6, %v1632_v6, %v1628_v16 }
0x1345   :  { %v1634_v22 = vmul.f32 %v2564_v31, %v1633_v34 }
0x1347   :  { %2441 = vmatmul.msk.f32.vlgmr.msrb.gmra.mxu3 %vm183_vm7, %v1634_v22 }
0x1348   :  { %2451 = vmatpush.xpose.msk.msrb.mxu3 %vm183_vm7, %v1897_v0 }
0x134f   :  { %2447 = vmatmul.msk.f32.vlgmr.msra.gmra.mxu3 %vm183_vm7, %v1769_v17 }
0x1356   :  { %v1765_v33 = vpop.f32.mrf.mxu0 }
0x1357   :  { %2450 = vmatmul.msk.f32.vlgmr.msra.gmra.mxu0 %vm183_vm7, %v1765_v33  ;;  %2452 = vmatmul.msk.f32.vlgmr.msrb.gmra.mxu3 %vm183_vm7, %v1895_v18 }
0x135f   :  { %2456 = vmatmul.msk.f32.vlgmr.msrb.gmra.mxu0 %vm183_vm7, %v1999_v24 }
0x13ca   :  { %v3178_v25 = vpop.f32.mrf.mxu3 }
0x13d2   :  { %v1793_v26 = vpop.f32.mrf.mxu3 }
0x13d3   :  { %v1796_v27 = vmul.f32 0.35355338, %v1793_v26 }
0x13d4   :  { %v3180_v28 = vpop.f32.mrf.mxu0 }
0x13d5   :  { %v1797_v19 = vadd.f32 %v1796_v27, %v2872_v49 }
0x13d7   :  { %v1798_v36 = vsel %vm183_vm7, %v1797_v19, -inf }
0x13d8   :  { %1799 = vmax.xlane.f32.xlu0 %v1798_v36 }
0x13da   :  { %v1919_v23 = vpop.f32.mrf.mxu3 }
0x13db   :  { %v1922_v11 = vmul.f32 0.35355338, %v1919_v23 }
0x13dc   :  { %v2023_v41 = vpop.f32.mrf.mxu0 }
0x13dd   :  { %v2026_v4 = vmul.f32 0.35355338, %v2023_v41  ;;  %v1923_v46 = vadd.f32 %v1922_v11, %v2872_v49 }
0x13df   :  { %v1924_v42 = vsel %vm183_vm7, %v1923_v46, -inf  ;;  %v2027_v44 = vadd.f32 %v2026_v4, %v2872_v49 }
0x13e0   :  { %1925 = vmax.xlane.f32.xlu1 %v1924_v42 }
0x13e1   :  { %v2028_v12 = vsel %vm183_vm7, %v2027_v44, -inf }
0x13e2   :  { %2029 = vmax.xlane.f32.xlu2 %v2028_v12 }
0x144b   :  { %v1800_v45 = vpop.xlane.xlu0 %1799 }
0x144c   :  { %v1801_v43 = vsub.f32 %v1797_v19, %v1800_v45 }
0x144e   :  { %v1802_v32 = vmul.f32 1.442695, %v1801_v43 }
0x1450   :  { %2569 = vpow2.f32 %v1802_v32 }
0x1453   :  { %v1926_v48 = vpop.xlane.xlu1 %1925 }
0x1454   :  { %v1927_v50 = vsub.f32 %v1923_v46, %v1926_v48 }
0x1455   :  { %v2030_v61 = vpop.xlane.xlu2 %2029 }
0x1456   :  { %v3188_v31 = vpop.eup %2569  ;;  %v1928_v58 = vmul.f32 1.442695, %v1927_v50  ;;  %v2031_v40 = vsub.f32 %v2027_v44, %v2030_v61  ;;  %v1471_v44 = vadd.f32 %v3149_v37, %v3141_v29 }
0x1457   :  { %v1804_v52 = vsel %vm183_vm7, %v3188_v31, 0.0 }
0x1458   :  { %2571 = vpow2.f32 %v1928_v58  ;;  %v2032_v49 = vmul.f32 1.442695, %v2031_v40  ;;  %1805 = vadd.xlane.f32.xlu0 %v1804_v52  ;;  %v1580_v12 = vadd.f32 %v3145_v20, %v1471_v44 }
0x145a   :  { %2573 = vpow2.f32 %v2032_v49 }
0x145e   :  { %v3192_v53 = vpop.eup %2571 }
0x145f   :  { %v1930_v54 = vsel %vm183_vm7, %v3192_v53, 0.0 }
0x1460   :  { %v3196_v14 = vpop.eup %2573  ;;  %1931 = vadd.xlane.f32.xlu1 %v1930_v54 }
0x1461   :  { %v2034_v55 = vsel %vm183_vm7, %v3196_v14, 0.0 }
0x1462   :  { %2035 = vadd.xlane.f32.xlu2 %v2034_v55 }
0x146c   :  { %1662 = vrot.lane.b32.xlu0 %v3033_v38, %s2633_s29 }
0x1474   :  { %1948 = vrot.lane.b32.xlu0 %v3118_v30, %s2632_s3 }
0x1479   :  { %2052 = vrot.lane.b32.xlu1 %v3118_v30, %s2635_s13 }
0x147a   :  { %1822 = vrot.lane.b32.xlu2 %v3118_v30, %s2628_s25 }
0x1482   :  { %2103 = vrot.lane.b32.xlu2 %v3059_v35, %s2633_s29 }
0x14cb   :  { %v1806_v56 = vpop.xlane.xlu0 %1805 }
0x14cc   :  { %2575 = vrcp.f32 %v1806_v56  ;;  %v1818_v5 = vand.u32 2147483648, %v1806_v56  ;;  %vm1812_vm9 = vweird.f32 %v1806_v56  ;;  %v1816_v35 = vand.u32 2147483647, %v1806_v56 }
0x14ce   :  { %v1819_v15 = vor.u32 1.1754944e-38, %v1818_v5  ;;  %vm1817_vm12 = vcmp.eq.f32.partialorder %v1816_v35, 8.507059e+37 }
0x14d2   :  { %v2576_v57 = vpop.eup %2575 }
0x14d3   :  { %v1808_v59 = vmul.f32 %v2576_v57, %v1806_v56  ;;  %v1932_v47 = vpop.xlane.xlu1 %1931  ;;  %vm1813_vm8 = vweird.f32 %v2576_v57 }
0x14d4   :  { %2577 = vrcp.f32 %v1932_v47  ;;  %vm1814_vm10 = vmor %vm1812_vm9, %vm1813_vm8  ;;  %v1944_v33 = vand.u32 2147483648, %v1932_v47  ;;  %vm1938_vm0 = vweird.f32 %v1932_v47  ;;  %v1942_v26 = vand.u32 2147483647, %v1932_v47 }
0x14d5   :  { %v1809_v60 = vsub.f32 1.0, %v1808_v59  ;;  %v2036_v38 = vpop.xlane.xlu2 %2035 }
0x14d6   :  { %2579 = vrcp.f32 %v2036_v38  ;;  %v2048_v16 = vand.u32 2147483648, %v2036_v38  ;;  %vm2042_vm13 = vweird.f32 %v2036_v38  ;;  %v2046_v17 = vand.u32 2147483647, %v2036_v38 }
0x14d7   :  { %v1810_v62 = vmul.f32 %v2576_v57, %v1809_v60  ;;  %v1945_v11 = vor.u32 1.1754944e-38, %v1944_v33  ;;  %vm1943_vm5 = vcmp.eq.f32.partialorder %v1942_v26, 8.507059e+37  ;;  %v3241_v60 = vld [vmem:[%s3334_s4 + $0x3] ss:$0 sm:$0xff] }
0x14d8   :  { %v2049_v27 = vor.u32 1.1754944e-38, %v2048_v16  ;;  %vm2047_vm4 = vcmp.eq.f32.partialorder %v2046_v17, 8.507059e+37  ;;  %v2469_v26 = vld [vmem:[%s3338_s8 + $0x60] sm:$0xff] }
0x14d9   :  { %v1811_v3 = vadd.f32 %v2576_v57, %v1810_v62  ;;  %v2459_v62 = vld [vmem:[%s3337_s7 + $0x20] sm:$0xff] }
0x14da   :  { %v2578_v63 = vpop.eup %2577 }
0x14db   :  { %v1934_v0 = vmul.f32 %v2578_v63, %v1932_v47  ;;  %v1815_v8 = vsel %vm1814_vm10, %v2576_v57, %v1811_v3  ;;  %vm1939_vm14 = vweird.f32 %v2578_v63 }
0x14dc   :  { %v2580_v1 = vpop.eup %2579  ;;  %v1820_v34 = vsel %vm1817_vm12, %v1819_v15, %v1815_v8  ;;  %vm1940_vm1 = vmor %vm1938_vm0, %vm1939_vm14 }
0x14dd   :  { %v1935_v30 = vsub.f32 1.0, %v1934_v0  ;;  %v2038_v2 = vmul.f32 %v2580_v1, %v2036_v38  ;;  %v1823_v10 = vpop.permute.xlu2 %1822  ;;  %vm2043_vm11 = vweird.f32 %v2580_v1  ;;  %v2460_v38 = vld [vmem:[%s3337_s7 + $0x28] sm:$0xff]  ;;  %v2471_v0 = vld [vmem:[%s3338_s8 + $0x70] sm:$0xff] }
0x14de   :  { %v1663_v7 = vpop.permute.xlu0 %1662  ;;  %vm2044_vm15 = vmor %vm2042_vm13, %vm2043_vm11 }
0x14df   :  { %v2039_v21 = vsub.f32 1.0, %v2038_v2  ;;  %1683 = vmatpush.msrb.mxu2 %v1663_v7  ;;  %v1936_v9 = vmul.f32 %v2578_v63, %v1935_v30 }
0x14e0   :  { %2442 = vmatmul.msk.f32.vlgmr.msrb.gmra.mxu2 %vm183_vm7, %v3178_v25  ;;  %v1821_v25 = vmul.f32 %v3188_v31, %v1820_v34 }
0x14e1   :  { %v2040_v6 = vmul.f32 %v2580_v1, %v2039_v21  ;;  %1843 = vmatpush.msra.mxu2 %v1823_v10  ;;  %v1937_v18 = vadd.f32 %v2578_v63, %v1936_v9 }
0x14e3   :  { %v2041_v22 = vadd.f32 %v2580_v1, %v2040_v6  ;;  %v1941_v36 = vsel %vm1940_vm1, %v2578_v63, %v1937_v18  ;;  %v2472_v63 = vld [vmem:[%s3338_s8 + $0x78] sm:$0xff] }
0x14e4   :  { %v1946_v41 = vsel %vm1943_vm5, %v1945_v11, %v1941_v36  ;;  %2225 = vmatpush.msra.mxu0 %v2472_v63  ;;  %v2466_v36 = vld [vmem:[%s3338_s8 + $0x48] sm:$0xff]  ;;  %v2305_v63 = vld [vmem:[%s3340_s10 + $0x18] sm:$0xff] }
0x14e5   :  { %v2045_v24 = vsel %vm2044_vm15, %v2580_v1, %v2041_v22  ;;  %v1947_v42 = vmul.f32 %v3192_v53, %v1946_v41  ;;  %v2104_v43 = vpop.permute.xlu2 %2103 }
0x14e6   :  { %v1949_v19 = vpop.permute.xlu0 %1948  ;;  %v2050_v23 = vsel %vm2047_vm4, %v2049_v27, %v2045_v24  ;;  %2226 = vmatpush.msra.mxu0 %v2471_v0  ;;  %v2470_v24 = vld [vmem:[%s3338_s8 + $0x68] sm:$0xff]  ;;  %v2468_v27 = vld [vmem:[%s3338_s8 + $0x58] sm:$0xff]  ;;  %v2304_v0 = vld [vmem:[%s3340_s10 + $0x10] sm:$0xff] }
0x14e7   :  { %1969 = vmatpush.msrb.mxu2 %v1949_v19  ;;  %v2051_v46 = vmul.f32 %v3196_v14, %v2050_v23  ;;  %v2500_v19 = vld [vmem:[%s3339_s9 + $0x1] ss:$0 sm:$0xff] }
0x14e8   :  { %2448 = vmatmul.msk.f32.vlgmr.msra.gmra.mxu2 %vm183_vm7, %v1821_v25  ;;  %2227 = vmatpush.msra.mxu0 %v2470_v24  ;;  %v2467_v25 = vld [vmem:[%s3338_s8 + $0x50] sm:$0xff]  ;;  %v2465_v23 = vld [vmem:[%s3338_s8 + $0x40] sm:$0xff] }
0x14e9   :  { %2096 = vmatpush.msra.mxu2 %v1663_v7 }
0x14ea   :  { %2228 = vmatpush.msra.mxu0 %v2469_v26 }
0x14eb   :  { %v2053_v4 = vpop.permute.xlu1 %2052 }
0x14ec   :  { %2073 = vmatpush.msra.mxu3 %v2053_v4  ;;  %2229 = vmatpush.msra.mxu0 %v2468_v27 }
0x14ed   :  { %2457 = vmatmul.msk.f32.vlgmr.msra.gmra.mxu3 %vm183_vm7, %v2051_v46 }
0x14ee   :  { %2230 = vmatpush.msra.mxu0 %v2467_v25  ;;  %2328 = vmatpush.msrb.mxu3 %v2305_v63 }
0x14f0   :  { %2453 = vmatmul.msk.f32.vlgmr.msrb.gmra.mxu2 %vm183_vm7, %v1947_v42  ;;  %2231 = vmatpush.msra.mxu0 %v2466_v36 }
0x14f1   :  { %2329 = vmatpush.msrb.mxu3 %v2304_v0 }
0x14f2   :  { %2232 = vmatpush.msra.mxu0 %v2465_v23 }
0x1563   :  { %v1685_v45 = vpop.f32.mrf.mxu2 }
0x1564   :  { %v1688_v32 = vadd.f32 %v1685_v45, %v1580_v12 }
0x1566   :  { %v2106_v48 = vadd.f32 %v2104_v43, %v1688_v32 }
0x1568   :  { %v3222_v50 = vadd.f32 %v2106_v48, %v3009_v51 }
0x156a   :  { %v2111_v61 = vsel %vm84_vm2, %v3222_v50, 0.0 }
0x156b   :  { %v1845_v31 = vpop.f32.mrf.mxu2  ;;  %2112 = vadd.xlane.f32.xlu0 %v2111_v61 }
0x156c   :  { %2449 = vmatmul.msk.f32.vlgmr.msrb.gmra.mxu1 %vm183_vm7, %v1845_v31 }
0x1570   :  { %v2075_v58 = vpop.f32.mrf.mxu3 }
0x1571   :  { %2458 = vmatmul.msk.f32.vlgmr.msra.gmra.mxu2 %vm183_vm7, %v2075_v58 }
0x1573   :  { %v1971_v29 = vpop.f32.mrf.mxu2 }
0x1574   :  { %2454 = vmatmul.msk.f32.vlgmr.msra.gmra.mxu1 %vm183_vm7, %v1971_v29 }
0x15de   :  { %v2113_v20 = vpop.xlane.xlu0 %2112 }
0x15df   :  { %v2117_v37 = vmul.f32 %v2113_v20, %v2728_v13 }
0x15e1   :  { %v2119_v40 = vsub.f32 %v3222_v50, %v2117_v37 }
0x15e3   :  { %v2121_v51 = vmul.f32 %v2119_v40, %v2119_v40  ;;  %v2132_v9 = vmul.f32 %v3241_v60, %v2119_v40 }
0x15e5   :  { %v2123_v52 = vsel %vm84_vm2, %v2121_v51, 0.0 }
0x15e6   :  { %2124 = vadd.xlane.f32.xlu2 %v2123_v52 }
0x15e9   :  { %v1868_v49 = vpop.f32.mrf.mxu1 }
0x15ea   :  { %v1892_v53 = vadd.f32 %v3180_v28, %v1868_v49  ;;  %v2462_v28 = vld [vmem:[%s3337_s7 + $0x38] sm:$0xff] }
0x15eb   :  { %2189 = vmatpush.msrb.mxu1 %v2462_v28 }
0x15f1   :  { %v1994_v54 = vpop.f32.mrf.mxu1 }
0x15f2   :  { %v1997_v14 = vadd.f32 %v1994_v54, %v1892_v53 }
0x15f4   :  { %v2098_v55 = vpop.f32.mrf.mxu2 }
0x15f5   :  { %v2101_v56 = vadd.f32 %v2098_v55, %v1997_v14  ;;  %v2501_v55 = vld [vmem:[%s3334_s4 + $0x4] ss:$0 sm:$0xff] }
0x15f7   :  { %v2107_v57 = vadd.f32 %v2104_v43, %v2101_v56 }
0x15f9   :  { %v3234_v59 = vadd.f32 %v2107_v57, %v3076_v39  ;;  %v2461_v39 = vld [vmem:[%s3337_s7 + $0x30] sm:$0xff]  ;;  %s2367_s7 = sshll.u32 %s3342_s12, 4  ;;  %s2368_s7 = int_to_ptr.hbm [resolvable:$true] %s2367_s7 }
0x15fa   :  { %2190 = vmatpush.msrb.mxu1 %v2461_v39 }
0x15fb   :  { %v2114_v47 = vsel %vm84_vm2, %v3234_v59, 0.0 }
0x15fc   :  { %2115 = vadd.xlane.f32.xlu1 %v2114_v47  ;;  %2191 = vmatpush.msrb.mxu1 %v2460_v38 }
0x15fe   :  { %2159 = vrot.lane.b32.xlu2 %v3241_v60, %s2624_s28  ;;  %2192 = vmatpush.msrb.mxu1 %v2459_v62 }
0x1615   :  { %2243 = vrot.lane.b32.xlu1 %v2500_v19, %s2625_s22 }
0x161d   :  { %2297 = vrot.lane.b32.xlu1 %v2501_v55, %s2624_s28 }
0x1659   :  { %v2125_v1 = vpop.xlane.xlu2 %2124 }
0x165a   :  { %v2129_v3 = vmul.f32 %v2125_v1, %v2728_v13 }
0x165c   :  { %v2134_v5 = vadd.f32 1e-06, %v2129_v3 }
0x165e   :  { %2581 = vrsqrt.f32 %v2134_v5  ;;  %vm2142_vm6 = vweird.f32 %v2134_v5 }
0x1661   :  { %v2160_v6 = vpop.permute.xlu2 %2159 }
0x1664   :  { %v2582_v30 = vpop.eup %2581 }
0x1665   :  { %v2137_v2 = vmul.f32 %v2582_v30, %v2134_v5  ;;  %vm2143_vm7 = vweird.f32 %v2582_v30  ;;  %v2302_v5 = vld [vmem:[%s3340_s10] sm:$0xff] }
0x1666   :  { %vm2144_vm8 = vmor %vm2142_vm6, %vm2143_vm7 }
0x1667   :  { %v2138_v35 = vmul.f32 %v2582_v30, %v2137_v2 }
0x1669   :  { %v2139_v7 = vmul.f32 0.5, %v2138_v35 }
0x166b   :  { %v2140_v21 = vsub.f32 1.5, %v2139_v7 }
0x166d   :  { %v2141_v8 = vmul.f32 %v2582_v30, %v2140_v21 }
0x166f   :  { %v2116_v10 = vpop.xlane.xlu1 %2115  ;;  %v2145_v15 = vsel %vm2144_vm8, %v2582_v30, %v2141_v8 }
0x1670   :  { %v2118_v16 = vmul.f32 %v2116_v10, %v2728_v13  ;;  %v2156_v34 = vmul.f32 %v2145_v15, %v2132_v9 }
0x1672   :  { %v2120_v22 = vsub.f32 %v3234_v59, %v2118_v16  ;;  %v2162_v17 = vadd.f32 %v2160_v6, %v2156_v34 }
0x1674   :  { %2463 = vmatmul.msk.f32.vlgmr.msrb.gmra.mxu1 %vm84_vm2, %v2162_v17  ;;  %v2122_v18 = vmul.f32 %v2120_v22, %v2120_v22  ;;  %v2133_v31 = vmul.f32 %v3241_v60, %v2120_v22 }
0x1676   :  { %v2126_v33 = vsel %vm84_vm2, %v2122_v18, 0.0 }
0x1677   :  { %2127 = vadd.xlane.f32.xlu0 %v2126_v33 }
0x1687   :  { %v2244_v40 = vpop.permute.xlu1 %2243 }
0x168f   :  { %v2298_v17 = vpop.permute.xlu1 %2297 }
0x16ea   :  { %v2128_v11 = vpop.xlane.xlu0 %2127 }
0x16eb   :  { %v2130_v41 = vmul.f32 %v2128_v11, %v2728_v13 }
0x16ed   :  { %v2135_v4 = vadd.f32 1e-06, %v2130_v41 }
0x16ef   :  { %2583 = vrsqrt.f32 %v2135_v4  ;;  %vm2152_vm10 = vweird.f32 %v2135_v4 }
0x16f1   :  { %v2194_v46 = vpop.f32.mrf.mxu1 }
0x16f2   :  { %v2195_v42 = vadd.f32 %v2500_v19, %v2194_v46 }
0x16f4   :  { %v2200_v44 = vmax.f32 %v2195_v42, 0.0 }
0x16f5   :  { %v2584_v12 = vpop.eup %2583 }
0x16f6   :  { %v2147_v45 = vmul.f32 %v2584_v12, %v2135_v4  ;;  %2473 = vmatmul.msk.f32.vlgmr.msra.gmra.mxu0 %vm1132_vm3, %v2200_v44  ;;  %vm2153_vm9 = vweird.f32 %v2584_v12 }
0x16f7   :  { %vm2154_vm11 = vmor %vm2152_vm10, %vm2153_vm9 }
0x16f8   :  { %v2148_v43 = vmul.f32 %v2584_v12, %v2147_v45 }
0x16fa   :  { %v2149_v32 = vmul.f32 0.5, %v2148_v43 }
0x16fc   :  { %v2150_v48 = vsub.f32 1.5, %v2149_v32 }
0x16fe   :  { %v2151_v61 = vmul.f32 %v2584_v12, %v2150_v48 }
0x1700   :  { %v2155_v58 = vsel %vm2154_vm11, %v2584_v12, %v2151_v61 }
0x1701   :  { %v2157_v29 = vmul.f32 %v2155_v58, %v2133_v31 }
0x1703   :  { %v2163_v20 = vadd.f32 %v2160_v6, %v2157_v29 }
0x1705   :  { %2464 = vmatmul.msk.f32.gmra.mxu1 %vm84_vm2, %v2163_v20 }
0x1773   :  { %v2234_v37 = vpop.f32.mrf.mxu0 }
0x1774   :  { %v2240_v51 = vadd.f32 %v2234_v37, %v3222_v50 }
0x1776   :  { %v2246_v52 = vadd.f32 %v2244_v40, %v2240_v51 }
0x1778   :  { %v2249_v49 = vsel %vm84_vm2, %v2246_v52, 0.0 }
0x1779   :  { %2250 = vadd.xlane.f32.xlu0 %v2249_v49 }
0x1782   :  { %v2197_v53 = vpop.f32.mrf.mxu1 }
0x1783   :  { %v2198_v54 = vadd.f32 %v2500_v19, %v2197_v53 }
0x1785   :  { %v2201_v14 = vmax.f32 %v2198_v54, 0.0 }
0x1787   :  { %2474 = vmatmul.msk.f32.gmra.mxu0 %vm1132_vm3, %v2201_v14 }
0x17ec   :  { %v2251_v56 = vpop.xlane.xlu0 %2250 }
0x17ed   :  { %v2255_v47 = vmul.f32 %v2251_v56, %v2728_v13 }
0x17ef   :  { %v2257_v28 = vsub.f32 %v2246_v52, %v2255_v47 }
0x17f1   :  { %v2259_v38 = vmul.f32 %v2257_v28, %v2257_v28  ;;  %v2270_v22 = vmul.f32 %v2501_v55, %v2257_v28 }
0x17f3   :  { %v2261_v62 = vsel %vm84_vm2, %v2259_v38, 0.0 }
0x1804   :  { %v2237_v57 = vpop.f32.mrf.mxu0 }
0x1805   :  { %v2241_v50 = vadd.f32 %v2237_v57, %v3234_v59  ;;  %v2303_v59 = vld [vmem:[%s3340_s10 + $0x8] sm:$0xff] }
0x1806   :  { %2330 = vmatpush.msrb.mxu3 %v2303_v59 }
0x1807   :  { %v2247_v60 = vadd.f32 %v2244_v40, %v2241_v50 }
0x1808   :  { %2331 = vmatpush.msrb.mxu3 %v2302_v5 }
0x1809   :  { %v2252_v39 = vsel %vm84_vm2, %v2247_v60, 0.0 }
0x180a   :  { %2253 = vadd.xlane.f32.xlu0 %v2252_v39 }
0x1812   :  { %2262 = vadd.xlane.f32.xlu0 %v2261_v62 }
0x187d   :  { %v2254_v1 = vpop.xlane.xlu0 %2253 }
0x187e   :  { %v2256_v3 = vmul.f32 %v2254_v1, %v2728_v13 }
0x1880   :  { %v2258_v30 = vsub.f32 %v2247_v60, %v2256_v3 }
0x1882   :  { %v2260_v2 = vmul.f32 %v2258_v30, %v2258_v30  ;;  %v2271_v46 = vmul.f32 %v2501_v55, %v2258_v30 }
0x1884   :  { %v2264_v35 = vsel %vm84_vm2, %v2260_v2, 0.0 }
0x1885   :  { %2265 = vadd.xlane.f32.xlu2 %v2264_v35  ;;  %v2263_v7 = vpop.xlane.xlu0 %2262 }
0x1886   :  { %v2267_v21 = vmul.f32 %v2263_v7, %v2728_v13 }
0x1888   :  { %v2272_v8 = vadd.f32 1e-06, %v2267_v21 }
0x188a   :  { %2585 = vrsqrt.f32 %v2272_v8  ;;  %vm2280_vm12 = vweird.f32 %v2272_v8 }
0x1890   :  { %v2586_v9 = vpop.eup %2585 }
0x1891   :  { %v2275_v10 = vmul.f32 %v2586_v9, %v2272_v8  ;;  %vm2281_vm3 = vweird.f32 %v2586_v9 }
0x1892   :  { %vm2282_vm13 = vmor %vm2280_vm12, %vm2281_vm3 }
0x1893   :  { %v2276_v15 = vmul.f32 %v2586_v9, %v2275_v10 }
0x1895   :  { %v2277_v6 = vmul.f32 0.5, %v2276_v15 }
0x1897   :  { %v2278_v16 = vsub.f32 1.5, %v2277_v6 }
0x1899   :  { %v2279_v34 = vmul.f32 %v2586_v9, %v2278_v16 }
0x189b   :  { %v2283_v18 = vsel %vm2282_vm13, %v2586_v9, %v2279_v34 }
0x189c   :  { %v2294_v33 = vmul.f32 %v2283_v18, %v2270_v22 }
0x189e   :  { %v2300_v24 = vadd.f32 %v2298_v17, %v2294_v33 }
0x18a0   :  { %2475 = vmatmul.msk.f32.vlgmr.msrb.gmra.mxu3 %vm84_vm2, %v2300_v24 }
0x18f8   :  { %v2266_v26 = vpop.xlane.xlu2 %2265 }
0x18f9   :  { %v2268_v27 = vmul.f32 %v2266_v26, %v2728_v13  ;;  %v2502_v13 = vld [vmem:[%s3341_s11] ss:$0 sm:$0xff]  ;;  %s2636_s11 = smov [#allocation2]  }
0x18fa   :  { %s2365_s24 = sshll.u32 %s2636_s11, 4  ;;  %s2366_s24 = int_to_ptr.vmem [resolvable:$true] %s2365_s24 }
0x18fb   :  { %v2273_v19 = vadd.f32 1e-06, %v2268_v27 }
0x18fd   :  { %2587 = vrsqrt.f32 %v2273_v19  ;;  %vm2290_vm15 = vweird.f32 %v2273_v19 }
0x1903   :  { %v2588_v25 = vpop.eup %2587 }
0x1904   :  { %v2285_v36 = vmul.f32 %v2588_v25, %v2273_v19  ;;  %vm2291_vm14 = vweird.f32 %v2588_v25 }
0x1905   :  { %vm2292_vm0 = vmor %vm2290_vm15, %vm2291_vm14 }
0x1906   :  { %v2286_v23 = vmul.f32 %v2588_v25, %v2285_v36 }
0x1908   :  { %v2287_v11 = vmul.f32 0.5, %v2286_v23 }
0x190a   :  { %v2288_v41 = vsub.f32 1.5, %v2287_v11 }
0x190c   :  { %v2289_v4 = vmul.f32 %v2588_v25, %v2288_v41 }
0x190e   :  { %v2293_v42 = vsel %vm2292_vm0, %v2588_v25, %v2289_v4 }
0x190f   :  { %v2295_v44 = vmul.f32 %v2293_v42, %v2271_v46 }
0x1911   :  { %v2301_v12 = vadd.f32 %v2298_v17, %v2295_v44 }
0x1913   :  { %2476 = vmatmul.msk.f32.gmra.mxu3 %vm84_vm2, %v2301_v12 }
0x1923   :  { %v2333_v45 = vpop.f32.mrf.mxu3 }
0x1924   :  { %v2334_v43 = vadd.f32 %v2502_v13, %v2333_v45 }
0x1926   :  { %2339 = vmax.xlane.f32.xlu0 %v2334_v43 }
0x1996   :  { %v2336_v32 = vpop.f32.mrf.mxu3 }
0x1997   :  { %v2337_v48 = vadd.f32 %v2502_v13, %v2336_v32 }
0x1999   :  { %2341 = vmax.xlane.f32.xlu1 %v2337_v48  ;;  %v2340_v61 = vpop.xlane.xlu0 %2339 }
0x199a   :  { %v2343_v31 = vsub.f32 %v2334_v43, %v2340_v61 }
0x199c   :  { %v2345_v58 = vmul.f32 1.442695, %v2343_v31 }
0x199e   :  { %2589 = vpow2.f32 %v2345_v58 }
0x19a4   :  { %v2590_v29 = vpop.eup %2589 }
0x19a5   :  { %2349 = vadd.xlane.f32.xlu0 %v2590_v29 }
0x1a0c   :  { %v2342_v20 = vpop.xlane.xlu1 %2341 }
0x1a0d   :  { %v2344_v37 = vsub.f32 %v2337_v48, %v2342_v20 }
0x1a0f   :  { %v2347_v40 = vmul.f32 1.442695, %v2344_v37 }
0x1a11   :  { %2591 = vpow2.f32 %v2347_v40 }
0x1a17   :  { %v2592_v51 = vpop.eup %2591 }
0x1a18   :  { %2351 = vadd.xlane.f32.xlu0 %v2592_v51  ;;  %v2350_v52 = vpop.xlane.xlu0 %2349 }
0x1a19   :  { %2593 = vlog2.f32 %v2350_v52 }
0x1a1f   :  { %v2594_v49 = vpop.eup %2593 }
0x1a20   :  { %v2354_v53 = vmul.f32 0.6931472, %v2594_v49 }
0x1a22   :  { %v2357_v54 = vsub.f32 %v2343_v31, %v2354_v53 }
0x1a24   :  { %2359 = vst [vmem:[#allocation2] sm:$0xff] %v2357_v54 }
0x1a8b   :  { %v2352_v14 = vpop.xlane.xlu0 %2351 }
0x1a8c   :  { %2595 = vlog2.f32 %v2352_v14 }
0x1a92   :  { %v2596_v55 = vpop.eup %2595 }
0x1a93   :  { %v2356_v56 = vmul.f32 0.6931472, %v2596_v55 }
0x1a95   :  { %v2358_v57 = vsub.f32 %v2344_v37, %v2356_v56 }
0x1a97   :  { %2360 = vst [vmem:[#allocation2 + $0x8] sm:$0xff] %v2358_v57 }
0x1a98   :  { %2373 = dma.vmem_to_hbm [thread:$0]  %s2366_s24, 256, %s2368_s7, [#allocation3], %s2637_s16, %s2637_s16, %s2638_s17  }
0x1a99   :  { %2621 = dma.done.wait [#allocation3], 256  }
0x1a9a   :  { %2622 = vsyncadd [#allocation3], 4294967040 }
0x1a9b   :  { %2378 = vsyncpa [#allocation3], 1 }

</bundles_post_ra>
